<compile_context>
chip_gen: v5e
topology: v5e:2x2
jax: 0.10.0
libtpu: 0.0.40
codegen_flags: <defaults>
</compile_context>

<pallas_src>
import functools
import math

import jax
import jax.numpy as jnp
import numpy as np
from jax.experimental import pallas as pl
from jax.experimental.pallas import tpu as pltpu


# ---------------------------------------------------------------------------
# Host-side weight packing: many tiny leaves -> a few row-stacked VMEM slabs
# ---------------------------------------------------------------------------
def _pad_rows(a, mult=8):
    r = a.shape[0]
    rp = -(-r // mult) * mult
    if rp == r:
        return a
    return jnp.concatenate(
        [a, jnp.zeros((rp - r,) + a.shape[1:], a.dtype)], axis=0)


def _pack_rows(entries):
    """entries: [(name, 2-D array)] sharing a column count.

    Returns (slab, {name: (row_offset, n_rows)}); rows 8-aligned per entry.
    """
    parts, index, off = [], {}, 0
    for name, a in entries:
        a = jnp.asarray(a, jnp.float32)
        ap = _pad_rows(a)
        parts.append(ap)
        index[name] = (off, a.shape[0])
        off += ap.shape[0]
    return jnp.concatenate(parts, axis=0), index


def _pack_vecs(entries):
    """entries: [(name, 1-D array)] sharing a length.  Returns ((N,d), {name: row})."""
    rows, index = [], {}
    for i, (name, v) in enumerate(entries):
        rows.append(jnp.asarray(v, jnp.float32).reshape(1, -1))
        index[name] = i
    return jnp.concatenate(rows, axis=0), index


def _prep_slabs(params, dx, dy):
    xy = params["xy"]
    w1 = xy["w1"]                       # (dx+dy+1, dz)

    mats_dz = [("xy.w1cx", w1[:dx + dy]),     # context: [xc|yc] @ w1[:dx+dy]
               ("xy.w1x", w1[:dx]),           # targets: xt @ w1[:dx]
               ("xy.w2", xy["w2"]),
               ("latents", params["latents"])]
    mats_ff, mats_kv, mats_qkv = [], [], []
    vecs_dz = [("xy.b1", xy["b1"]),
               ("xy.b1t", xy["b1"] + w1[dx + dy]),   # flag column folded in
               ("xy.b2", xy["b2"])]
    vecs_ff = []

    for l, layer in enumerate(params["layers"]):
        for bl in ("ctoq", "mhsa", "qtot"):
            p = layer[bl]
            pre = f"{l}.{bl}"
            if bl == "mhsa":            # self-attn: fused Q|K|V projection
                mats_qkv.append(
                    (pre + ".wqkv",
                     jnp.concatenate([p["wq"], p["wk"], p["wv"]], axis=1)))
            else:                       # cross-attn: Wq + fused K|V
                mats_dz.append((pre + ".wq", p["wq"]))
                mats_kv.append(
                    (pre + ".wkv", jnp.concatenate([p["wk"], p["wv"]], axis=1)))
            mats_dz.append((pre + ".wo", p["wo"]))
            mats_dz.append((pre + ".ffw2", p["ff_w2"]))
            mats_ff.append((pre + ".ffw1", p["ff_w1"]))
            vecs_dz += [(pre + ".bo", p["bo"]),
                        (pre + ".ln1g", p["ln1_g"]), (pre + ".ln1b", p["ln1_b"]),
                        (pre + ".ln2g", p["ln2_g"]), (pre + ".ln2b", p["ln2_b"]),
                        (pre + ".ffb2", p["ff_b2"])]
            vecs_ff.append((pre + ".ffb1", p["ff_b1"]))

    w_dz, idx_dz = _pack_rows(mats_dz)
    w_ff, idx_ff = _pack_rows(mats_ff)
    w_kv, idx_kv = _pack_rows(mats_kv)
    w_qkv, idx_qkv = _pack_rows(mats_qkv)
    v_dz, idx_vdz = _pack_vecs(vecs_dz)
    v_ff, idx_vff = _pack_vecs(vecs_ff)

    slabs = (w_dz, w_ff, w_kv, w_qkv, v_dz, v_ff)
    idx = {"dz": idx_dz, "ff": idx_ff, "kv": idx_kv, "qkv": idx_qkv,
           "vdz": idx_vdz, "vff": idx_vff}
    return slabs, idx


# ---------------------------------------------------------------------------
# Fused whole-forward kernel (TB batch elements per grid step)
# ---------------------------------------------------------------------------
def _fused_encoder_kernel(xc_ref, yc_ref, xt_ref,
                          wdz_ref, wff_ref, wkv_ref, wqkv_ref,
                          vdz_ref, vff_ref, o_ref, *, idx, dims):
    tb = dims["tb"]
    nc, nt, nl = dims["nc"], dims["nt"], dims["nl"]
    dx, dy, dz = dims["dx"], dims["dy"], dims["dz"]
    heads, num_layers, eps = dims["heads"], dims["layers"], dims["eps"]
    dh = dz // heads
    f32 = jnp.float32

    # ---- static slab slices (row offsets are Python ints -> zero-cost views)
    def Wd(name):
        off, r = idx["dz"][name]
        return wdz_ref[off:off + r, :]

    def Wf(name):
        off, r = idx["ff"][name]
        return wff_ref[off:off + r, :]

    def Wk(name):
        off, r = idx["kv"][name]
        return wkv_ref[off:off + r, :]

    def Wq3(name):
        off, r = idx["qkv"][name]
        return wqkv_ref[off:off + r, :]

    def Vd(name):
        i = idx["vdz"][name]
        return vdz_ref[i:i + 1, :]

    def Vf(name):
        i = idx["vff"][name]
        return vff_ref[i:i + 1, :]

    def mm(a, b):
        return jnp.dot(a, b, preferred_element_type=f32)

    def layernorm(x, g, b):
        # E[x^2] - mu^2: two independent cross-lane reductions (pipeline on XLU)
        mu = jnp.mean(x, axis=-1, keepdims=True)
        ms = jnp.mean(x * x, axis=-1, keepdims=True)
        var = jnp.maximum(ms - mu * mu, 0.0)
        return (x - mu) * jax.lax.rsqrt(var + eps) * g + b

    def mha(xq2, xkv2, pre, nq, nk, self_attn):
        """Multi-head attention on 2-D row-stacked activations.

        xq2: (tb*nq, dz), xkv2: (tb*nk, dz) -> (tb*nq, dz)
        """
        if self_attn:                       # fused Q|K|V, one MXU push
            qkv = mm(xq2, Wq3(pre + ".wqkv"))          # (tb*nq, 3*dz)
            q2 = qkv[:, :dz]
            kv2 = qkv[:, dz:]
        else:
            q2 = mm(xq2, Wd(pre + ".wq"))              # (tb*nq, dz)
            kv2 = mm(xkv2, Wk(pre + ".wkv"))           # (tb*nk, 2*dz)

        q = q2.reshape(tb, nq, dz)
        kv = kv2.reshape(tb, nk, 2 * dz)
        scale = 1.0 / math.sqrt(dh)

        # Stack all heads along the sublane (query-row) axis -> one softmax.
        s_parts = [
            jnp.einsum("bqd,bkd->bqk",
                       q[:, :, h * dh:(h + 1) * dh],
                       kv[:, :, h * dh:(h + 1) * dh],
                       preferred_element_type=f32)
            for h in range(heads)]
        s = jnp.concatenate(s_parts, axis=1) * scale   # (tb, heads*nq, nk)

        s_max = jnp.max(s, axis=-1, keepdims=True)
        p = jnp.exp(s - s_max)
        denom = jnp.sum(p, axis=-1, keepdims=True)
        p = p * pl.reciprocal(denom, approx=True)

        o_parts = [
            jnp.einsum("bqk,bkd->bqd",
                       p[:, h * nq:(h + 1) * nq, :],
                       kv[:, :, dz + h * dh: dz + (h + 1) * dh],
                       preferred_element_type=f32)
            for h in range(heads)]
        o = jnp.concatenate(o_parts, axis=-1)          # (tb, nq, dz)
        o = o.reshape(tb * nq, dz)
        return mm(o, Wd(pre + ".wo")) + Vd(pre + ".bo")

    def attn_layer(xq2, xkv2, pre, nq, nk, self_attn=False):
        # post-norm (norm_first=False) transformer block, as in tnp default
        a = mha(xq2, xkv2, pre, nq, nk, self_attn)
        x = layernorm(xq2 + a, Vd(pre + ".ln1g"), Vd(pre + ".ln1b"))
        f = jnp.maximum(mm(x, Wf(pre + ".ffw1")) + Vf(pre + ".ffb1"), 0.0)
        f = mm(f, Wd(pre + ".ffw2")) + Vd(pre + ".ffb2")
        return layernorm(x + f, Vd(pre + ".ln2g"), Vd(pre + ".ln2b"))

    # ---- xy_encoder with preprocess_observations folded in -----------------
    xc2 = xc_ref[...].reshape(tb * nc, dx).astype(f32)
    yc2 = yc_ref[...].reshape(tb * nc, dy).astype(f32)
    xt2 = xt_ref[...].reshape(tb * nt, dx).astype(f32)

    xyc2 = jnp.concatenate([xc2, yc2], axis=-1)        # (tb*nc, dx+dy)
    h_c = jnp.maximum(mm(xyc2, Wd("xy.w1cx")) + Vd("xy.b1"), 0.0)
    zc2 = mm(h_c, Wd("xy.w2")) + Vd("xy.b2")           # (tb*nc, dz)
    h_t = jnp.maximum(mm(xt2, Wd("xy.w1x")) + Vd("xy.b1t"), 0.0)
    zt2 = mm(h_t, Wd("xy.w2")) + Vd("xy.b2")           # (tb*nt, dz)

    # ---- PerceiverEncoder: latents, cross / self / cross attention ---------
    lat = Wd("latents")                                 # (nl, dz)
    xq2 = jnp.concatenate([lat] * tb, axis=0) if tb > 1 else lat

    for l in range(num_layers):
        xq2 = attn_layer(xq2, zc2, f"{l}.ctoq", nl, nc)               # lat <- ctx
        xq2 = attn_layer(xq2, xq2, f"{l}.mhsa", nl, nl, self_attn=True)
        zt2 = attn_layer(zt2, xq2, f"{l}.qtot", nt, nl)               # tgt <- lat

    o_ref[...] = zt2.reshape(tb, nt, dz).astype(o_ref.dtype)


# ---------------------------------------------------------------------------
# Wrapper
# ---------------------------------------------------------------------------
def pttnp_encoder_forward(params, xc, yc, xt, *, num_heads, eps=1e-5,
                          batch_tile=8):
    """PTTNPEncoder.forward: xc [m,nc,dx], yc [m,nc,dy], xt [m,nt,dx] -> [m,nt,dz]."""
    m, nc, dx = xc.shape
    dy = yc.shape[-1]
    nt = xt.shape[1]
    nl, dz = params["latents"].shape
    num_layers = len(params["layers"])
    assert dz % num_heads == 0, (dz, num_heads)
    assert num_layers >= 1

    # largest batch tile (<= batch_tile) that divides m
    tb = min(batch_tile, m)
    while m % tb:
        tb -= 1
    grid_len = m // tb

    slabs, idx = _prep_slabs(params, dx, dy)
    dims = {"tb": tb, "nc": nc, "nt": nt, "nl": nl, "dx": dx, "dy": dy,
            "dz": dz, "heads": num_heads, "layers": num_layers, "eps": eps}

    act_specs = [
        pl.BlockSpec((tb, nc, dx), lambda b: (b, 0, 0)),
        pl.BlockSpec((tb, nc, dy), lambda b: (b, 0, 0)),
        pl.BlockSpec((tb, nt, dx), lambda b: (b, 0, 0)),
    ]
    # Weight slabs: full block, constant index_map -> DMA'd once, resident in
    # VMEM across all grid steps.
    slab_specs = [pl.BlockSpec(s.shape, lambda b: (0, 0)) for s in slabs]

    # single-step grids: don't split across TCs (per v7x guidance)
    sem = ("parallel",) if grid_len > 1 else ("arbitrary",)

    return pl.pallas_call(
        functools.partial(_fused_encoder_kernel, idx=idx, dims=dims),
        out_shape=jax.ShapeDtypeStruct((m, nt, dz), xc.dtype),
        grid=(grid_len,),
        in_specs=act_specs + slab_specs,
        out_specs=pl.BlockSpec((tb, nt, dz), lambda b: (b, 0, 0)),
        compiler_params=pltpu.CompilerParams(dimension_semantics=sem),
    )(xc, yc, xt, *slabs)


# ---------------------------------------------------------------------------
# Pure-JAX reference (for correctness check)
# ---------------------------------------------------------------------------
def ref_forward(params, xc, yc, xt, *, num_heads, eps=1e-5):
    def linear(x, w, b=None, act=None):
        y = x @ w
        if b is not None:
            y = y + b
        return jnp.maximum(y, 0.0) if act == "relu" else y

    def layernorm(x, g, b):
        mu = x.mean(-1, keepdims=True)
        var = ((x - mu) ** 2).mean(-1, keepdims=True)
        return (x - mu) / jnp.sqrt(var + eps) * g + b

    def mha(xq, xkv, blk):
        m_, nq, d = xq.shape
        nk = xkv.shape[1]
        dh = d // num_heads
        q = xq @ blk["wq"]
        k = xkv @ blk["wk"]
        v = xkv @ blk["wv"]

        def split(x, n):
            return x.reshape(m_, n, num_heads, dh).transpose(0, 2, 1, 3)

        q, k, v = split(q, nq), split(k, nk), split(v, nk)
        s = jnp.einsum("mhqd,mhkd->mhqk", q, k) / math.sqrt(dh)
        p = jax.nn.softmax(s, axis=-1)
        o = jnp.einsum("mhqk,mhkd->mhqd", p, v)
        o = o.transpose(0, 2, 1, 3).reshape(m_, nq, d)
        return o @ blk["wo"] + blk["bo"]

    def attn_layer(xq, xkv, blk):
        x = layernorm(xq + mha(xq, xkv, blk), blk["ln1_g"], blk["ln1_b"])
        f = linear(linear(x, blk["ff_w1"], blk["ff_b1"], "relu"),
                   blk["ff_w2"], blk["ff_b2"])
        return layernorm(x + f, blk["ln2_g"], blk["ln2_b"])

    m_, nc, _ = xc.shape
    dy_ = yc.shape[-1]
    nt_ = xt.shape[1]
    yc_p = jnp.concatenate([yc, jnp.zeros((m_, nc, 1), yc.dtype)], -1)
    yt_p = jnp.concatenate([jnp.zeros((m_, nt_, dy_), yc.dtype),
                            jnp.ones((m_, nt_, 1), yc.dtype)], -1)
    zc = jnp.concatenate([xc, yc_p], -1)
    zt = jnp.concatenate([xt, yt_p], -1)
    xyp = params["xy"]
    zc = linear(linear(zc, xyp["w1"], xyp["b1"], "relu"), xyp["w2"], xyp["b2"])
    zt = linear(linear(zt, xyp["w1"], xyp["b1"], "relu"), xyp["w2"], xyp["b2"])
    xq = jnp.broadcast_to(params["latents"][None],
                          (m_,) + params["latents"].shape)
    for layer in params["layers"]:
        xq = attn_layer(xq, zc, layer["ctoq"])
        xq = attn_layer(xq, xq, layer["mhsa"])
        zt = attn_layer(zt, xq, layer["qtot"])
    return zt


# ---------------------------------------------------------------------------
# Deterministic synthetic parameters
# ---------------------------------------------------------------------------
def init_params(key, *, dx, dy, dz, ff_dim, num_latents, num_layers):
    d_in = dx + dy + 1
    keys = iter(jax.random.split(key, 256))

    def w(shape, scale=0.1):
        return (scale * jax.random.normal(next(keys), shape)).astype(jnp.float32)

    def attn_block():
        return {
            "wq": w((dz, dz)), "wk": w((dz, dz)), "wv": w((dz, dz)),
            "wo": w((dz, dz)), "bo": w((dz,)),
            "ln1_g": jnp.ones((dz,), jnp.float32),
            "ln1_b": jnp.zeros((dz,), jnp.float32),
            "ln2_g": jnp.ones((dz,), jnp.float32),
            "ln2_b": jnp.zeros((dz,), jnp.float32),
            "ff_w1": w((dz, ff_dim)), "ff_b1": w((ff_dim,)),
            "ff_w2": w((ff_dim, dz)), "ff_b2": w((dz,)),
        }

    return {
        "xy": {"w1": w((d_in, dz)), "b1": w((dz,)),
               "w2": w((dz, dz)), "b2": w((dz,))},
        "latents": w((num_latents, dz), scale=1.0),
        "layers": [
            {"ctoq": attn_block(), "mhsa": attn_block(), "qtot": attn_block()}
            for _ in range(num_layers)
        ],
    }


# ---------------------------------------------------------------------------
if __name__ == "__main__":
    m, nc, nt = 2, 8, 8
    dx, dy = 2, 1
    dz, num_heads, ff_dim = 32, 4, 32
    num_latents, num_layers = 8, 1

    key = jax.random.PRNGKey(0)
    k_xc, k_yc, k_xt, k_p = jax.random.split(key, 4)
    xc = jax.random.normal(k_xc, (m, nc, dx), jnp.float32)
    yc = jax.random.normal(k_yc, (m, nc, dy), jnp.float32)
    xt = jax.random.normal(k_xt, (m, nt, dx), jnp.float32)

    params = init_params(k_p, dx=dx, dy=dy, dz=dz, ff_dim=ff_dim,
                         num_latents=num_latents, num_layers=num_layers)

    fwd = jax.jit(functools.partial(pttnp_encoder_forward, num_heads=num_heads))
    zt = jax.block_until_ready(fwd(params, xc, yc, xt))

    assert zt.shape == (m, nt, dz), zt.shape
    assert bool(jnp.all(jnp.isfinite(zt)))

    ref = ref_forward(params, xc, yc, xt, num_heads=num_heads)
    err = float(jnp.max(jnp.abs(zt - ref)))
    assert np.allclose(np.asarray(zt), np.asarray(ref),
                       atol=5e-3, rtol=5e-3), err

    print("KERNEL_OK")
</pallas_src>

<mosaic_0001>
module attributes {stable_mosaic.version = 11 : i64} {
  func.func @_fused_encoder_kernel(%arg0: i32, %arg1: memref<2x8x2xf32, #tpu.memory_space<vmem>>, %arg2: memref<2x8x1xf32, #tpu.memory_space<vmem>>, %arg3: memref<2x8x2xf32, #tpu.memory_space<vmem>>, %arg4: memref<312x32xf32, #tpu.memory_space<vmem>>, %arg5: memref<96x32xf32, #tpu.memory_space<vmem>>, %arg6: memref<64x64xf32, #tpu.memory_space<vmem>>, %arg7: memref<32x96xf32, #tpu.memory_space<vmem>>, %arg8: memref<21x32xf32, #tpu.memory_space<vmem>>, %arg9: memref<3x32xf32, #tpu.memory_space<vmem>>, %arg10: memref<2x8x32xf32, #tpu.memory_space<vmem>>) attributes {dimension_semantics = [#tpu.dimension_semantics<arbitrary>], iteration_bounds = array<i64: 1>, scalar_prefetch = 0 : i64, scratch_operands = 0 : i64, tpu.core_type = #tpu.core_type<tc>, window_params = [{transform_indices = @transform_0, window_bounds = array<i64: 2, 8, 2>}, {transform_indices = @transform_1, window_bounds = array<i64: 2, 8, 1>}, {transform_indices = @transform_2, window_bounds = array<i64: 2, 8, 2>}, {pipeline_mode = #tpu.pipeline_mode<synchronous>, transform_indices = @transform_3, window_bounds = array<i64: 312, 32>}, {pipeline_mode = #tpu.pipeline_mode<synchronous>, transform_indices = @transform_4, window_bounds = array<i64: 96, 32>}, {pipeline_mode = #tpu.pipeline_mode<synchronous>, transform_indices = @transform_5, window_bounds = array<i64: 64, 64>}, {pipeline_mode = #tpu.pipeline_mode<synchronous>, transform_indices = @transform_6, window_bounds = array<i64: 32, 96>}, {pipeline_mode = #tpu.pipeline_mode<synchronous>, transform_indices = @transform_7, window_bounds = array<i64: 21, 32>}, {pipeline_mode = #tpu.pipeline_mode<synchronous>, transform_indices = @transform_8, window_bounds = array<i64: 3, 32>}, {transform_indices = @transform_9, window_bounds = array<i64: 2, 8, 32>}]} {
    %c0 = arith.constant 0 : index
    %c0_0 = arith.constant 0 : index
    %c0_1 = arith.constant 0 : index
    %0 = vector.load %arg1[%c0, %c0_0, %c0_1] : memref<2x8x2xf32, #tpu.memory_space<vmem>>, vector<2x8x2xf32>
    %1 = vector.shape_cast %0 : vector<2x8x2xf32> to vector<16x2xf32>
    %c0_2 = arith.constant 0 : index
    %c0_3 = arith.constant 0 : index
    %c0_4 = arith.constant 0 : index
    %2 = vector.load %arg2[%c0_2, %c0_3, %c0_4] : memref<2x8x1xf32, #tpu.memory_space<vmem>>, vector<2x8x1xf32>
    %3 = vector.shape_cast %2 : vector<2x8x1xf32> to vector<16x1xf32>
    %c0_5 = arith.constant 0 : index
    %c0_6 = arith.constant 0 : index
    %c0_7 = arith.constant 0 : index
    %4 = vector.load %arg3[%c0_5, %c0_6, %c0_7] : memref<2x8x2xf32, #tpu.memory_space<vmem>>, vector<2x8x2xf32>
    %5 = vector.shape_cast %4 : vector<2x8x2xf32> to vector<16x2xf32>
    %6 = tpu.concatenate %1, %3 in 1 : vector<16x2xf32>, vector<16x1xf32> -> vector<16x3xf32>
    %c0_8 = arith.constant 0 : index
    %c0_9 = arith.constant 0 : index
    %7 = vector.load %arg4[%c0_8, %c0_9] : memref<312x32xf32, #tpu.memory_space<vmem>>, vector<3x32xf32>
    %cst = arith.constant dense<0.000000e+00> : vector<16x32xf32>
    %8 = tpu.matmul %6, %7, %cst {dimension_numbers = #tpu.dot_dimension_numbers<[1], [0], [0], [1], [0, 0, 1, 1], [], []>} : vector<16x3xf32>, vector<3x32xf32>, vector<16x32xf32> -> vector<16x32xf32>
    %c0_10 = arith.constant 0 : index
    %c0_11 = arith.constant 0 : index
    %9 = vector.load %arg8[%c0_10, %c0_11] : memref<21x32xf32, #tpu.memory_space<vmem>>, vector<1x32xf32>
    %10 = vector.broadcast %9 : vector<1x32xf32> to vector<16x32xf32>
    %11 = arith.addf %8, %10 : vector<16x32xf32>
    %cst_12 = arith.constant 0.000000e+00 : f32
    %12 = vector.broadcast %cst_12 : f32 to vector<16x32xf32>
    %13 = arith.maximumf %11, %12 : vector<16x32xf32>
    %c16 = arith.constant 16 : index
    %c0_13 = arith.constant 0 : index
    %14 = vector.load %arg4[%c16, %c0_13] : memref<312x32xf32, #tpu.memory_space<vmem>>, vector<32x32xf32>
    %cst_14 = arith.constant dense<0.000000e+00> : vector<16x32xf32>
    %15 = tpu.matmul %13, %14, %cst_14 {dimension_numbers = #tpu.dot_dimension_numbers<[1], [0], [0], [1], [0, 0, 1, 1], [], []>} : vector<16x32xf32>, vector<32x32xf32>, vector<16x32xf32> -> vector<16x32xf32>
    %c2 = arith.constant 2 : index
    %c0_15 = arith.constant 0 : index
    %16 = vector.load %arg8[%c2, %c0_15] : memref<21x32xf32, #tpu.memory_space<vmem>>, vector<1x32xf32>
    %17 = vector.broadcast %16 : vector<1x32xf32> to vector<16x32xf32>
    %18 = arith.addf %15, %17 : vector<16x32xf32>
    %c8 = arith.constant 8 : index
    %c0_16 = arith.constant 0 : index
    %19 = vector.load %arg4[%c8, %c0_16] : memref<312x32xf32, #tpu.memory_space<vmem>>, vector<2x32xf32>
    %cst_17 = arith.constant dense<0.000000e+00> : vector<16x32xf32>
    %20 = tpu.matmul %5, %19, %cst_17 {dimension_numbers = #tpu.dot_dimension_numbers<[1], [0], [0], [1], [0, 0, 1, 1], [], []>} : vector<16x2xf32>, vector<2x32xf32>, vector<16x32xf32> -> vector<16x32xf32>
    %c1 = arith.constant 1 : index
    %c0_18 = arith.constant 0 : index
    %21 = vector.load %arg8[%c1, %c0_18] : memref<21x32xf32, #tpu.memory_space<vmem>>, vector<1x32xf32>
    %22 = vector.broadcast %21 : vector<1x32xf32> to vector<16x32xf32>
    %23 = arith.addf %20, %22 : vector<16x32xf32>
    %cst_19 = arith.constant 0.000000e+00 : f32
    %24 = vector.broadcast %cst_19 : f32 to vector<16x32xf32>
    %25 = arith.maximumf %23, %24 : vector<16x32xf32>
    %c16_20 = arith.constant 16 : index
    %c0_21 = arith.constant 0 : index
    %26 = vector.load %arg4[%c16_20, %c0_21] : memref<312x32xf32, #tpu.memory_space<vmem>>, vector<32x32xf32>
    %cst_22 = arith.constant dense<0.000000e+00> : vector<16x32xf32>
    %27 = tpu.matmul %25, %26, %cst_22 {dimension_numbers = #tpu.dot_dimension_numbers<[1], [0], [0], [1], [0, 0, 1, 1], [], []>} : vector<16x32xf32>, vector<32x32xf32>, vector<16x32xf32> -> vector<16x32xf32>
    %c2_23 = arith.constant 2 : index
    %c0_24 = arith.constant 0 : index
    %28 = vector.load %arg8[%c2_23, %c0_24] : memref<21x32xf32, #tpu.memory_space<vmem>>, vector<1x32xf32>
    %29 = vector.broadcast %28 : vector<1x32xf32> to vector<16x32xf32>
    %30 = arith.addf %27, %29 : vector<16x32xf32>
    %c48 = arith.constant 48 : index
    %c0_25 = arith.constant 0 : index
    %31 = vector.load %arg4[%c48, %c0_25] : memref<312x32xf32, #tpu.memory_space<vmem>>, vector<8x32xf32>
    %32 = tpu.concatenate %31, %31 in 0 : vector<8x32xf32>, vector<8x32xf32> -> vector<16x32xf32>
    %c56 = arith.constant 56 : index
    %c0_26 = arith.constant 0 : index
    %33 = vector.load %arg4[%c56, %c0_26] : memref<312x32xf32, #tpu.memory_space<vmem>>, vector<32x32xf32>
    %cst_27 = arith.constant dense<0.000000e+00> : vector<16x32xf32>
    %34 = tpu.matmul %32, %33, %cst_27 {dimension_numbers = #tpu.dot_dimension_numbers<[1], [0], [0], [1], [0, 0, 1, 1], [], []>} : vector<16x32xf32>, vector<32x32xf32>, vector<16x32xf32> -> vector<16x32xf32>
    %c0_28 = arith.constant 0 : index
    %c0_29 = arith.constant 0 : index
    %35 = vector.load %arg6[%c0_28, %c0_29] : memref<64x64xf32, #tpu.memory_space<vmem>>, vector<32x64xf32>
    %cst_30 = arith.constant dense<0.000000e+00> : vector<16x64xf32>
    %36 = tpu.matmul %18, %35, %cst_30 {dimension_numbers = #tpu.dot_dimension_numbers<[1], [0], [0], [1], [0, 0, 1, 1], [], []>} : vector<16x32xf32>, vector<32x64xf32>, vector<16x64xf32> -> vector<16x64xf32>
    %37 = vector.shape_cast %34 : vector<16x32xf32> to vector<2x8x32xf32>
    %38 = vector.shape_cast %36 : vector<16x64xf32> to vector<2x8x64xf32>
    %39 = vector.extract_strided_slice %37 {offsets = [0, 0, 0], sizes = [2, 8, 8], strides = [1, 1, 1]} : vector<2x8x32xf32> to vector<2x8x8xf32>
    %40 = vector.extract_strided_slice %38 {offsets = [0, 0, 0], sizes = [2, 8, 8], strides = [1, 1, 1]} : vector<2x8x64xf32> to vector<2x8x8xf32>
    "tpu.trace_start"() <{level = 10 : i32, message = "bqd,bkd->bqk"}> : () -> ()
    %cst_31 = arith.constant dense<0.000000e+00> : vector<2x8x8xf32>
    %41 = tpu.matmul %39, %40, %cst_31 {dimension_numbers = #tpu.dot_dimension_numbers<[2], [2], [1], [1], [0, 0, 0, 1, 1, 1], [0], [0]>} : vector<2x8x8xf32>, vector<2x8x8xf32>, vector<2x8x8xf32> -> vector<2x8x8xf32>
    "tpu.trace_stop"() : () -> ()
    %42 = vector.extract_strided_slice %37 {offsets = [0, 0, 8], sizes = [2, 8, 8], strides = [1, 1, 1]} : vector<2x8x32xf32> to vector<2x8x8xf32>
    %43 = vector.extract_strided_slice %38 {offsets = [0, 0, 8], sizes = [2, 8, 8], strides = [1, 1, 1]} : vector<2x8x64xf32> to vector<2x8x8xf32>
    "tpu.trace_start"() <{level = 10 : i32, message = "bqd,bkd->bqk"}> : () -> ()
    %cst_32 = arith.constant dense<0.000000e+00> : vector<2x8x8xf32>
    %44 = tpu.matmul %42, %43, %cst_32 {dimension_numbers = #tpu.dot_dimension_numbers<[2], [2], [1], [1], [0, 0, 0, 1, 1, 1], [0], [0]>} : vector<2x8x8xf32>, vector<2x8x8xf32>, vector<2x8x8xf32> -> vector<2x8x8xf32>
    "tpu.trace_stop"() : () -> ()
    %45 = vector.extract_strided_slice %37 {offsets = [0, 0, 16], sizes = [2, 8, 8], strides = [1, 1, 1]} : vector<2x8x32xf32> to vector<2x8x8xf32>
    %46 = vector.extract_strided_slice %38 {offsets = [0, 0, 16], sizes = [2, 8, 8], strides = [1, 1, 1]} : vector<2x8x64xf32> to vector<2x8x8xf32>
    "tpu.trace_start"() <{level = 10 : i32, message = "bqd,bkd->bqk"}> : () -> ()
    %cst_33 = arith.constant dense<0.000000e+00> : vector<2x8x8xf32>
    %47 = tpu.matmul %45, %46, %cst_33 {dimension_numbers = #tpu.dot_dimension_numbers<[2], [2], [1], [1], [0, 0, 0, 1, 1, 1], [0], [0]>} : vector<2x8x8xf32>, vector<2x8x8xf32>, vector<2x8x8xf32> -> vector<2x8x8xf32>
    "tpu.trace_stop"() : () -> ()
    %48 = vector.extract_strided_slice %37 {offsets = [0, 0, 24], sizes = [2, 8, 8], strides = [1, 1, 1]} : vector<2x8x32xf32> to vector<2x8x8xf32>
    %49 = vector.extract_strided_slice %38 {offsets = [0, 0, 24], sizes = [2, 8, 8], strides = [1, 1, 1]} : vector<2x8x64xf32> to vector<2x8x8xf32>
    "tpu.trace_start"() <{level = 10 : i32, message = "bqd,bkd->bqk"}> : () -> ()
    %cst_34 = arith.constant dense<0.000000e+00> : vector<2x8x8xf32>
    %50 = tpu.matmul %48, %49, %cst_34 {dimension_numbers = #tpu.dot_dimension_numbers<[2], [2], [1], [1], [0, 0, 0, 1, 1, 1], [0], [0]>} : vector<2x8x8xf32>, vector<2x8x8xf32>, vector<2x8x8xf32> -> vector<2x8x8xf32>
    "tpu.trace_stop"() : () -> ()
    %51 = tpu.concatenate %41, %44, %47, %50 in 1 : vector<2x8x8xf32>, vector<2x8x8xf32>, vector<2x8x8xf32>, vector<2x8x8xf32> -> vector<2x32x8xf32>
    %cst_35 = arith.constant 0.353553385 : f32
    %52 = vector.broadcast %cst_35 : f32 to vector<2x32x8xf32>
    %53 = arith.mulf %51, %52 : vector<2x32x8xf32>
    %cst_36 = arith.constant dense<0xFF800000> : vector<2x32xf32>
    %54 = vector.multi_reduction <maximumf>, %53, %cst_36 [2] : vector<2x32x8xf32> to vector<2x32xf32>
    %55 = vector.shape_cast %54 : vector<2x32xf32> to vector<2x32x1xf32>
    %56 = vector.broadcast %55 : vector<2x32x1xf32> to vector<2x32x8xf32>
    %57 = arith.subf %53, %56 : vector<2x32x8xf32>
    %58 = math.exp %57 : vector<2x32x8xf32>
    %cst_37 = arith.constant dense<0.000000e+00> : vector<2x32xf32>
    %59 = vector.multi_reduction <add>, %58, %cst_37 [2] : vector<2x32x8xf32> to vector<2x32xf32>
    %60 = vector.shape_cast %59 : vector<2x32xf32> to vector<2x32x1xf32>
    %61 = tpu.reciprocal %60 {approx = true} : vector<2x32x1xf32> -> vector<2x32x1xf32>
    %62 = vector.broadcast %61 : vector<2x32x1xf32> to vector<2x32x8xf32>
    %63 = arith.mulf %58, %62 : vector<2x32x8xf32>
    %64 = vector.extract_strided_slice %63 {offsets = [0, 0, 0], sizes = [2, 8, 8], strides = [1, 1, 1]} : vector<2x32x8xf32> to vector<2x8x8xf32>
    %65 = vector.extract_strided_slice %38 {offsets = [0, 0, 32], sizes = [2, 8, 8], strides = [1, 1, 1]} : vector<2x8x64xf32> to vector<2x8x8xf32>
    "tpu.trace_start"() <{level = 10 : i32, message = "bqk,bkd->bqd"}> : () -> ()
    %cst_38 = arith.constant dense<0.000000e+00> : vector<2x8x8xf32>
    %66 = tpu.matmul %64, %65, %cst_38 {dimension_numbers = #tpu.dot_dimension_numbers<[2], [1], [1], [2], [0, 0, 0, 1, 1, 2], [0], [0]>} : vector<2x8x8xf32>, vector<2x8x8xf32>, vector<2x8x8xf32> -> vector<2x8x8xf32>
    "tpu.trace_stop"() : () -> ()
    %67 = vector.extract_strided_slice %63 {offsets = [0, 8, 0], sizes = [2, 8, 8], strides = [1, 1, 1]} : vector<2x32x8xf32> to vector<2x8x8xf32>
    %68 = vector.extract_strided_slice %38 {offsets = [0, 0, 40], sizes = [2, 8, 8], strides = [1, 1, 1]} : vector<2x8x64xf32> to vector<2x8x8xf32>
    "tpu.trace_start"() <{level = 10 : i32, message = "bqk,bkd->bqd"}> : () -> ()
    %cst_39 = arith.constant dense<0.000000e+00> : vector<2x8x8xf32>
    %69 = tpu.matmul %67, %68, %cst_39 {dimension_numbers = #tpu.dot_dimension_numbers<[2], [1], [1], [2], [0, 0, 0, 1, 1, 2], [0], [0]>} : vector<2x8x8xf32>, vector<2x8x8xf32>, vector<2x8x8xf32> -> vector<2x8x8xf32>
    "tpu.trace_stop"() : () -> ()
    %70 = vector.extract_strided_slice %63 {offsets = [0, 16, 0], sizes = [2, 8, 8], strides = [1, 1, 1]} : vector<2x32x8xf32> to vector<2x8x8xf32>
    %71 = vector.extract_strided_slice %38 {offsets = [0, 0, 48], sizes = [2, 8, 8], strides = [1, 1, 1]} : vector<2x8x64xf32> to vector<2x8x8xf32>
    "tpu.trace_start"() <{level = 10 : i32, message = "bqk,bkd->bqd"}> : () -> ()
    %cst_40 = arith.constant dense<0.000000e+00> : vector<2x8x8xf32>
    %72 = tpu.matmul %70, %71, %cst_40 {dimension_numbers = #tpu.dot_dimension_numbers<[2], [1], [1], [2], [0, 0, 0, 1, 1, 2], [0], [0]>} : vector<2x8x8xf32>, vector<2x8x8xf32>, vector<2x8x8xf32> -> vector<2x8x8xf32>
    "tpu.trace_stop"() : () -> ()
    %73 = vector.extract_strided_slice %63 {offsets = [0, 24, 0], sizes = [2, 8, 8], strides = [1, 1, 1]} : vector<2x32x8xf32> to vector<2x8x8xf32>
    %74 = vector.extract_strided_slice %38 {offsets = [0, 0, 56], sizes = [2, 8, 8], strides = [1, 1, 1]} : vector<2x8x64xf32> to vector<2x8x8xf32>
    "tpu.trace_start"() <{level = 10 : i32, message = "bqk,bkd->bqd"}> : () -> ()
    %cst_41 = arith.constant dense<0.000000e+00> : vector<2x8x8xf32>
    %75 = tpu.matmul %73, %74, %cst_41 {dimension_numbers = #tpu.dot_dimension_numbers<[2], [1], [1], [2], [0, 0, 0, 1, 1, 2], [0], [0]>} : vector<2x8x8xf32>, vector<2x8x8xf32>, vector<2x8x8xf32> -> vector<2x8x8xf32>
    "tpu.trace_stop"() : () -> ()
    %76 = tpu.concatenate %66, %69, %72, %75 in 2 : vector<2x8x8xf32>, vector<2x8x8xf32>, vector<2x8x8xf32>, vector<2x8x8xf32> -> vector<2x8x32xf32>
    %77 = vector.shape_cast %76 : vector<2x8x32xf32> to vector<16x32xf32>
    %c88 = arith.constant 88 : index
    %c0_42 = arith.constant 0 : index
    %78 = vector.load %arg4[%c88, %c0_42] : memref<312x32xf32, #tpu.memory_space<vmem>>, vector<32x32xf32>
    %cst_43 = arith.constant dense<0.000000e+00> : vector<16x32xf32>
    %79 = tpu.matmul %77, %78, %cst_43 {dimension_numbers = #tpu.dot_dimension_numbers<[1], [0], [0], [1], [0, 0, 1, 1], [], []>} : vector<16x32xf32>, vector<32x32xf32>, vector<16x32xf32> -> vector<16x32xf32>
    %c3 = arith.constant 3 : index
    %c0_44 = arith.constant 0 : index
    %80 = vector.load %arg8[%c3, %c0_44] : memref<21x32xf32, #tpu.memory_space<vmem>>, vector<1x32xf32>
    %81 = vector.broadcast %80 : vector<1x32xf32> to vector<16x32xf32>
    %82 = arith.addf %79, %81 : vector<16x32xf32>
    %83 = arith.addf %32, %82 : vector<16x32xf32>
    %c4 = arith.constant 4 : index
    %c0_45 = arith.constant 0 : index
    %84 = vector.load %arg8[%c4, %c0_45] : memref<21x32xf32, #tpu.memory_space<vmem>>, vector<1x32xf32>
    %c5 = arith.constant 5 : index
    %c0_46 = arith.constant 0 : index
    %85 = vector.load %arg8[%c5, %c0_46] : memref<21x32xf32, #tpu.memory_space<vmem>>, vector<1x32xf32>
    %cst_47 = arith.constant dense<0.000000e+00> : vector<16xf32>
    %86 = vector.multi_reduction <add>, %83, %cst_47 [1] : vector<16x32xf32> to vector<16xf32>
    %87 = vector.shape_cast %86 : vector<16xf32> to vector<16x1xf32>
    %cst_48 = arith.constant 3.200000e+01 : f32
    %88 = vector.broadcast %cst_48 : f32 to vector<16x1xf32>
    %89 = arith.divf %87, %88 : vector<16x1xf32>
    %90 = arith.mulf %83, %83 : vector<16x32xf32>
    %cst_49 = arith.constant dense<0.000000e+00> : vector<16xf32>
    %91 = vector.multi_reduction <add>, %90, %cst_49 [1] : vector<16x32xf32> to vector<16xf32>
    %92 = vector.shape_cast %91 : vector<16xf32> to vector<16x1xf32>
    %cst_50 = arith.constant 3.200000e+01 : f32
    %93 = vector.broadcast %cst_50 : f32 to vector<16x1xf32>
    %94 = arith.divf %92, %93 : vector<16x1xf32>
    %95 = arith.mulf %89, %89 : vector<16x1xf32>
    %96 = arith.subf %94, %95 : vector<16x1xf32>
    %cst_51 = arith.constant 0.000000e+00 : f32
    %97 = vector.broadcast %cst_51 : f32 to vector<16x1xf32>
    %98 = arith.maximumf %96, %97 : vector<16x1xf32>
    %99 = vector.broadcast %89 : vector<16x1xf32> to vector<16x32xf32>
    %100 = arith.subf %83, %99 : vector<16x32xf32>
    %cst_52 = arith.constant 9.99999974E-6 : f32
    %101 = vector.broadcast %cst_52 : f32 to vector<16x1xf32>
    %102 = arith.addf %98, %101 : vector<16x1xf32>
    %103 = math.rsqrt %102 : vector<16x1xf32>
    %104 = vector.broadcast %103 : vector<16x1xf32> to vector<16x32xf32>
    %105 = arith.mulf %100, %104 : vector<16x32xf32>
    %106 = vector.broadcast %84 : vector<1x32xf32> to vector<16x32xf32>
    %107 = arith.mulf %105, %106 : vector<16x32xf32>
    %108 = vector.broadcast %85 : vector<1x32xf32> to vector<16x32xf32>
    %109 = arith.addf %107, %108 : vector<16x32xf32>
    %c0_53 = arith.constant 0 : index
    %c0_54 = arith.constant 0 : index
    %110 = vector.load %arg5[%c0_53, %c0_54] : memref<96x32xf32, #tpu.memory_space<vmem>>, vector<32x32xf32>
    %cst_55 = arith.constant dense<0.000000e+00> : vector<16x32xf32>
    %111 = tpu.matmul %109, %110, %cst_55 {dimension_numbers = #tpu.dot_dimension_numbers<[1], [0], [0], [1], [0, 0, 1, 1], [], []>} : vector<16x32xf32>, vector<32x32xf32>, vector<16x32xf32> -> vector<16x32xf32>
    %c0_56 = arith.constant 0 : index
    %c0_57 = arith.constant 0 : index
    %112 = vector.load %arg9[%c0_56, %c0_57] : memref<3x32xf32, #tpu.memory_space<vmem>>, vector<1x32xf32>
    %113 = vector.broadcast %112 : vector<1x32xf32> to vector<16x32xf32>
    %114 = arith.addf %111, %113 : vector<16x32xf32>
    %cst_58 = arith.constant 0.000000e+00 : f32
    %115 = vector.broadcast %cst_58 : f32 to vector<16x32xf32>
    %116 = arith.maximumf %114, %115 : vector<16x32xf32>
    %c120 = arith.constant 120 : index
    %c0_59 = arith.constant 0 : index
    %117 = vector.load %arg4[%c120, %c0_59] : memref<312x32xf32, #tpu.memory_space<vmem>>, vector<32x32xf32>
    %cst_60 = arith.constant dense<0.000000e+00> : vector<16x32xf32>
    %118 = tpu.matmul %116, %117, %cst_60 {dimension_numbers = #tpu.dot_dimension_numbers<[1], [0], [0], [1], [0, 0, 1, 1], [], []>} : vector<16x32xf32>, vector<32x32xf32>, vector<16x32xf32> -> vector<16x32xf32>
    %c8_61 = arith.constant 8 : index
    %c0_62 = arith.constant 0 : index
    %119 = vector.load %arg8[%c8_61, %c0_62] : memref<21x32xf32, #tpu.memory_space<vmem>>, vector<1x32xf32>
    %120 = vector.broadcast %119 : vector<1x32xf32> to vector<16x32xf32>
    %121 = arith.addf %118, %120 : vector<16x32xf32>
    %122 = arith.addf %109, %121 : vector<16x32xf32>
    %c6 = arith.constant 6 : index
    %c0_63 = arith.constant 0 : index
    %123 = vector.load %arg8[%c6, %c0_63] : memref<21x32xf32, #tpu.memory_space<vmem>>, vector<1x32xf32>
    %c7 = arith.constant 7 : index
    %c0_64 = arith.constant 0 : index
    %124 = vector.load %arg8[%c7, %c0_64] : memref<21x32xf32, #tpu.memory_space<vmem>>, vector<1x32xf32>
    %cst_65 = arith.constant dense<0.000000e+00> : vector<16xf32>
    %125 = vector.multi_reduction <add>, %122, %cst_65 [1] : vector<16x32xf32> to vector<16xf32>
    %126 = vector.shape_cast %125 : vector<16xf32> to vector<16x1xf32>
    %cst_66 = arith.constant 3.200000e+01 : f32
    %127 = vector.broadcast %cst_66 : f32 to vector<16x1xf32>
    %128 = arith.divf %126, %127 : vector<16x1xf32>
    %129 = arith.mulf %122, %122 : vector<16x32xf32>
    %cst_67 = arith.constant dense<0.000000e+00> : vector<16xf32>
    %130 = vector.multi_reduction <add>, %129, %cst_67 [1] : vector<16x32xf32> to vector<16xf32>
    %131 = vector.shape_cast %130 : vector<16xf32> to vector<16x1xf32>
    %cst_68 = arith.constant 3.200000e+01 : f32
    %132 = vector.broadcast %cst_68 : f32 to vector<16x1xf32>
    %133 = arith.divf %131, %132 : vector<16x1xf32>
    %134 = arith.mulf %128, %128 : vector<16x1xf32>
    %135 = arith.subf %133, %134 : vector<16x1xf32>
    %cst_69 = arith.constant 0.000000e+00 : f32
    %136 = vector.broadcast %cst_69 : f32 to vector<16x1xf32>
    %137 = arith.maximumf %135, %136 : vector<16x1xf32>
    %138 = vector.broadcast %128 : vector<16x1xf32> to vector<16x32xf32>
    %139 = arith.subf %122, %138 : vector<16x32xf32>
    %cst_70 = arith.constant 9.99999974E-6 : f32
    %140 = vector.broadcast %cst_70 : f32 to vector<16x1xf32>
    %141 = arith.addf %137, %140 : vector<16x1xf32>
    %142 = math.rsqrt %141 : vector<16x1xf32>
    %143 = vector.broadcast %142 : vector<16x1xf32> to vector<16x32xf32>
    %144 = arith.mulf %139, %143 : vector<16x32xf32>
    %145 = vector.broadcast %123 : vector<1x32xf32> to vector<16x32xf32>
    %146 = arith.mulf %144, %145 : vector<16x32xf32>
    %147 = vector.broadcast %124 : vector<1x32xf32> to vector<16x32xf32>
    %148 = arith.addf %146, %147 : vector<16x32xf32>
    %c0_71 = arith.constant 0 : index
    %c0_72 = arith.constant 0 : index
    %149 = vector.load %arg7[%c0_71, %c0_72] : memref<32x96xf32, #tpu.memory_space<vmem>>, vector<32x96xf32>
    %cst_73 = arith.constant dense<0.000000e+00> : vector<16x96xf32>
    %150 = tpu.matmul %148, %149, %cst_73 {dimension_numbers = #tpu.dot_dimension_numbers<[1], [0], [0], [1], [0, 0, 1, 1], [], []>} : vector<16x32xf32>, vector<32x96xf32>, vector<16x96xf32> -> vector<16x96xf32>
    %151 = vector.extract_strided_slice %150 {offsets = [0, 0], sizes = [16, 32], strides = [1, 1]} : vector<16x96xf32> to vector<16x32xf32>
    %152 = vector.extract_strided_slice %150 {offsets = [0, 32], sizes = [16, 64], strides = [1, 1]} : vector<16x96xf32> to vector<16x64xf32>
    %153 = vector.shape_cast %151 : vector<16x32xf32> to vector<2x8x32xf32>
    %154 = vector.shape_cast %152 : vector<16x64xf32> to vector<2x8x64xf32>
    %155 = vector.extract_strided_slice %153 {offsets = [0, 0, 0], sizes = [2, 8, 8], strides = [1, 1, 1]} : vector<2x8x32xf32> to vector<2x8x8xf32>
    %156 = vector.extract_strided_slice %154 {offsets = [0, 0, 0], sizes = [2, 8, 8], strides = [1, 1, 1]} : vector<2x8x64xf32> to vector<2x8x8xf32>
    "tpu.trace_start"() <{level = 10 : i32, message = "bqd,bkd->bqk"}> : () -> ()
    %cst_74 = arith.constant dense<0.000000e+00> : vector<2x8x8xf32>
    %157 = tpu.matmul %155, %156, %cst_74 {dimension_numbers = #tpu.dot_dimension_numbers<[2], [2], [1], [1], [0, 0, 0, 1, 1, 1], [0], [0]>} : vector<2x8x8xf32>, vector<2x8x8xf32>, vector<2x8x8xf32> -> vector<2x8x8xf32>
    "tpu.trace_stop"() : () -> ()
    %158 = vector.extract_strided_slice %153 {offsets = [0, 0, 8], sizes = [2, 8, 8], strides = [1, 1, 1]} : vector<2x8x32xf32> to vector<2x8x8xf32>
    %159 = vector.extract_strided_slice %154 {offsets = [0, 0, 8], sizes = [2, 8, 8], strides = [1, 1, 1]} : vector<2x8x64xf32> to vector<2x8x8xf32>
    "tpu.trace_start"() <{level = 10 : i32, message = "bqd,bkd->bqk"}> : () -> ()
    %cst_75 = arith.constant dense<0.000000e+00> : vector<2x8x8xf32>
    %160 = tpu.matmul %158, %159, %cst_75 {dimension_numbers = #tpu.dot_dimension_numbers<[2], [2], [1], [1], [0, 0, 0, 1, 1, 1], [0], [0]>} : vector<2x8x8xf32>, vector<2x8x8xf32>, vector<2x8x8xf32> -> vector<2x8x8xf32>
    "tpu.trace_stop"() : () -> ()
    %161 = vector.extract_strided_slice %153 {offsets = [0, 0, 16], sizes = [2, 8, 8], strides = [1, 1, 1]} : vector<2x8x32xf32> to vector<2x8x8xf32>
    %162 = vector.extract_strided_slice %154 {offsets = [0, 0, 16], sizes = [2, 8, 8], strides = [1, 1, 1]} : vector<2x8x64xf32> to vector<2x8x8xf32>
    "tpu.trace_start"() <{level = 10 : i32, message = "bqd,bkd->bqk"}> : () -> ()
    %cst_76 = arith.constant dense<0.000000e+00> : vector<2x8x8xf32>
    %163 = tpu.matmul %161, %162, %cst_76 {dimension_numbers = #tpu.dot_dimension_numbers<[2], [2], [1], [1], [0, 0, 0, 1, 1, 1], [0], [0]>} : vector<2x8x8xf32>, vector<2x8x8xf32>, vector<2x8x8xf32> -> vector<2x8x8xf32>
    "tpu.trace_stop"() : () -> ()
    %164 = vector.extract_strided_slice %153 {offsets = [0, 0, 24], sizes = [2, 8, 8], strides = [1, 1, 1]} : vector<2x8x32xf32> to vector<2x8x8xf32>
    %165 = vector.extract_strided_slice %154 {offsets = [0, 0, 24], sizes = [2, 8, 8], strides = [1, 1, 1]} : vector<2x8x64xf32> to vector<2x8x8xf32>
    "tpu.trace_start"() <{level = 10 : i32, message = "bqd,bkd->bqk"}> : () -> ()
    %cst_77 = arith.constant dense<0.000000e+00> : vector<2x8x8xf32>
    %166 = tpu.matmul %164, %165, %cst_77 {dimension_numbers = #tpu.dot_dimension_numbers<[2], [2], [1], [1], [0, 0, 0, 1, 1, 1], [0], [0]>} : vector<2x8x8xf32>, vector<2x8x8xf32>, vector<2x8x8xf32> -> vector<2x8x8xf32>
    "tpu.trace_stop"() : () -> ()
    %167 = tpu.concatenate %157, %160, %163, %166 in 1 : vector<2x8x8xf32>, vector<2x8x8xf32>, vector<2x8x8xf32>, vector<2x8x8xf32> -> vector<2x32x8xf32>
    %cst_78 = arith.constant 0.353553385 : f32
    %168 = vector.broadcast %cst_78 : f32 to vector<2x32x8xf32>
    %169 = arith.mulf %167, %168 : vector<2x32x8xf32>
    %cst_79 = arith.constant dense<0xFF800000> : vector<2x32xf32>
    %170 = vector.multi_reduction <maximumf>, %169, %cst_79 [2] : vector<2x32x8xf32> to vector<2x32xf32>
    %171 = vector.shape_cast %170 : vector<2x32xf32> to vector<2x32x1xf32>
    %172 = vector.broadcast %171 : vector<2x32x1xf32> to vector<2x32x8xf32>
    %173 = arith.subf %169, %172 : vector<2x32x8xf32>
    %174 = math.exp %173 : vector<2x32x8xf32>
    %cst_80 = arith.constant dense<0.000000e+00> : vector<2x32xf32>
    %175 = vector.multi_reduction <add>, %174, %cst_80 [2] : vector<2x32x8xf32> to vector<2x32xf32>
    %176 = vector.shape_cast %175 : vector<2x32xf32> to vector<2x32x1xf32>
    %177 = tpu.reciprocal %176 {approx = true} : vector<2x32x1xf32> -> vector<2x32x1xf32>
    %178 = vector.broadcast %177 : vector<2x32x1xf32> to vector<2x32x8xf32>
    %179 = arith.mulf %174, %178 : vector<2x32x8xf32>
    %180 = vector.extract_strided_slice %179 {offsets = [0, 0, 0], sizes = [2, 8, 8], strides = [1, 1, 1]} : vector<2x32x8xf32> to vector<2x8x8xf32>
    %181 = vector.extract_strided_slice %154 {offsets = [0, 0, 32], sizes = [2, 8, 8], strides = [1, 1, 1]} : vector<2x8x64xf32> to vector<2x8x8xf32>
    "tpu.trace_start"() <{level = 10 : i32, message = "bqk,bkd->bqd"}> : () -> ()
    %cst_81 = arith.constant dense<0.000000e+00> : vector<2x8x8xf32>
    %182 = tpu.matmul %180, %181, %cst_81 {dimension_numbers = #tpu.dot_dimension_numbers<[2], [1], [1], [2], [0, 0, 0, 1, 1, 2], [0], [0]>} : vector<2x8x8xf32>, vector<2x8x8xf32>, vector<2x8x8xf32> -> vector<2x8x8xf32>
    "tpu.trace_stop"() : () -> ()
    %183 = vector.extract_strided_slice %179 {offsets = [0, 8, 0], sizes = [2, 8, 8], strides = [1, 1, 1]} : vector<2x32x8xf32> to vector<2x8x8xf32>
    %184 = vector.extract_strided_slice %154 {offsets = [0, 0, 40], sizes = [2, 8, 8], strides = [1, 1, 1]} : vector<2x8x64xf32> to vector<2x8x8xf32>
    "tpu.trace_start"() <{level = 10 : i32, message = "bqk,bkd->bqd"}> : () -> ()
    %cst_82 = arith.constant dense<0.000000e+00> : vector<2x8x8xf32>
    %185 = tpu.matmul %183, %184, %cst_82 {dimension_numbers = #tpu.dot_dimension_numbers<[2], [1], [1], [2], [0, 0, 0, 1, 1, 2], [0], [0]>} : vector<2x8x8xf32>, vector<2x8x8xf32>, vector<2x8x8xf32> -> vector<2x8x8xf32>
    "tpu.trace_stop"() : () -> ()
    %186 = vector.extract_strided_slice %179 {offsets = [0, 16, 0], sizes = [2, 8, 8], strides = [1, 1, 1]} : vector<2x32x8xf32> to vector<2x8x8xf32>
    %187 = vector.extract_strided_slice %154 {offsets = [0, 0, 48], sizes = [2, 8, 8], strides = [1, 1, 1]} : vector<2x8x64xf32> to vector<2x8x8xf32>
    "tpu.trace_start"() <{level = 10 : i32, message = "bqk,bkd->bqd"}> : () -> ()
    %cst_83 = arith.constant dense<0.000000e+00> : vector<2x8x8xf32>
    %188 = tpu.matmul %186, %187, %cst_83 {dimension_numbers = #tpu.dot_dimension_numbers<[2], [1], [1], [2], [0, 0, 0, 1, 1, 2], [0], [0]>} : vector<2x8x8xf32>, vector<2x8x8xf32>, vector<2x8x8xf32> -> vector<2x8x8xf32>
    "tpu.trace_stop"() : () -> ()
    %189 = vector.extract_strided_slice %179 {offsets = [0, 24, 0], sizes = [2, 8, 8], strides = [1, 1, 1]} : vector<2x32x8xf32> to vector<2x8x8xf32>
    %190 = vector.extract_strided_slice %154 {offsets = [0, 0, 56], sizes = [2, 8, 8], strides = [1, 1, 1]} : vector<2x8x64xf32> to vector<2x8x8xf32>
    "tpu.trace_start"() <{level = 10 : i32, message = "bqk,bkd->bqd"}> : () -> ()
    %cst_84 = arith.constant dense<0.000000e+00> : vector<2x8x8xf32>
    %191 = tpu.matmul %189, %190, %cst_84 {dimension_numbers = #tpu.dot_dimension_numbers<[2], [1], [1], [2], [0, 0, 0, 1, 1, 2], [0], [0]>} : vector<2x8x8xf32>, vector<2x8x8xf32>, vector<2x8x8xf32> -> vector<2x8x8xf32>
    "tpu.trace_stop"() : () -> ()
    %192 = tpu.concatenate %182, %185, %188, %191 in 2 : vector<2x8x8xf32>, vector<2x8x8xf32>, vector<2x8x8xf32>, vector<2x8x8xf32> -> vector<2x8x32xf32>
    %193 = vector.shape_cast %192 : vector<2x8x32xf32> to vector<16x32xf32>
    %c152 = arith.constant 152 : index
    %c0_85 = arith.constant 0 : index
    %194 = vector.load %arg4[%c152, %c0_85] : memref<312x32xf32, #tpu.memory_space<vmem>>, vector<32x32xf32>
    %cst_86 = arith.constant dense<0.000000e+00> : vector<16x32xf32>
    %195 = tpu.matmul %193, %194, %cst_86 {dimension_numbers = #tpu.dot_dimension_numbers<[1], [0], [0], [1], [0, 0, 1, 1], [], []>} : vector<16x32xf32>, vector<32x32xf32>, vector<16x32xf32> -> vector<16x32xf32>
    %c9 = arith.constant 9 : index
    %c0_87 = arith.constant 0 : index
    %196 = vector.load %arg8[%c9, %c0_87] : memref<21x32xf32, #tpu.memory_space<vmem>>, vector<1x32xf32>
    %197 = vector.broadcast %196 : vector<1x32xf32> to vector<16x32xf32>
    %198 = arith.addf %195, %197 : vector<16x32xf32>
    %199 = arith.addf %148, %198 : vector<16x32xf32>
    %c10 = arith.constant 10 : index
    %c0_88 = arith.constant 0 : index
    %200 = vector.load %arg8[%c10, %c0_88] : memref<21x32xf32, #tpu.memory_space<vmem>>, vector<1x32xf32>
    %c11 = arith.constant 11 : index
    %c0_89 = arith.constant 0 : index
    %201 = vector.load %arg8[%c11, %c0_89] : memref<21x32xf32, #tpu.memory_space<vmem>>, vector<1x32xf32>
    %cst_90 = arith.constant dense<0.000000e+00> : vector<16xf32>
    %202 = vector.multi_reduction <add>, %199, %cst_90 [1] : vector<16x32xf32> to vector<16xf32>
    %203 = vector.shape_cast %202 : vector<16xf32> to vector<16x1xf32>
    %cst_91 = arith.constant 3.200000e+01 : f32
    %204 = vector.broadcast %cst_91 : f32 to vector<16x1xf32>
    %205 = arith.divf %203, %204 : vector<16x1xf32>
    %206 = arith.mulf %199, %199 : vector<16x32xf32>
    %cst_92 = arith.constant dense<0.000000e+00> : vector<16xf32>
    %207 = vector.multi_reduction <add>, %206, %cst_92 [1] : vector<16x32xf32> to vector<16xf32>
    %208 = vector.shape_cast %207 : vector<16xf32> to vector<16x1xf32>
    %cst_93 = arith.constant 3.200000e+01 : f32
    %209 = vector.broadcast %cst_93 : f32 to vector<16x1xf32>
    %210 = arith.divf %208, %209 : vector<16x1xf32>
    %211 = arith.mulf %205, %205 : vector<16x1xf32>
    %212 = arith.subf %210, %211 : vector<16x1xf32>
    %cst_94 = arith.constant 0.000000e+00 : f32
    %213 = vector.broadcast %cst_94 : f32 to vector<16x1xf32>
    %214 = arith.maximumf %212, %213 : vector<16x1xf32>
    %215 = vector.broadcast %205 : vector<16x1xf32> to vector<16x32xf32>
    %216 = arith.subf %199, %215 : vector<16x32xf32>
    %cst_95 = arith.constant 9.99999974E-6 : f32
    %217 = vector.broadcast %cst_95 : f32 to vector<16x1xf32>
    %218 = arith.addf %214, %217 : vector<16x1xf32>
    %219 = math.rsqrt %218 : vector<16x1xf32>
    %220 = vector.broadcast %219 : vector<16x1xf32> to vector<16x32xf32>
    %221 = arith.mulf %216, %220 : vector<16x32xf32>
    %222 = vector.broadcast %200 : vector<1x32xf32> to vector<16x32xf32>
    %223 = arith.mulf %221, %222 : vector<16x32xf32>
    %224 = vector.broadcast %201 : vector<1x32xf32> to vector<16x32xf32>
    %225 = arith.addf %223, %224 : vector<16x32xf32>
    %c32 = arith.constant 32 : index
    %c0_96 = arith.constant 0 : index
    %226 = vector.load %arg5[%c32, %c0_96] : memref<96x32xf32, #tpu.memory_space<vmem>>, vector<32x32xf32>
    %cst_97 = arith.constant dense<0.000000e+00> : vector<16x32xf32>
    %227 = tpu.matmul %225, %226, %cst_97 {dimension_numbers = #tpu.dot_dimension_numbers<[1], [0], [0], [1], [0, 0, 1, 1], [], []>} : vector<16x32xf32>, vector<32x32xf32>, vector<16x32xf32> -> vector<16x32xf32>
    %c1_98 = arith.constant 1 : index
    %c0_99 = arith.constant 0 : index
    %228 = vector.load %arg9[%c1_98, %c0_99] : memref<3x32xf32, #tpu.memory_space<vmem>>, vector<1x32xf32>
    %229 = vector.broadcast %228 : vector<1x32xf32> to vector<16x32xf32>
    %230 = arith.addf %227, %229 : vector<16x32xf32>
    %cst_100 = arith.constant 0.000000e+00 : f32
    %231 = vector.broadcast %cst_100 : f32 to vector<16x32xf32>
    %232 = arith.maximumf %230, %231 : vector<16x32xf32>
    %c184 = arith.constant 184 : index
    %c0_101 = arith.constant 0 : index
    %233 = vector.load %arg4[%c184, %c0_101] : memref<312x32xf32, #tpu.memory_space<vmem>>, vector<32x32xf32>
    %cst_102 = arith.constant dense<0.000000e+00> : vector<16x32xf32>
    %234 = tpu.matmul %232, %233, %cst_102 {dimension_numbers = #tpu.dot_dimension_numbers<[1], [0], [0], [1], [0, 0, 1, 1], [], []>} : vector<16x32xf32>, vector<32x32xf32>, vector<16x32xf32> -> vector<16x32xf32>
    %c14 = arith.constant 14 : index
    %c0_103 = arith.constant 0 : index
    %235 = vector.load %arg8[%c14, %c0_103] : memref<21x32xf32, #tpu.memory_space<vmem>>, vector<1x32xf32>
    %236 = vector.broadcast %235 : vector<1x32xf32> to vector<16x32xf32>
    %237 = arith.addf %234, %236 : vector<16x32xf32>
    %238 = arith.addf %225, %237 : vector<16x32xf32>
    %c12 = arith.constant 12 : index
    %c0_104 = arith.constant 0 : index
    %239 = vector.load %arg8[%c12, %c0_104] : memref<21x32xf32, #tpu.memory_space<vmem>>, vector<1x32xf32>
    %c13 = arith.constant 13 : index
    %c0_105 = arith.constant 0 : index
    %240 = vector.load %arg8[%c13, %c0_105] : memref<21x32xf32, #tpu.memory_space<vmem>>, vector<1x32xf32>
    %cst_106 = arith.constant dense<0.000000e+00> : vector<16xf32>
    %241 = vector.multi_reduction <add>, %238, %cst_106 [1] : vector<16x32xf32> to vector<16xf32>
    %242 = vector.shape_cast %241 : vector<16xf32> to vector<16x1xf32>
    %cst_107 = arith.constant 3.200000e+01 : f32
    %243 = vector.broadcast %cst_107 : f32 to vector<16x1xf32>
    %244 = arith.divf %242, %243 : vector<16x1xf32>
    %245 = arith.mulf %238, %238 : vector<16x32xf32>
    %cst_108 = arith.constant dense<0.000000e+00> : vector<16xf32>
    %246 = vector.multi_reduction <add>, %245, %cst_108 [1] : vector<16x32xf32> to vector<16xf32>
    %247 = vector.shape_cast %246 : vector<16xf32> to vector<16x1xf32>
    %cst_109 = arith.constant 3.200000e+01 : f32
    %248 = vector.broadcast %cst_109 : f32 to vector<16x1xf32>
    %249 = arith.divf %247, %248 : vector<16x1xf32>
    %250 = arith.mulf %244, %244 : vector<16x1xf32>
    %251 = arith.subf %249, %250 : vector<16x1xf32>
    %cst_110 = arith.constant 0.000000e+00 : f32
    %252 = vector.broadcast %cst_110 : f32 to vector<16x1xf32>
    %253 = arith.maximumf %251, %252 : vector<16x1xf32>
    %254 = vector.broadcast %244 : vector<16x1xf32> to vector<16x32xf32>
    %255 = arith.subf %238, %254 : vector<16x32xf32>
    %cst_111 = arith.constant 9.99999974E-6 : f32
    %256 = vector.broadcast %cst_111 : f32 to vector<16x1xf32>
    %257 = arith.addf %253, %256 : vector<16x1xf32>
    %258 = math.rsqrt %257 : vector<16x1xf32>
    %259 = vector.broadcast %258 : vector<16x1xf32> to vector<16x32xf32>
    %260 = arith.mulf %255, %259 : vector<16x32xf32>
    %261 = vector.broadcast %239 : vector<1x32xf32> to vector<16x32xf32>
    %262 = arith.mulf %260, %261 : vector<16x32xf32>
    %263 = vector.broadcast %240 : vector<1x32xf32> to vector<16x32xf32>
    %264 = arith.addf %262, %263 : vector<16x32xf32>
    %c216 = arith.constant 216 : index
    %c0_112 = arith.constant 0 : index
    %265 = vector.load %arg4[%c216, %c0_112] : memref<312x32xf32, #tpu.memory_space<vmem>>, vector<32x32xf32>
    %cst_113 = arith.constant dense<0.000000e+00> : vector<16x32xf32>
    %266 = tpu.matmul %30, %265, %cst_113 {dimension_numbers = #tpu.dot_dimension_numbers<[1], [0], [0], [1], [0, 0, 1, 1], [], []>} : vector<16x32xf32>, vector<32x32xf32>, vector<16x32xf32> -> vector<16x32xf32>
    %c32_114 = arith.constant 32 : index
    %c0_115 = arith.constant 0 : index
    %267 = vector.load %arg6[%c32_114, %c0_115] : memref<64x64xf32, #tpu.memory_space<vmem>>, vector<32x64xf32>
    %cst_116 = arith.constant dense<0.000000e+00> : vector<16x64xf32>
    %268 = tpu.matmul %264, %267, %cst_116 {dimension_numbers = #tpu.dot_dimension_numbers<[1], [0], [0], [1], [0, 0, 1, 1], [], []>} : vector<16x32xf32>, vector<32x64xf32>, vector<16x64xf32> -> vector<16x64xf32>
    %269 = vector.shape_cast %266 : vector<16x32xf32> to vector<2x8x32xf32>
    %270 = vector.shape_cast %268 : vector<16x64xf32> to vector<2x8x64xf32>
    %271 = vector.extract_strided_slice %269 {offsets = [0, 0, 0], sizes = [2, 8, 8], strides = [1, 1, 1]} : vector<2x8x32xf32> to vector<2x8x8xf32>
    %272 = vector.extract_strided_slice %270 {offsets = [0, 0, 0], sizes = [2, 8, 8], strides = [1, 1, 1]} : vector<2x8x64xf32> to vector<2x8x8xf32>
    "tpu.trace_start"() <{level = 10 : i32, message = "bqd,bkd->bqk"}> : () -> ()
    %cst_117 = arith.constant dense<0.000000e+00> : vector<2x8x8xf32>
    %273 = tpu.matmul %271, %272, %cst_117 {dimension_numbers = #tpu.dot_dimension_numbers<[2], [2], [1], [1], [0, 0, 0, 1, 1, 1], [0], [0]>} : vector<2x8x8xf32>, vector<2x8x8xf32>, vector<2x8x8xf32> -> vector<2x8x8xf32>
    "tpu.trace_stop"() : () -> ()
    %274 = vector.extract_strided_slice %269 {offsets = [0, 0, 8], sizes = [2, 8, 8], strides = [1, 1, 1]} : vector<2x8x32xf32> to vector<2x8x8xf32>
    %275 = vector.extract_strided_slice %270 {offsets = [0, 0, 8], sizes = [2, 8, 8], strides = [1, 1, 1]} : vector<2x8x64xf32> to vector<2x8x8xf32>
    "tpu.trace_start"() <{level = 10 : i32, message = "bqd,bkd->bqk"}> : () -> ()
    %cst_118 = arith.constant dense<0.000000e+00> : vector<2x8x8xf32>
    %276 = tpu.matmul %274, %275, %cst_118 {dimension_numbers = #tpu.dot_dimension_numbers<[2], [2], [1], [1], [0, 0, 0, 1, 1, 1], [0], [0]>} : vector<2x8x8xf32>, vector<2x8x8xf32>, vector<2x8x8xf32> -> vector<2x8x8xf32>
    "tpu.trace_stop"() : () -> ()
    %277 = vector.extract_strided_slice %269 {offsets = [0, 0, 16], sizes = [2, 8, 8], strides = [1, 1, 1]} : vector<2x8x32xf32> to vector<2x8x8xf32>
    %278 = vector.extract_strided_slice %270 {offsets = [0, 0, 16], sizes = [2, 8, 8], strides = [1, 1, 1]} : vector<2x8x64xf32> to vector<2x8x8xf32>
    "tpu.trace_start"() <{level = 10 : i32, message = "bqd,bkd->bqk"}> : () -> ()
    %cst_119 = arith.constant dense<0.000000e+00> : vector<2x8x8xf32>
    %279 = tpu.matmul %277, %278, %cst_119 {dimension_numbers = #tpu.dot_dimension_numbers<[2], [2], [1], [1], [0, 0, 0, 1, 1, 1], [0], [0]>} : vector<2x8x8xf32>, vector<2x8x8xf32>, vector<2x8x8xf32> -> vector<2x8x8xf32>
    "tpu.trace_stop"() : () -> ()
    %280 = vector.extract_strided_slice %269 {offsets = [0, 0, 24], sizes = [2, 8, 8], strides = [1, 1, 1]} : vector<2x8x32xf32> to vector<2x8x8xf32>
    %281 = vector.extract_strided_slice %270 {offsets = [0, 0, 24], sizes = [2, 8, 8], strides = [1, 1, 1]} : vector<2x8x64xf32> to vector<2x8x8xf32>
    "tpu.trace_start"() <{level = 10 : i32, message = "bqd,bkd->bqk"}> : () -> ()
    %cst_120 = arith.constant dense<0.000000e+00> : vector<2x8x8xf32>
    %282 = tpu.matmul %280, %281, %cst_120 {dimension_numbers = #tpu.dot_dimension_numbers<[2], [2], [1], [1], [0, 0, 0, 1, 1, 1], [0], [0]>} : vector<2x8x8xf32>, vector<2x8x8xf32>, vector<2x8x8xf32> -> vector<2x8x8xf32>
    "tpu.trace_stop"() : () -> ()
    %283 = tpu.concatenate %273, %276, %279, %282 in 1 : vector<2x8x8xf32>, vector<2x8x8xf32>, vector<2x8x8xf32>, vector<2x8x8xf32> -> vector<2x32x8xf32>
    %cst_121 = arith.constant 0.353553385 : f32
    %284 = vector.broadcast %cst_121 : f32 to vector<2x32x8xf32>
    %285 = arith.mulf %283, %284 : vector<2x32x8xf32>
    %cst_122 = arith.constant dense<0xFF800000> : vector<2x32xf32>
    %286 = vector.multi_reduction <maximumf>, %285, %cst_122 [2] : vector<2x32x8xf32> to vector<2x32xf32>
    %287 = vector.shape_cast %286 : vector<2x32xf32> to vector<2x32x1xf32>
    %288 = vector.broadcast %287 : vector<2x32x1xf32> to vector<2x32x8xf32>
    %289 = arith.subf %285, %288 : vector<2x32x8xf32>
    %290 = math.exp %289 : vector<2x32x8xf32>
    %cst_123 = arith.constant dense<0.000000e+00> : vector<2x32xf32>
    %291 = vector.multi_reduction <add>, %290, %cst_123 [2] : vector<2x32x8xf32> to vector<2x32xf32>
    %292 = vector.shape_cast %291 : vector<2x32xf32> to vector<2x32x1xf32>
    %293 = tpu.reciprocal %292 {approx = true} : vector<2x32x1xf32> -> vector<2x32x1xf32>
    %294 = vector.broadcast %293 : vector<2x32x1xf32> to vector<2x32x8xf32>
    %295 = arith.mulf %290, %294 : vector<2x32x8xf32>
    %296 = vector.extract_strided_slice %295 {offsets = [0, 0, 0], sizes = [2, 8, 8], strides = [1, 1, 1]} : vector<2x32x8xf32> to vector<2x8x8xf32>
    %297 = vector.extract_strided_slice %270 {offsets = [0, 0, 32], sizes = [2, 8, 8], strides = [1, 1, 1]} : vector<2x8x64xf32> to vector<2x8x8xf32>
    "tpu.trace_start"() <{level = 10 : i32, message = "bqk,bkd->bqd"}> : () -> ()
    %cst_124 = arith.constant dense<0.000000e+00> : vector<2x8x8xf32>
    %298 = tpu.matmul %296, %297, %cst_124 {dimension_numbers = #tpu.dot_dimension_numbers<[2], [1], [1], [2], [0, 0, 0, 1, 1, 2], [0], [0]>} : vector<2x8x8xf32>, vector<2x8x8xf32>, vector<2x8x8xf32> -> vector<2x8x8xf32>
    "tpu.trace_stop"() : () -> ()
    %299 = vector.extract_strided_slice %295 {offsets = [0, 8, 0], sizes = [2, 8, 8], strides = [1, 1, 1]} : vector<2x32x8xf32> to vector<2x8x8xf32>
    %300 = vector.extract_strided_slice %270 {offsets = [0, 0, 40], sizes = [2, 8, 8], strides = [1, 1, 1]} : vector<2x8x64xf32> to vector<2x8x8xf32>
    "tpu.trace_start"() <{level = 10 : i32, message = "bqk,bkd->bqd"}> : () -> ()
    %cst_125 = arith.constant dense<0.000000e+00> : vector<2x8x8xf32>
    %301 = tpu.matmul %299, %300, %cst_125 {dimension_numbers = #tpu.dot_dimension_numbers<[2], [1], [1], [2], [0, 0, 0, 1, 1, 2], [0], [0]>} : vector<2x8x8xf32>, vector<2x8x8xf32>, vector<2x8x8xf32> -> vector<2x8x8xf32>
    "tpu.trace_stop"() : () -> ()
    %302 = vector.extract_strided_slice %295 {offsets = [0, 16, 0], sizes = [2, 8, 8], strides = [1, 1, 1]} : vector<2x32x8xf32> to vector<2x8x8xf32>
    %303 = vector.extract_strided_slice %270 {offsets = [0, 0, 48], sizes = [2, 8, 8], strides = [1, 1, 1]} : vector<2x8x64xf32> to vector<2x8x8xf32>
    "tpu.trace_start"() <{level = 10 : i32, message = "bqk,bkd->bqd"}> : () -> ()
    %cst_126 = arith.constant dense<0.000000e+00> : vector<2x8x8xf32>
    %304 = tpu.matmul %302, %303, %cst_126 {dimension_numbers = #tpu.dot_dimension_numbers<[2], [1], [1], [2], [0, 0, 0, 1, 1, 2], [0], [0]>} : vector<2x8x8xf32>, vector<2x8x8xf32>, vector<2x8x8xf32> -> vector<2x8x8xf32>
    "tpu.trace_stop"() : () -> ()
    %305 = vector.extract_strided_slice %295 {offsets = [0, 24, 0], sizes = [2, 8, 8], strides = [1, 1, 1]} : vector<2x32x8xf32> to vector<2x8x8xf32>
    %306 = vector.extract_strided_slice %270 {offsets = [0, 0, 56], sizes = [2, 8, 8], strides = [1, 1, 1]} : vector<2x8x64xf32> to vector<2x8x8xf32>
    "tpu.trace_start"() <{level = 10 : i32, message = "bqk,bkd->bqd"}> : () -> ()
    %cst_127 = arith.constant dense<0.000000e+00> : vector<2x8x8xf32>
    %307 = tpu.matmul %305, %306, %cst_127 {dimension_numbers = #tpu.dot_dimension_numbers<[2], [1], [1], [2], [0, 0, 0, 1, 1, 2], [0], [0]>} : vector<2x8x8xf32>, vector<2x8x8xf32>, vector<2x8x8xf32> -> vector<2x8x8xf32>
    "tpu.trace_stop"() : () -> ()
    %308 = tpu.concatenate %298, %301, %304, %307 in 2 : vector<2x8x8xf32>, vector<2x8x8xf32>, vector<2x8x8xf32>, vector<2x8x8xf32> -> vector<2x8x32xf32>
    %309 = vector.shape_cast %308 : vector<2x8x32xf32> to vector<16x32xf32>
    %c248 = arith.constant 248 : index
    %c0_128 = arith.constant 0 : index
    %310 = vector.load %arg4[%c248, %c0_128] : memref<312x32xf32, #tpu.memory_space<vmem>>, vector<32x32xf32>
    %cst_129 = arith.constant dense<0.000000e+00> : vector<16x32xf32>
    %311 = tpu.matmul %309, %310, %cst_129 {dimension_numbers = #tpu.dot_dimension_numbers<[1], [0], [0], [1], [0, 0, 1, 1], [], []>} : vector<16x32xf32>, vector<32x32xf32>, vector<16x32xf32> -> vector<16x32xf32>
    %c15 = arith.constant 15 : index
    %c0_130 = arith.constant 0 : index
    %312 = vector.load %arg8[%c15, %c0_130] : memref<21x32xf32, #tpu.memory_space<vmem>>, vector<1x32xf32>
    %313 = vector.broadcast %312 : vector<1x32xf32> to vector<16x32xf32>
    %314 = arith.addf %311, %313 : vector<16x32xf32>
    %315 = arith.addf %30, %314 : vector<16x32xf32>
    %c16_131 = arith.constant 16 : index
    %c0_132 = arith.constant 0 : index
    %316 = vector.load %arg8[%c16_131, %c0_132] : memref<21x32xf32, #tpu.memory_space<vmem>>, vector<1x32xf32>
    %c17 = arith.constant 17 : index
    %c0_133 = arith.constant 0 : index
    %317 = vector.load %arg8[%c17, %c0_133] : memref<21x32xf32, #tpu.memory_space<vmem>>, vector<1x32xf32>
    %cst_134 = arith.constant dense<0.000000e+00> : vector<16xf32>
    %318 = vector.multi_reduction <add>, %315, %cst_134 [1] : vector<16x32xf32> to vector<16xf32>
    %319 = vector.shape_cast %318 : vector<16xf32> to vector<16x1xf32>
    %cst_135 = arith.constant 3.200000e+01 : f32
    %320 = vector.broadcast %cst_135 : f32 to vector<16x1xf32>
    %321 = arith.divf %319, %320 : vector<16x1xf32>
    %322 = arith.mulf %315, %315 : vector<16x32xf32>
    %cst_136 = arith.constant dense<0.000000e+00> : vector<16xf32>
    %323 = vector.multi_reduction <add>, %322, %cst_136 [1] : vector<16x32xf32> to vector<16xf32>
    %324 = vector.shape_cast %323 : vector<16xf32> to vector<16x1xf32>
    %cst_137 = arith.constant 3.200000e+01 : f32
    %325 = vector.broadcast %cst_137 : f32 to vector<16x1xf32>
    %326 = arith.divf %324, %325 : vector<16x1xf32>
    %327 = arith.mulf %321, %321 : vector<16x1xf32>
    %328 = arith.subf %326, %327 : vector<16x1xf32>
    %cst_138 = arith.constant 0.000000e+00 : f32
    %329 = vector.broadcast %cst_138 : f32 to vector<16x1xf32>
    %330 = arith.maximumf %328, %329 : vector<16x1xf32>
    %331 = vector.broadcast %321 : vector<16x1xf32> to vector<16x32xf32>
    %332 = arith.subf %315, %331 : vector<16x32xf32>
    %cst_139 = arith.constant 9.99999974E-6 : f32
    %333 = vector.broadcast %cst_139 : f32 to vector<16x1xf32>
    %334 = arith.addf %330, %333 : vector<16x1xf32>
    %335 = math.rsqrt %334 : vector<16x1xf32>
    %336 = vector.broadcast %335 : vector<16x1xf32> to vector<16x32xf32>
    %337 = arith.mulf %332, %336 : vector<16x32xf32>
    %338 = vector.broadcast %316 : vector<1x32xf32> to vector<16x32xf32>
    %339 = arith.mulf %337, %338 : vector<16x32xf32>
    %340 = vector.broadcast %317 : vector<1x32xf32> to vector<16x32xf32>
    %341 = arith.addf %339, %340 : vector<16x32xf32>
    %c64 = arith.constant 64 : index
    %c0_140 = arith.constant 0 : index
    %342 = vector.load %arg5[%c64, %c0_140] : memref<96x32xf32, #tpu.memory_space<vmem>>, vector<32x32xf32>
    %cst_141 = arith.constant dense<0.000000e+00> : vector<16x32xf32>
    %343 = tpu.matmul %341, %342, %cst_141 {dimension_numbers = #tpu.dot_dimension_numbers<[1], [0], [0], [1], [0, 0, 1, 1], [], []>} : vector<16x32xf32>, vector<32x32xf32>, vector<16x32xf32> -> vector<16x32xf32>
    %c2_142 = arith.constant 2 : index
    %c0_143 = arith.constant 0 : index
    %344 = vector.load %arg9[%c2_142, %c0_143] : memref<3x32xf32, #tpu.memory_space<vmem>>, vector<1x32xf32>
    %345 = vector.broadcast %344 : vector<1x32xf32> to vector<16x32xf32>
    %346 = arith.addf %343, %345 : vector<16x32xf32>
    %cst_144 = arith.constant 0.000000e+00 : f32
    %347 = vector.broadcast %cst_144 : f32 to vector<16x32xf32>
    %348 = arith.maximumf %346, %347 : vector<16x32xf32>
    %c280 = arith.constant 280 : index
    %c0_145 = arith.constant 0 : index
    %349 = vector.load %arg4[%c280, %c0_145] : memref<312x32xf32, #tpu.memory_space<vmem>>, vector<32x32xf32>
    %cst_146 = arith.constant dense<0.000000e+00> : vector<16x32xf32>
    %350 = tpu.matmul %348, %349, %cst_146 {dimension_numbers = #tpu.dot_dimension_numbers<[1], [0], [0], [1], [0, 0, 1, 1], [], []>} : vector<16x32xf32>, vector<32x32xf32>, vector<16x32xf32> -> vector<16x32xf32>
    %c20 = arith.constant 20 : index
    %c0_147 = arith.constant 0 : index
    %351 = vector.load %arg8[%c20, %c0_147] : memref<21x32xf32, #tpu.memory_space<vmem>>, vector<1x32xf32>
    %352 = vector.broadcast %351 : vector<1x32xf32> to vector<16x32xf32>
    %353 = arith.addf %350, %352 : vector<16x32xf32>
    %354 = arith.addf %341, %353 : vector<16x32xf32>
    %c18 = arith.constant 18 : index
    %c0_148 = arith.constant 0 : index
    %355 = vector.load %arg8[%c18, %c0_148] : memref<21x32xf32, #tpu.memory_space<vmem>>, vector<1x32xf32>
    %c19 = arith.constant 19 : index
    %c0_149 = arith.constant 0 : index
    %356 = vector.load %arg8[%c19, %c0_149] : memref<21x32xf32, #tpu.memory_space<vmem>>, vector<1x32xf32>
    %cst_150 = arith.constant dense<0.000000e+00> : vector<16xf32>
    %357 = vector.multi_reduction <add>, %354, %cst_150 [1] : vector<16x32xf32> to vector<16xf32>
    %358 = vector.shape_cast %357 : vector<16xf32> to vector<16x1xf32>
    %cst_151 = arith.constant 3.200000e+01 : f32
    %359 = vector.broadcast %cst_151 : f32 to vector<16x1xf32>
    %360 = arith.divf %358, %359 : vector<16x1xf32>
    %361 = arith.mulf %354, %354 : vector<16x32xf32>
    %cst_152 = arith.constant dense<0.000000e+00> : vector<16xf32>
    %362 = vector.multi_reduction <add>, %361, %cst_152 [1] : vector<16x32xf32> to vector<16xf32>
    %363 = vector.shape_cast %362 : vector<16xf32> to vector<16x1xf32>
    %cst_153 = arith.constant 3.200000e+01 : f32
    %364 = vector.broadcast %cst_153 : f32 to vector<16x1xf32>
    %365 = arith.divf %363, %364 : vector<16x1xf32>
    %366 = arith.mulf %360, %360 : vector<16x1xf32>
    %367 = arith.subf %365, %366 : vector<16x1xf32>
    %cst_154 = arith.constant 0.000000e+00 : f32
    %368 = vector.broadcast %cst_154 : f32 to vector<16x1xf32>
    %369 = arith.maximumf %367, %368 : vector<16x1xf32>
    %370 = vector.broadcast %360 : vector<16x1xf32> to vector<16x32xf32>
    %371 = arith.subf %354, %370 : vector<16x32xf32>
    %cst_155 = arith.constant 9.99999974E-6 : f32
    %372 = vector.broadcast %cst_155 : f32 to vector<16x1xf32>
    %373 = arith.addf %369, %372 : vector<16x1xf32>
    %374 = math.rsqrt %373 : vector<16x1xf32>
    %375 = vector.broadcast %374 : vector<16x1xf32> to vector<16x32xf32>
    %376 = arith.mulf %371, %375 : vector<16x32xf32>
    %377 = vector.broadcast %355 : vector<1x32xf32> to vector<16x32xf32>
    %378 = arith.mulf %376, %377 : vector<16x32xf32>
    %379 = vector.broadcast %356 : vector<1x32xf32> to vector<16x32xf32>
    %380 = arith.addf %378, %379 : vector<16x32xf32>
    %381 = vector.shape_cast %380 : vector<16x32xf32> to vector<2x8x32xf32>
    %c0_156 = arith.constant 0 : index
    %c0_157 = arith.constant 0 : index
    %c0_158 = arith.constant 0 : index
    %382 = vector.load %arg10[%c0_156, %c0_157, %c0_158] : memref<2x8x32xf32, #tpu.memory_space<vmem>>, vector<2x8x32xf32>
    tpu.vector_store %arg10[%c0_156, %c0_157, %c0_158], %381 {strides = array<i32>} : memref<2x8x32xf32, #tpu.memory_space<vmem>>, vector<2x8x32xf32>,
    return
  }
  func.func @transform_0(%arg0: i32) -> (i32, i32, i32) {
    %c0_i32 = arith.constant 0 : i32
    %c0_i32_0 = arith.constant 0 : i32
    %c0_i32_1 = arith.constant 0 : i32
    return %arg0, %c0_i32, %c0_i32_0 : i32, i32, i32
  }
  func.func @transform_1(%arg0: i32) -> (i32, i32, i32) {
    %c0_i32 = arith.constant 0 : i32
    %c0_i32_0 = arith.constant 0 : i32
    %c0_i32_1 = arith.constant 0 : i32
    return %arg0, %c0_i32, %c0_i32_0 : i32, i32, i32
  }
  func.func @transform_2(%arg0: i32) -> (i32, i32, i32) {
    %c0_i32 = arith.constant 0 : i32
    %c0_i32_0 = arith.constant 0 : i32
    %c0_i32_1 = arith.constant 0 : i32
    return %arg0, %c0_i32, %c0_i32_0 : i32, i32, i32
  }
  func.func @transform_3(%arg0: i32) -> (i32, i32) {
    %c0_i32 = arith.constant 0 : i32
    %c0_i32_0 = arith.constant 0 : i32
    %c0_i32_1 = arith.constant 0 : i32
    return %c0_i32, %c0_i32_0 : i32, i32
  }
  func.func @transform_4(%arg0: i32) -> (i32, i32) {
    %c0_i32 = arith.constant 0 : i32
    %c0_i32_0 = arith.constant 0 : i32
    %c0_i32_1 = arith.constant 0 : i32
    return %c0_i32, %c0_i32_0 : i32, i32
  }
  func.func @transform_5(%arg0: i32) -> (i32, i32) {
    %c0_i32 = arith.constant 0 : i32
    %c0_i32_0 = arith.constant 0 : i32
    %c0_i32_1 = arith.constant 0 : i32
    return %c0_i32, %c0_i32_0 : i32, i32
  }
  func.func @transform_6(%arg0: i32) -> (i32, i32) {
    %c0_i32 = arith.constant 0 : i32
    %c0_i32_0 = arith.constant 0 : i32
    %c0_i32_1 = arith.constant 0 : i32
    return %c0_i32, %c0_i32_0 : i32, i32
  }
  func.func @transform_7(%arg0: i32) -> (i32, i32) {
    %c0_i32 = arith.constant 0 : i32
    %c0_i32_0 = arith.constant 0 : i32
    %c0_i32_1 = arith.constant 0 : i32
    return %c0_i32, %c0_i32_0 : i32, i32
  }
  func.func @transform_8(%arg0: i32) -> (i32, i32) {
    %c0_i32 = arith.constant 0 : i32
    %c0_i32_0 = arith.constant 0 : i32
    %c0_i32_1 = arith.constant 0 : i32
    return %c0_i32, %c0_i32_0 : i32, i32
  }
  func.func @transform_9(%arg0: i32) -> (i32, i32, i32) {
    %c0_i32 = arith.constant 0 : i32
    %c0_i32_0 = arith.constant 0 : i32
    %c0_i32_1 = arith.constant 0 : i32
    return %arg0, %c0_i32, %c0_i32_0 : i32, i32, i32
  }
}

</mosaic_0001>

<bundles_post_ra>
// kernel: pttnp_encoder_forward.1
= control target key start
LH: loop header
LB: loop body
LE: loop exit
PB: predicated region body
PF: predicated region fallthrough
CT: control target
= control target key end

     0   :  { %s3092_s11 = smov 2   ;;  %s3920_s0 = inlined_call_operand.vmem [shape: f32[2,8,2], index: 0, kind: input, shape index: {}]   ;;  %s3921_s1 = inlined_call_operand.vmem [shape: f32[2,8,1], index: 1, kind: input, shape index: {}]   ;;  %s3922_s2 = inlined_call_operand.vmem [shape: f32[2,8,2], index: 2, kind: input, shape index: {}]   ;;  %s3923_s3 = inlined_call_operand.vmem [shape: f32[312,32], index: 3, kind: input, shape index: {}]   ;;  %s3924_s4 = inlined_call_operand.vmem [shape: f32[96,32], index: 4, kind: input, shape index: {}]   ;;  %s3925_s5 = inlined_call_operand.vmem [shape: f32[64,64], index: 5, kind: input, shape index: {}]   ;;  %s3926_s6 = inlined_call_operand.vmem [shape: f32[32,96], index: 6, kind: input, shape index: {}]   ;;  %s3927_s7 = inlined_call_operand.vmem [shape: f32[21,32], index: 7, kind: input, shape index: {}]   ;;  %s3928_s8 = inlined_call_operand.vmem [shape: f32[3,32], index: 8, kind: input, shape index: {}]   ;;  %s3929_s9 = inlined_call_operand.hbm [shape: f32[2,8,32], index: 9, kind: output, shape index: {}]  }
   0x1   :  { %v35_v0 = vld [vmem:[%s3921_s1] sm:$0xff]  ;;  %v36_v1 = vld [vmem:[%s3921_s1 + $0x8] sm:$0xff] }
   0x2   :  { %41 = vrot.lane.b32.xlu0 %v35_v0, %s3092_s11 }
   0x3   :  { %14 = vsyncpa [#allocation3], 0  ;;  %v50_v2 = vld [vmem:[%s3923_s3] sm:$0x7]  ;;  %vm60_vm0 = vcmask 1042432   ;;  %v92_v3 = vld [vmem:[%s3923_s3 + $0x28] sm:$0xff] }
   0x4   :  { %2730 = vmatpush.msk.msra.mxu0 %vm60_vm0, %v50_v2  ;;  %2840 = vmatpush.msk.msra.mxu2 %vm60_vm0, %v50_v2  ;;  %v33_v4 = vld [vmem:[%s3920_s0] sm:$0xff]  ;;  %vm47_vm1 = vcmask 15360   ;;  %vm53_vm2 = vcmask 23552   ;;  %v34_v7 = vld [vmem:[%s3920_s0 + $0x8] sm:$0xff]  ;;  %v90_v11 = vld [vmem:[%s3923_s3 + $0x18] sm:$0xff]  ;;  %vm134_vm3 = vcmask 1041408  }
   0x5   :  { %114 = vmatpush.msra.mxu1 %v92_v3  ;;  %181 = vmatpush.msra.mxu3 %v92_v3  ;;  %v91_v10 = vld [vmem:[%s3923_s3 + $0x20] sm:$0xff]  ;;  %v89_v12 = vld [vmem:[%s3923_s3 + $0x10] sm:$0xff]  ;;  %v125_v13 = vld [vmem:[%s3923_s3 + $0x8] sm:$0x3]  ;;  %vm95_vm4 = vcmask 261120   ;;  %s3093_s30 = smov 120  }
   0x6   :  { %v196_v14 = vld [vmem:[%s3923_s3 + $0x50] sm:$0xff]  ;;  %v37_v15 = vld [vmem:[%s3922_s2] sm:$0xff]  ;;  %2735 = vmatpush.msk.msrb.mxu2 %vm134_vm3, %v125_v13  ;;  %v195_v16 = vld [vmem:[%s3923_s3 + $0x48] sm:$0xff]  ;;  %s3094_s12 = smov 112   ;;  %s3095_s13 = smov 104   ;;  %vm256_vm5 = vcmask 64512  }
   0x7   :  { %115 = vmatpush.msra.mxu1 %v91_v10  ;;  %182 = vmatpush.msra.mxu3 %v91_v10  ;;  %v194_v17 = vld [vmem:[%s3923_s3 + $0x40] sm:$0xff]  ;;  %v226_v18 = vld [vmem:[%s3925_s5 + $0x18] sm:$0xff]  ;;  %v225_v19 = vld [vmem:[%s3925_s5 + $0x10] sm:$0xff]  ;;  %s3096_s14 = smov 96   ;;  %s3097_s15 = smov 72   ;;  %vm807_vm6 = vcmask 130048  }
   0x8   :  { %212 = vmatpush.msrb.mxu0 %v196_v14  ;;  %v193_v20 = vld [vmem:[%s3923_s3 + $0x38] sm:$0xff]  ;;  %v3217_v21 = vld [vmem:[%s3923_s3 + $0x30] sm:$0xff]  ;;  %v38_v22 = vld [vmem:[%s3922_s2 + $0x8] sm:$0xff]  ;;  %s3098_s16 = smov 88   ;;  %s3099_s17 = smov 80   ;;  %vm810_vm7 = vcmask 195584  }
   0x9   :  { %116 = vmatpush.msra.mxu1 %v90_v11  ;;  %183 = vmatpush.msra.mxu3 %v90_v11  ;;  %v2919_v23 = vld [vmem:[%s3927_s7] ss:$0 sm:$0xff]  ;;  %v224_v30 = vld [vmem:[%s3925_s5 + $0x8] sm:$0xff]  ;;  %v2921_v32 = vld [vmem:[%s3927_s7 + $0x1] ss:$0 sm:$0xff]  ;;  %s3100_s18 = smov 8  }
   0xa   :  { %43 = vrot.lane.b32.xlu0 %v36_v1, %s3092_s11  ;;  %213 = vmatpush.msrb.mxu0 %v195_v16  ;;  %v223_v31 = vld [vmem:[%s3925_s5] sm:$0xff]  ;;  %s3101_s19 = smov 24   ;;  %s3102_s1 = smov 16  }
   0xb   :  { %117 = vmatpush.msra.mxu1 %v89_v12  ;;  %184 = vmatpush.msra.mxu3 %v89_v12  ;;  %v2920_v37 = vld [vmem:[%s3927_s7 + $0x2] ss:$0 sm:$0xff]  ;;  %s3104_s23 = smov 64   ;;  %s3105_s24 = smov 40  }
   0xc   :  { %214 = vmatpush.msrb.mxu0 %v194_v17  ;;  %s3106_s25 = smov 48   ;;  %s3107_s2 = smov 56  }
   0xd   :  { %s2718_s26 = sshll.u32 %s3929_s9, 4  ;;  %s2719_s26 = int_to_ptr.hbm [resolvable:$true] %s2718_s26 }
   0xe   :  { %215 = vmatpush.msrb.mxu0 %v193_v20 }
  0x74   :  { %v42_v5 = vpop.permute.xlu0 %41 }
  0x75   :  { %v48_v6 = vsel %vm47_vm1, %v33_v4, %v42_v5 }
  0x76   :  { %2731 = vmatmul.msk.f32.vlgmr.msra.gmra.mxu0 %vm53_vm2, %v48_v6 }
  0x7c   :  { %v44_v8 = vpop.permute.xlu0 %43 }
  0x7d   :  { %v49_v9 = vsel %vm47_vm1, %v34_v7, %v44_v8 }
  0x7e   :  { %2732 = vmatmul.msk.f32.vlgmr.msra.gmra.mxu2 %vm53_vm2, %v49_v9  ;;  %2740 = vmatmul.msk.f32.vlgmr.msrb.gmra.mxu0 %vm95_vm4, %v3217_v21 }
  0x7f   :  { %245 = vmatpush.msra.mxu2 %v226_v18 }
  0x81   :  { %246 = vmatpush.msra.mxu2 %v225_v19 }
  0x83   :  { %247 = vmatpush.msra.mxu2 %v224_v30 }
  0x85   :  { %248 = vmatpush.msra.mxu2 %v223_v31 }
  0x86   :  { %2736 = vmatmul.msk.f32.vlgmr.msrb.gmra.mxu2 %vm47_vm1, %v37_v15  ;;  %2741 = vmatmul.msk.f32.gmra.mxu0 %vm95_vm4, %v3217_v21 }
  0x8e   :  { %2737 = vmatmul.msk.f32.gmra.mxu2 %vm47_vm1, %v38_v22 }
  0xf3   :  { %v81_v24 = vpop.f32.mrf.mxu0 }
  0xf4   :  { %v82_v25 = vadd.f32 %v2919_v23, %v81_v24 }
  0xf6   :  { %v87_v26 = vmax.f32 %v82_v25, 0.0 }
  0xf8   :  { %2733 = vmatmul.msk.f32.vlgmr.msra.gmra.mxu1 %vm95_vm4, %v87_v26 }
  0xfb   :  { %v217_v34 = vpop.f32.mrf.mxu0 }
  0xfc   :  { %309 = vrot.lane.b32.xlu2 %v217_v34, %s3093_s30 }
 0x101   :  { %v84_v27 = vpop.f32.mrf.mxu2 }
 0x102   :  { %v85_v28 = vadd.f32 %v2919_v23, %v84_v27 }
 0x103   :  { %v220_v39 = vpop.f32.mrf.mxu0 }
 0x104   :  { %v88_v29 = vmax.f32 %v85_v28, 0.0  ;;  %393 = vrot.lane.b32.xlu2 %v220_v39, %s3094_s12  ;;  %337 = vrot.lane.b32.xlu1 %v220_v39, %s3093_s30 }
 0x106   :  { %2734 = vmatmul.msk.f32.gmra.mxu1 %vm95_vm4, %v88_v29 }
 0x109   :  { %v155_v33 = vpop.f32.mrf.mxu2 }
 0x10a   :  { %v156_v35 = vadd.f32 %v2921_v32, %v155_v33 }
 0x10c   :  { %v161_v36 = vmax.f32 %v156_v35, 0.0  ;;  %449 = vrot.lane.b32.xlu1 %v220_v39, %s3095_s13 }
 0x10e   :  { %2738 = vmatmul.msk.f32.vlgmr.msra.gmra.mxu3 %vm95_vm4, %v161_v36 }
 0x111   :  { %v158_v38 = vpop.f32.mrf.mxu2 }
 0x112   :  { %v159_v40 = vadd.f32 %v2921_v32, %v158_v38 }
 0x114   :  { %v162_v43 = vmax.f32 %v159_v40, 0.0 }
 0x116   :  { %2739 = vmatmul.msk.f32.gmra.mxu3 %vm95_vm4, %v162_v43 }
 0x156   :  { %v310_v48 = vpop.permute.xlu2 %309 }
 0x15e   :  { %v394_v49 = vpop.permute.xlu2 %393 }
 0x175   :  { %v119_v41 = vpop.f32.mrf.mxu1 }
 0x176   :  { %v120_v42 = vadd.f32 %v2920_v37, %v119_v41  ;;  %v338_v52 = vpop.permute.xlu1 %337 }
 0x178   :  { %2742 = vmatmul.msk.f32.vlgmr.msra.gmra.mxu2 %vm95_vm4, %v120_v42 }
 0x17e   :  { %v450_v54 = vpop.permute.xlu1 %449 }
 0x183   :  { %v122_v44 = vpop.f32.mrf.mxu1 }
 0x184   :  { %v123_v45 = vadd.f32 %v2920_v37, %v122_v44 }
 0x186   :  { %2743 = vmatmul.msk.f32.gmra.mxu2 %vm95_vm4, %v123_v45 }
 0x191   :  { %v3282_v59 = vpop.f32.mrf.mxu3 }
 0x199   :  { %v3290_v63 = vpop.f32.mrf.mxu3 }
 0x1fb   :  { %v3252_v46 = vpop.f32.mrf.mxu2 }
 0x1fc   :  { %367 = vrot.lane.b32.xlu0 %v3252_v46, %s3094_s12  ;;  %311 = vrot.lane.b32.xlu2 %v3252_v46, %s3093_s30 }
 0x1fd   :  { %2744 = vmatpush.xpose.msk.msrb.mxu1 %vm256_vm5, %v3252_v46 }
 0x200   :  { %2745 = vmatmul.msk.f32.vlgmr.msrb.gmra.mxu1 %vm256_vm5, %v217_v34 }
 0x204   :  { %423 = vrot.lane.b32.xlu2 %v3252_v46, %s3095_s13 }
 0x209   :  { %v3263_v47 = vpop.f32.mrf.mxu2 }
 0x20a   :  { %395 = vrot.lane.b32.xlu0 %v3263_v47, %s3094_s12  ;;  %339 = vrot.lane.b32.xlu1 %v3263_v47, %s3093_s30  ;;  %v3306_v28 = vpack.i.bf16 %v3263_v47, %v3252_v46 }
 0x20b   :  { %2746 = vmatpush.xpose.msk.msrb.mxu3 %vm256_vm5, %v3263_v47 }
 0x20e   :  { %2747 = vmatmul.msk.f32.vlgmr.msrb.gmra.mxu3 %vm256_vm5, %v220_v39 }
 0x212   :  { %365 = vrot.lane.b32.xlu0 %v217_v34, %s3094_s12  ;;  %451 = vrot.lane.b32.xlu1 %v3263_v47, %s3095_s13 }
 0x21a   :  { %421 = vrot.lane.b32.xlu1 %v217_v34, %s3095_s13 }
 0x256   :  { %v312_v50 = vpop.permute.xlu2 %311 }
 0x257   :  { %2748 = vmatpush.xpose.msk.msra.mxu1 %vm256_vm5, %v312_v50 }
 0x25a   :  { %2749 = vmatmul.msk.f32.vlgmr.msra.gmra.mxu1 %vm256_vm5, %v310_v48 }
 0x25e   :  { %v424_v51 = vpop.permute.xlu2 %423 }
 0x25f   :  { %2756 = vmatpush.xpose.msk.msrb.mxu1 %vm256_vm5, %v424_v51 }
 0x26e   :  { %v368_v53 = vpop.permute.xlu0 %367 }
 0x26f   :  { %2752 = vmatpush.xpose.msk.msra.mxu0 %vm256_vm5, %v368_v53 }
 0x27c   :  { %v396_v55 = vpop.permute.xlu0 %395  ;;  %v340_v56 = vpop.permute.xlu1 %339 }
 0x27d   :  { %v280_v57 = vpop.f32.mrf.mxu1  ;;  %2750 = vmatpush.xpose.msk.msra.mxu3 %vm256_vm5, %v340_v56  ;;  %2754 = vmatpush.xpose.msk.msrb.mxu2 %vm256_vm5, %v396_v55 }
 0x27e   :  { %v477_v58 = vmul.f32 0.35355338, %v280_v57 }
 0x280   :  { %v485_v60 = vsel %vm256_vm5, %v477_v58, -inf  ;;  %2751 = vmatmul.msk.f32.vlgmr.msra.gmra.mxu3 %vm256_vm5, %v338_v52  ;;  %2755 = vmatmul.msk.f32.vlgmr.msrb.gmra.mxu2 %vm256_vm5, %v394_v49 }
 0x281   :  { %486 = vmax.xlane.f32.xlu2 %v485_v60 }
 0x284   :  { %v366_v61 = vpop.permute.xlu0 %365  ;;  %v452_v62 = vpop.permute.xlu1 %451 }
 0x285   :  { %2753 = vmatmul.msk.f32.vlgmr.msra.gmra.mxu0 %vm256_vm5, %v366_v61  ;;  %2758 = vmatpush.xpose.msk.msrb.mxu3 %vm256_vm5, %v452_v62 }
 0x288   :  { %2759 = vmatmul.msk.f32.vlgmr.msrb.gmra.mxu3 %vm256_vm5, %v450_v54 }
 0x28c   :  { %v422_v0 = vpop.permute.xlu1 %421 }
 0x28d   :  { %2757 = vmatmul.msk.f32.vlgmr.msrb.gmra.mxu1 %vm256_vm5, %v422_v0 }
 0x291   :  { %v306_v1 = vpop.f32.mrf.mxu3 }
 0x292   :  { %v481_v2 = vmul.f32 0.35355338, %v306_v1 }
 0x294   :  { %v497_v3 = vsel %vm256_vm5, %v481_v2, -inf }
 0x295   :  { %498 = vmax.xlane.f32.xlu1 %v497_v3 }
 0x2d7   :  { %v334_v4 = vpop.f32.mrf.mxu1 }
 0x2d8   :  { %v478_v5 = vmul.f32 0.35355338, %v334_v4 }
 0x2da   :  { %v488_v6 = vsel %vm256_vm5, %v478_v5, -inf }
 0x2db   :  { %489 = vmax.xlane.f32.xlu0 %v488_v6 }
 0x2f4   :  { %v487_v29 = vpop.xlane.xlu2 %486 }
 0x2f5   :  { %v509_v30 = vsub.f32 %v477_v58, %v487_v29 }
 0x2f7   :  { %v517_v31 = vmul.f32 1.442695, %v509_v30 }
 0x302   :  { %v390_v7 = vpop.f32.mrf.mxu0 }
 0x303   :  { %v479_v8 = vmul.f32 0.35355338, %v390_v7  ;;  %v418_v9 = vpop.f32.mrf.mxu2  ;;  %v362_v10 = vpop.f32.mrf.mxu3 }
 0x304   :  { %v483_v11 = vmul.f32 0.35355338, %v418_v9  ;;  %v482_v14 = vmul.f32 0.35355338, %v362_v10 }
 0x305   :  { %v491_v12 = vsel %vm256_vm5, %v479_v8, -inf }
 0x306   :  { %492 = vmax.xlane.f32.xlu2 %v491_v12  ;;  %v503_v13 = vsel %vm256_vm5, %v483_v11, -inf  ;;  %v500_v20 = vsel %vm256_vm5, %v482_v14, -inf }
 0x307   :  { %504 = vmax.xlane.f32.xlu1 %v503_v13 }
 0x308   :  { %v499_v15 = vpop.xlane.xlu1 %498 }
 0x309   :  { %v513_v18 = vsub.f32 %v481_v2, %v499_v15 }
 0x30a   :  { %v446_v16 = vpop.f32.mrf.mxu1 }
 0x30b   :  { %v480_v17 = vmul.f32 0.35355338, %v446_v16  ;;  %v474_v22 = vpop.f32.mrf.mxu3  ;;  %v525_v23 = vmul.f32 1.442695, %v513_v18 }
 0x30c   :  { %v484_v24 = vmul.f32 0.35355338, %v474_v22 }
 0x30d   :  { %v494_v19 = vsel %vm256_vm5, %v480_v17, -inf  ;;  %2943 = vpow2.f32 %v525_v23 }
 0x30e   :  { %495 = vmax.xlane.f32.xlu0 %v494_v19  ;;  %501 = vmax.xlane.f32.xlu2 %v500_v20  ;;  %v506_v25 = vsel %vm256_vm5, %v484_v24, -inf  ;;  %2945 = vpow2.f32 %v517_v31 }
 0x313   :  { %v3300_v26 = vpop.eup %2943 }
 0x314   :  { %v545_v27 = vsel %vm256_vm5, %v3300_v26, 0.0  ;;  %v3310_v32 = vpop.eup %2945 }
 0x315   :  { %v533_v33 = vsel %vm256_vm5, %v3310_v32, 0.0 }
 0x316   :  { %507 = vmax.xlane.f32.xlu2 %v506_v25 }
 0x31e   :  { %546 = vadd.xlane.f32.xlu2 %v545_v27 }
 0x322   :  { %2860 = vrot.lane.b32.xlu0 %v3306_v28, %s3096_s14 }
 0x34c   :  { %534 = vadd.xlane.f32.xlu0 %v533_v33 }
 0x34e   :  { %v490_v34 = vpop.xlane.xlu0 %489 }
 0x34f   :  { %v510_v35 = vsub.f32 %v478_v5, %v490_v34 }
 0x351   :  { %v519_v36 = vmul.f32 1.442695, %v510_v35 }
 0x353   :  { %2947 = vpow2.f32 %v519_v36 }
 0x359   :  { %v3314_v37 = vpop.eup %2947 }
 0x35a   :  { %v536_v38 = vsel %vm256_vm5, %v3314_v37, 0.0 }
 0x35b   :  { %537 = vadd.xlane.f32.xlu1 %v536_v38 }
 0x379   :  { %v493_v39 = vpop.xlane.xlu2 %492 }
 0x37a   :  { %v511_v40 = vsub.f32 %v479_v8, %v493_v39  ;;  %v505_v41 = vpop.xlane.xlu1 %504 }
 0x37b   :  { %v515_v43 = vsub.f32 %v483_v11, %v505_v41 }
 0x37c   :  { %v521_v42 = vmul.f32 1.442695, %v511_v40 }
 0x37d   :  { %v529_v44 = vmul.f32 1.442695, %v515_v43 }
 0x37e   :  { %2949 = vpow2.f32 %v521_v42 }
 0x37f   :  { %2951 = vpow2.f32 %v529_v44 }
 0x381   :  { %v496_v45 = vpop.xlane.xlu0 %495  ;;  %v502_v46 = vpop.xlane.xlu2 %501 }
 0x382   :  { %v512_v47 = vsub.f32 %v480_v17, %v496_v45  ;;  %v514_v48 = vsub.f32 %v482_v14, %v502_v46 }
 0x384   :  { %v3318_v49 = vpop.eup %2949  ;;  %v523_v50 = vmul.f32 1.442695, %v512_v47  ;;  %v527_v51 = vmul.f32 1.442695, %v514_v48  ;;  %v816_v47 = vld [vmem:[%s3923_s3 + $0x70] sm:$0xff]  ;;  %v815_v48 = vld [vmem:[%s3923_s3 + $0x68] sm:$0xff] }
 0x385   :  { %v539_v52 = vsel %vm256_vm5, %v3318_v49, 0.0  ;;  %v3322_v54 = vpop.eup %2951 }
 0x386   :  { %2953 = vpow2.f32 %v523_v50  ;;  %540 = vadd.xlane.f32.xlu1 %v539_v52  ;;  %v551_v60 = vsel %vm256_vm5, %v3322_v54, 0.0  ;;  %v813_v50 = vld [vmem:[%s3923_s3 + $0x58] sm:$0xff] }
 0x387   :  { %2955 = vpow2.f32 %v527_v51 }
 0x389   :  { %v508_v53 = vpop.xlane.xlu2 %507 }
 0x38a   :  { %v516_v55 = vsub.f32 %v484_v24, %v508_v53 }
 0x38c   :  { %v2954_v56 = vpop.eup %2953  ;;  %v531_v57 = vmul.f32 1.442695, %v516_v55 }
 0x38d   :  { %v2956_v58 = vpop.eup %2955  ;;  %v542_v61 = vsel %vm256_vm5, %v2954_v56, 0.0 }
 0x38e   :  { %2957 = vpow2.f32 %v531_v57  ;;  %552 = vadd.xlane.f32.xlu1 %v551_v60  ;;  %v548_v62 = vsel %vm256_vm5, %v2956_v58, 0.0  ;;  %543 = vadd.xlane.f32.xlu2 %v542_v61 }
 0x38f   :  { %549 = vadd.xlane.f32.xlu0 %v548_v62 }
 0x391   :  { %v547_v0 = vpop.xlane.xlu2 %546 }
 0x392   :  { %2959 = vrcp.f32 %v547_v0 }
 0x394   :  { %v2958_v1 = vpop.eup %2957  ;;  %v2861_v2 = vpop.permute.xlu0 %2860 }
 0x395   :  { %v2863_v3 = vunpack.i.h.bf16 %v2861_v2  ;;  %v2862_v4 = vunpack.i.l.bf16 %v2861_v2  ;;  %v554_v5 = vsel %vm256_vm5, %v2958_v1, 0.0 }
 0x396   :  { %555 = vadd.xlane.f32.xlu1 %v554_v5 }
 0x397   :  { %594 = vmatpush.msrb.mxu0 %v2862_v4  ;;  %620 = vmatpush.msra.mxu2 %v2863_v3 }
 0x398   :  { %v2960_v6 = vpop.eup %2959 }
 0x399   :  { %v569_v7 = vmul.f32 %v2960_v6, %v3300_v26 }
 0x39b   :  { %2761 = vmatmul.msk.f32.vlgmr.msra.gmra.mxu2 %vm256_vm5, %v569_v7 }
 0x3a3   :  { %2875 = vrot.lane.b32.xlu0 %v3306_v28, %s3097_s15 }
 0x3a6   :  { %2865 = vrot.lane.b32.xlu2 %v3306_v28, %s3098_s16 }
 0x3af   :  { %2870 = vrot.lane.b32.xlu1 %v3306_v28, %s3099_s17 }
 0x3bf   :  { %v535_v8 = vpop.xlane.xlu0 %534 }
 0x3c0   :  { %2961 = vrcp.f32 %v535_v8 }
 0x3c6   :  { %v2962_v9 = vpop.eup %2961 }
 0x3c7   :  { %v565_v10 = vmul.f32 %v2962_v9, %v3310_v32 }
 0x3c9   :  { %2760 = vmatmul.msk.f32.vlgmr.msrb.gmra.mxu0 %vm256_vm5, %v565_v10 }
 0x3ce   :  { %v538_v11 = vpop.xlane.xlu1 %537 }
 0x3cf   :  { %2963 = vrcp.f32 %v538_v11 }
 0x3d5   :  { %v2964_v16 = vpop.eup %2963 }
 0x3d6   :  { %v566_v22 = vmul.f32 %v2964_v16, %v3314_v37 }
 0x3f9   :  { %v541_v12 = vpop.xlane.xlu1 %540 }
 0x401   :  { %v553_v13 = vpop.xlane.xlu1 %552  ;;  %v544_v14 = vpop.xlane.xlu2 %543 }
 0x402   :  { %v550_v15 = vpop.xlane.xlu0 %549 }
 0x403   :  { %2965 = vrcp.f32 %v550_v15 }
 0x404   :  { %2967 = vrcp.f32 %v544_v14  ;;  %v3103_v14 = vmov 32.0  }
 0x409   :  { %v2966_v17 = vpop.eup %2965  ;;  %v2866_v18 = vpop.permute.xlu2 %2865 }
 0x40a   :  { %v2868_v19 = vunpack.i.h.bf16 %v2866_v18  ;;  %v2867_v20 = vunpack.i.l.bf16 %v2866_v18  ;;  %v570_v23 = vmul.f32 %v2966_v17, %v2956_v58  ;;  %v556_v24 = vpop.xlane.xlu1 %555  ;;  %v2968_v25 = vpop.eup %2967 }
 0x40b   :  { %2969 = vrcp.f32 %v556_v24  ;;  %v568_v30 = vmul.f32 %v2968_v25, %v2954_v56  ;;  %v916_v24 = vld [vmem:[%s3924_s4 + $0x8] sm:$0xff] }
 0x40c   :  { %646 = vmatpush.msra.mxu1 %v2867_v20  ;;  %672 = vmatpush.msra.mxu3 %v2868_v19  ;;  %2971 = vrcp.f32 %v541_v12 }
 0x40d   :  { %2762 = vmatmul.msk.f32.vlgmr.msra.gmra.mxu1 %vm256_vm5, %v566_v22  ;;  %2763 = vmatmul.msk.f32.vlgmr.msra.gmra.mxu3 %vm256_vm5, %v570_v23  ;;  %2973 = vrcp.f32 %v553_v13  ;;  %v917_v22 = vld [vmem:[%s3924_s4 + $0x10] sm:$0xff] }
 0x40e   :  { %2975 = vrcp.f32 %v3103_v14  ;;  %v2926_v14 = vld [vmem:[%s3927_s7 + $0x8] ss:$0 sm:$0xff] }
 0x411   :  { %v2970_v26 = vpop.eup %2969 }
 0x412   :  { %v572_v31 = vmul.f32 %v2970_v26, %v2958_v1  ;;  %v2972_v32 = vpop.eup %2971  ;;  %v2922_v1 = vld [vmem:[%s3927_s7 + $0x3] ss:$0 sm:$0xff] }
 0x413   :  { %v2974_v33 = vpop.eup %2973  ;;  %v567_v37 = vmul.f32 %v2972_v32, %v3318_v49  ;;  %v814_v49 = vld [vmem:[%s3923_s3 + $0x60] sm:$0xff] }
 0x414   :  { %v571_v38 = vmul.f32 %v2974_v33, %v3322_v54  ;;  %v2976_v15 = vpop.eup %2975 }
 0x415   :  { %v2876_v27 = vpop.permute.xlu0 %2875  ;;  %v859_v16 = vmul.f32 32.0, %v2976_v15  ;;  %vm863_vm8 = vweird.f32 %v2976_v15 }
 0x416   :  { %v2878_v28 = vunpack.i.h.bf16 %v2876_v27  ;;  %v2877_v29 = vunpack.i.l.bf16 %v2876_v27  ;;  %v915_v27 = vld [vmem:[%s3924_s4] sm:$0xff] }
 0x417   :  { %v860_v17 = vsub.f32 1.0, %v859_v16 }
 0x418   :  { %750 = vmatpush.msrb.mxu1 %v2877_v29  ;;  %776 = vmatpush.msrb.mxu3 %v2878_v28 }
 0x419   :  { %2766 = vmatmul.msk.f32.vlgmr.msrb.gmra.mxu1 %vm256_vm5, %v568_v30  ;;  %2767 = vmatmul.msk.f32.vlgmr.msrb.gmra.mxu3 %vm256_vm5, %v572_v31  ;;  %v861_v18 = vmul.f32 %v2976_v15, %v860_v17 }
 0x41b   :  { %v862_v19 = vadd.f32 %v2976_v15, %v861_v18 }
 0x41d   :  { %v3396_v20 = vsel %vm863_vm8, %v2976_v15, %v862_v19 }
 0x41e   :  { %v622_v44 = vpop.f32.mrf.mxu2 }
 0x421   :  { %v2871_v34 = vpop.permute.xlu1 %2870 }
 0x422   :  { %v2873_v35 = vunpack.i.h.bf16 %v2871_v34  ;;  %v2872_v36 = vunpack.i.l.bf16 %v2871_v34 }
 0x424   :  { %698 = vmatpush.msra.mxu0 %v2872_v36  ;;  %724 = vmatpush.msrb.mxu2 %v2873_v35 }
 0x425   :  { %2764 = vmatmul.msk.f32.vlgmr.msra.gmra.mxu0 %vm256_vm5, %v567_v37  ;;  %2765 = vmatmul.msk.f32.vlgmr.msrb.gmra.mxu2 %vm256_vm5, %v571_v38 }
 0x426   :  { %837 = vmatpush.msrb.mxu0 %v816_v47 }
 0x428   :  { %838 = vmatpush.msrb.mxu0 %v815_v48  ;;  %v2923_v48 = vld [vmem:[%s3927_s7 + $0x4] ss:$0 sm:$0xff] }
 0x42a   :  { %839 = vmatpush.msrb.mxu0 %v814_v49 }
 0x42c   :  { %840 = vmatpush.msrb.mxu0 %v813_v50 }
 0x446   :  { %v596_v42 = vpop.f32.mrf.mxu0 }
 0x48a   :  { %v648_v39 = vpop.f32.mrf.mxu1 }
 0x48b   :  { %783 = vrot.lane.b32.xlu0 %v648_v39, %s3100_s18 }
 0x490   :  { %v674_v40 = vpop.f32.mrf.mxu3 }
 0x496   :  { %v752_v41 = vpop.f32.mrf.mxu1 }
 0x497   :  { %799 = vrot.lane.b32.xlu0 %v752_v41, %s3101_s19 }
 0x49c   :  { %v778_v43 = vpop.f32.mrf.mxu3 }
 0x49f   :  { %801 = vrot.lane.b32.xlu0 %v778_v43, %s3101_s19 }
 0x4a2   :  { %v700_v45 = vpop.f32.mrf.mxu0 }
 0x4a3   :  { %791 = vrot.lane.b32.xlu2 %v700_v45, %s3102_s1 }
 0x4a8   :  { %v726_v46 = vpop.f32.mrf.mxu2 }
 0x4a9   :  { %793 = vrot.lane.b32.xlu1 %v726_v46, %s3102_s1 }
 0x4ab   :  { %785 = vrot.lane.b32.xlu2 %v674_v40, %s3100_s18 }
 0x4fd   :  { %v784_v51 = vpop.permute.xlu0 %783  ;;  %v792_v52 = vpop.permute.xlu2 %791 }
 0x4fe   :  { %v805_v53 = vsel %vm256_vm5, %v596_v42, %v784_v51  ;;  %v955_v42 = vld [vmem:[%s3923_s3 + $0x90] sm:$0xff] }
 0x4ff   :  { %v808_v54 = vsel %vm807_vm6, %v805_v53, %v792_v52  ;;  %976 = vmatpush.msra.mxu1 %v955_v42  ;;  %v2924_v52 = vld [vmem:[%s3927_s7 + $0x5] ss:$0 sm:$0xff] }
 0x505   :  { %v786_v57 = vpop.permute.xlu2 %785 }
 0x506   :  { %v806_v58 = vsel %vm256_vm5, %v622_v44, %v786_v57 }
 0x509   :  { %v800_v55 = vpop.permute.xlu0 %799 }
 0x50a   :  { %v811_v56 = vsel %vm810_vm7, %v808_v54, %v800_v55 }
 0x50b   :  { %2768 = vmatmul.msk.f32.vlgmr.msrb.gmra.mxu0 %vm95_vm4, %v811_v56 }
 0x511   :  { %v802_v61 = vpop.permute.xlu0 %801 }
 0x51b   :  { %v794_v60 = vpop.permute.xlu1 %793 }
 0x51c   :  { %v809_v62 = vsel %vm807_vm6, %v806_v58, %v794_v60 }
 0x51d   :  { %v812_v0 = vsel %vm810_vm7, %v809_v62, %v802_v61 }
 0x51e   :  { %2769 = vmatmul.msk.f32.gmra.mxu0 %vm95_vm4, %v812_v0 }
 0x588   :  { %v842_v2 = vpop.f32.mrf.mxu0 }
 0x589   :  { %v843_v3 = vadd.f32 %v2922_v1, %v842_v2 }
 0x58b   :  { %v3378_v4 = vadd.f32 %v843_v3, %v3217_v21 }
 0x58d   :  { %v852_v5 = vsel %vm95_vm4, %v3378_v4, 0.0  ;;  %v867_v6 = vmul.f32 %v3378_v4, %v3378_v4 }
 0x58e   :  { %853 = vadd.xlane.f32.xlu2 %v852_v5  ;;  %v953_v5 = vld [vmem:[%s3923_s3 + $0x80] sm:$0xff] }
 0x58f   :  { %v869_v7 = vsel %vm95_vm4, %v867_v6, 0.0  ;;  %v952_v6 = vld [vmem:[%s3923_s3 + $0x78] sm:$0xff] }
 0x590   :  { %870 = vadd.xlane.f32.xlu1 %v869_v7  ;;  %v2925_v7 = vld [vmem:[%s3928_s8] ss:$0 sm:$0xff] }
 0x59b   :  { %v845_v8 = vpop.f32.mrf.mxu0 }
 0x59c   :  { %v846_v9 = vadd.f32 %v2922_v1, %v845_v8 }
 0x59e   :  { %v3386_v10 = vadd.f32 %v846_v9, %v3217_v21  ;;  %v918_v21 = vld [vmem:[%s3924_s4 + $0x18] sm:$0xff] }
 0x59f   :  { %939 = vmatpush.msra.mxu2 %v918_v21 }
 0x5a0   :  { %v855_v11 = vsel %vm95_vm4, %v3386_v10, 0.0  ;;  %v868_v12 = vmul.f32 %v3386_v10, %v3386_v10 }
 0x5a1   :  { %856 = vadd.xlane.f32.xlu0 %v855_v11  ;;  %940 = vmatpush.msra.mxu2 %v917_v22 }
 0x5a2   :  { %v872_v13 = vsel %vm95_vm4, %v868_v12, 0.0 }
 0x5a3   :  { %873 = vadd.xlane.f32.xlu2 %v872_v13  ;;  %941 = vmatpush.msra.mxu2 %v916_v24 }
 0x5a5   :  { %942 = vmatpush.msra.mxu2 %v915_v27 }
 0x601   :  { %v854_v23 = vpop.xlane.xlu2 %853 }
 0x602   :  { %v865_v25 = vmul.f32 %v3396_v20, %v854_v23 }
 0x603   :  { %v871_v26 = vpop.xlane.xlu1 %870 }
 0x604   :  { %v877_v28 = vmul.f32 %v865_v25, %v865_v25  ;;  %v875_v29 = vmul.f32 %v871_v26, %v3396_v20  ;;  %v883_v47 = vsub.f32 %v3378_v4, %v865_v25  ;;  %v954_v4 = vld [vmem:[%s3923_s3 + $0x88] sm:$0xff] }
 0x605   :  { %977 = vmatpush.msra.mxu1 %v954_v4 }
 0x606   :  { %v879_v30 = vsub.f32 %v875_v29, %v877_v28  ;;  %v1050_v28 = vld [vmem:[%s3926_s6 + $0x18] sm:$0xff]  ;;  %v1049_v29 = vld [vmem:[%s3926_s6 + $0x10] sm:$0xff] }
 0x607   :  { %978 = vmatpush.msra.mxu1 %v953_v5  ;;  %1069 = vmatpush.msra.mxu3 %v1050_v28 }
 0x608   :  { %v881_v31 = vmax.f32 %v879_v30, 0.0 }
 0x609   :  { %979 = vmatpush.msra.mxu1 %v952_v6  ;;  %1070 = vmatpush.msra.mxu3 %v1049_v29 }
 0x60a   :  { %v885_v32 = vadd.f32 1e-05, %v881_v31  ;;  %v1048_v31 = vld [vmem:[%s3926_s6 + $0x8] sm:$0xff] }
 0x60b   :  { %1071 = vmatpush.msra.mxu3 %v1048_v31 }
 0x60c   :  { %2977 = vrsqrt.f32 %v885_v32  ;;  %vm893_vm10 = vweird.f32 %v885_v32 }
 0x612   :  { %v2978_v33 = vpop.eup %2977 }
 0x613   :  { %v888_v34 = vmul.f32 %v2978_v33, %v885_v32  ;;  %vm894_vm9 = vweird.f32 %v2978_v33 }
 0x614   :  { %v857_v35 = vpop.xlane.xlu0 %856  ;;  %vm895_vm11 = vmor %vm893_vm10, %vm894_vm9 }
 0x615   :  { %v889_v36 = vmul.f32 %v2978_v33, %v888_v34  ;;  %v866_v37 = vmul.f32 %v3396_v20, %v857_v35  ;;  %v1047_v34 = vld [vmem:[%s3926_s6] sm:$0xff] }
 0x616   :  { %v874_v38 = vpop.xlane.xlu2 %873  ;;  %1072 = vmatpush.msra.mxu3 %v1047_v34 }
 0x617   :  { %v890_v39 = vmul.f32 0.5, %v889_v36  ;;  %v878_v40 = vmul.f32 %v866_v37, %v866_v37  ;;  %v876_v41 = vmul.f32 %v874_v38, %v3396_v20  ;;  %v884_v62 = vsub.f32 %v3386_v10, %v866_v37 }
 0x619   :  { %v891_v43 = vsub.f32 1.5, %v890_v39  ;;  %v880_v44 = vsub.f32 %v876_v41, %v878_v40 }
 0x61b   :  { %v892_v45 = vmul.f32 %v2978_v33, %v891_v43  ;;  %v882_v46 = vmax.f32 %v880_v44, 0.0 }
 0x61d   :  { %v896_v49 = vsel %vm895_vm11, %v2978_v33, %v892_v45  ;;  %v886_v50 = vadd.f32 1e-05, %v882_v46 }
 0x61e   :  { %v907_v51 = vmul.f32 %v896_v49, %v883_v47 }
 0x61f   :  { %2979 = vrsqrt.f32 %v886_v50  ;;  %vm903_vm13 = vweird.f32 %v886_v50 }
 0x620   :  { %v910_v53 = vmul.f32 %v2923_v48, %v907_v51 }
 0x622   :  { %v913_v54 = vadd.f32 %v2924_v52, %v910_v53 }
 0x624   :  { %2770 = vmatmul.msk.f32.vlgmr.msra.gmra.mxu2 %vm95_vm4, %v913_v54 }
 0x625   :  { %v2980_v55 = vpop.eup %2979 }
 0x626   :  { %v898_v56 = vmul.f32 %v2980_v55, %v886_v50  ;;  %vm904_vm12 = vweird.f32 %v2980_v55 }
 0x627   :  { %vm905_vm14 = vmor %vm903_vm13, %vm904_vm12 }
 0x628   :  { %v899_v57 = vmul.f32 %v2980_v55, %v898_v56 }
 0x62a   :  { %v900_v58 = vmul.f32 0.5, %v899_v57 }
 0x62c   :  { %v901_v60 = vsub.f32 1.5, %v900_v58  ;;  %v2928_v58 = vld [vmem:[%s3927_s7 + $0x7] ss:$0 sm:$0xff] }
 0x62e   :  { %v902_v61 = vmul.f32 %v2980_v55, %v901_v60 }
 0x630   :  { %v906_v0 = vsel %vm905_vm14, %v2980_v55, %v902_v61 }
 0x631   :  { %v908_v1 = vmul.f32 %v906_v0, %v884_v62 }
 0x633   :  { %v911_v2 = vmul.f32 %v2923_v48, %v908_v1 }
 0x635   :  { %v914_v3 = vadd.f32 %v2924_v52, %v911_v2 }
 0x637   :  { %2771 = vmatmul.msk.f32.gmra.mxu2 %vm95_vm4, %v914_v3 }
 0x6a7   :  { %v944_v8 = vpop.f32.mrf.mxu2 }
 0x6a8   :  { %v945_v9 = vadd.f32 %v2925_v7, %v944_v8 }
 0x6aa   :  { %v950_v10 = vmax.f32 %v945_v9, 0.0 }
 0x6ac   :  { %2772 = vmatmul.msk.f32.vlgmr.msra.gmra.mxu1 %vm95_vm4, %v950_v10 }
 0x6ba   :  { %v947_v11 = vpop.f32.mrf.mxu2 }
 0x6bb   :  { %v948_v12 = vadd.f32 %v2925_v7, %v947_v11 }
 0x6bd   :  { %v951_v13 = vmax.f32 %v948_v12, 0.0 }
 0x6bf   :  { %2773 = vmatmul.msk.f32.gmra.mxu1 %vm95_vm4, %v951_v13 }
 0x729   :  { %v981_v15 = vpop.f32.mrf.mxu1 }
 0x72a   :  { %v982_v16 = vadd.f32 %v2926_v14, %v981_v15 }
 0x72c   :  { %v987_v17 = vadd.f32 %v982_v16, %v913_v54  ;;  %v2927_v54 = vld [vmem:[%s3927_s7 + $0x6] ss:$0 sm:$0xff] }
 0x72e   :  { %v991_v18 = vsel %vm95_vm4, %v987_v17, 0.0  ;;  %v999_v19 = vmul.f32 %v987_v17, %v987_v17 }
 0x72f   :  { %992 = vadd.xlane.f32.xlu1 %v991_v18 }
 0x730   :  { %v1001_v21 = vsel %vm95_vm4, %v999_v19, 0.0 }
 0x731   :  { %1002 = vadd.xlane.f32.xlu0 %v1001_v21 }
 0x73c   :  { %v984_v22 = vpop.f32.mrf.mxu1 }
 0x73d   :  { %v985_v23 = vadd.f32 %v2926_v14, %v984_v22 }
 0x73f   :  { %v988_v24 = vadd.f32 %v985_v23, %v914_v3 }
 0x741   :  { %v994_v25 = vsel %vm95_vm4, %v988_v24, 0.0  ;;  %v1000_v26 = vmul.f32 %v988_v24, %v988_v24 }
 0x742   :  { %995 = vadd.xlane.f32.xlu2 %v994_v25 }
 0x743   :  { %v1004_v27 = vsel %vm95_vm4, %v1000_v26, 0.0 }
 0x744   :  { %1005 = vadd.xlane.f32.xlu1 %v1004_v27 }
 0x7a2   :  { %v993_v30 = vpop.xlane.xlu1 %992 }
 0x7a3   :  { %v997_v32 = vmul.f32 %v993_v30, %v3396_v20 }
 0x7a4   :  { %v1003_v33 = vpop.xlane.xlu0 %1002 }
 0x7a5   :  { %v1009_v35 = vmul.f32 %v997_v32, %v997_v32  ;;  %v1007_v36 = vmul.f32 %v1003_v33, %v3396_v20  ;;  %v1015_v53 = vsub.f32 %v987_v17, %v997_v32 }
 0x7a7   :  { %v1011_v37 = vsub.f32 %v1007_v36, %v1009_v35 }
 0x7a9   :  { %v1013_v38 = vmax.f32 %v1011_v37, 0.0 }
 0x7ab   :  { %v1017_v39 = vadd.f32 1e-05, %v1013_v38 }
 0x7ad   :  { %2981 = vrsqrt.f32 %v1017_v39  ;;  %vm1025_vm0 = vweird.f32 %v1017_v39 }
 0x7b3   :  { %v2982_v40 = vpop.eup %2981 }
 0x7b4   :  { %v1020_v41 = vmul.f32 %v2982_v40, %v1017_v39  ;;  %vm1026_vm15 = vweird.f32 %v2982_v40 }
 0x7b5   :  { %v996_v42 = vpop.xlane.xlu2 %995  ;;  %vm1027_vm1 = vmor %vm1025_vm0, %vm1026_vm15 }
 0x7b6   :  { %v1021_v43 = vmul.f32 %v2982_v40, %v1020_v41  ;;  %v998_v44 = vmul.f32 %v996_v42, %v3396_v20 }
 0x7b7   :  { %v1006_v45 = vpop.xlane.xlu1 %1005 }
 0x7b8   :  { %v1022_v46 = vmul.f32 0.5, %v1021_v43  ;;  %v1010_v47 = vmul.f32 %v998_v44, %v998_v44  ;;  %v1008_v48 = vmul.f32 %v1006_v45, %v3396_v20  ;;  %v1016_v5 = vsub.f32 %v988_v24, %v998_v44 }
 0x7ba   :  { %v1023_v49 = vsub.f32 1.5, %v1022_v46  ;;  %v1012_v50 = vsub.f32 %v1008_v48, %v1010_v47 }
 0x7bc   :  { %v1024_v51 = vmul.f32 %v2982_v40, %v1023_v49  ;;  %v1014_v52 = vmax.f32 %v1012_v50, 0.0 }
 0x7be   :  { %v1028_v55 = vsel %vm1027_vm1, %v2982_v40, %v1024_v51  ;;  %v1018_v56 = vadd.f32 1e-05, %v1014_v52 }
 0x7bf   :  { %v1039_v57 = vmul.f32 %v1028_v55, %v1015_v53 }
 0x7c0   :  { %2983 = vrsqrt.f32 %v1018_v56  ;;  %vm1035_vm3 = vweird.f32 %v1018_v56 }
 0x7c1   :  { %v1042_v60 = vmul.f32 %v2927_v54, %v1039_v57 }
 0x7c3   :  { %v3467_v61 = vadd.f32 %v2928_v58, %v1042_v60 }
 0x7c5   :  { %2774 = vmatmul.msk.f32.vlgmr.msra.gmra.mxu3 %vm95_vm4, %v3467_v61 }
 0x7c6   :  { %v2984_v62 = vpop.eup %2983 }
 0x7c7   :  { %v1030_v0 = vmul.f32 %v2984_v62, %v1018_v56  ;;  %vm1036_vm2 = vweird.f32 %v2984_v62 }
 0x7c8   :  { %vm1037_vm8 = vmor %vm1035_vm3, %vm1036_vm2 }
 0x7c9   :  { %v1031_v1 = vmul.f32 %v2984_v62, %v1030_v0 }
 0x7cb   :  { %v1032_v2 = vmul.f32 0.5, %v1031_v1 }
 0x7cd   :  { %v1033_v3 = vsub.f32 1.5, %v1032_v2 }
 0x7cf   :  { %v1034_v4 = vmul.f32 %v2984_v62, %v1033_v3 }
 0x7d1   :  { %v1038_v6 = vsel %vm1037_vm8, %v2984_v62, %v1034_v4 }
 0x7d2   :  { %v1040_v7 = vmul.f32 %v1038_v6, %v1016_v5 }
 0x7d4   :  { %v1043_v8 = vmul.f32 %v2927_v54, %v1040_v7 }
 0x7d6   :  { %v3471_v9 = vadd.f32 %v2928_v58, %v1043_v8 }
 0x7d8   :  { %2775 = vmatmul.msk.f32.gmra.mxu3 %vm95_vm4, %v3471_v9 }
 0x848   :  { %v3475_v10 = vpop.f32.mrf.mxu3 }
 0x849   :  { %1134 = vrot.lane.b32.xlu0 %v3475_v10, %s3093_s30  ;;  %1136 = vrot.lane.b32.xlu2 %v3475_v10, %s3098_s16 }
 0x84a   :  { %1081 = vrot.lane.b32.xlu1 %v3475_v10, %s3096_s14 }
 0x852   :  { %1192 = vrot.lane.b32.xlu1 %v3475_v10, %s3099_s17 }
 0x85b   :  { %v3485_v11 = vpop.f32.mrf.mxu3 }
 0x85c   :  { %1220 = vrot.lane.b32.xlu1 %v3485_v11, %s3099_s17  ;;  %1164 = vrot.lane.b32.xlu2 %v3485_v11, %s3098_s16  ;;  %v3535_v51 = vpack.i.bf16 %v3485_v11, %v3475_v10 }
 0x85d   :  { %1108 = vrot.lane.b32.xlu0 %v3485_v11, %s3096_s14 }
 0x864   :  { %1190 = vrot.lane.b32.xlu1 %v3475_v10, %s3094_s12  ;;  %1276 = vrot.lane.b32.xlu2 %v3485_v11, %s3097_s15 }
 0x865   :  { %1162 = vrot.lane.b32.xlu0 %v3485_v11, %s3093_s30 }
 0x86c   :  { %1274 = vrot.lane.b32.xlu2 %v3485_v11, %s3095_s13 }
 0x86d   :  { %1218 = vrot.lane.b32.xlu0 %v3485_v11, %s3094_s12 }
 0x874   :  { %1246 = vrot.lane.b32.xlu2 %v3475_v10, %s3095_s13 }
 0x875   :  { %1248 = vrot.lane.b32.xlu0 %v3475_v10, %s3097_s15 }
 0x8a3   :  { %v1137_v12 = vpop.permute.xlu2 %1136 }
 0x8a4   :  { %2780 = vmatpush.xpose.msk.msrb.mxu1 %vm256_vm5, %v1137_v12 }
 0x8b6   :  { %v1165_v13 = vpop.permute.xlu2 %1164 }
 0x8b7   :  { %2782 = vmatpush.xpose.msk.msrb.mxu3 %vm256_vm5, %v1165_v13 }
 0x8bb   :  { %v1135_v14 = vpop.permute.xlu0 %1134 }
 0x8bc   :  { %v1082_v15 = vpop.permute.xlu1 %1081  ;;  %2781 = vmatmul.msk.f32.vlgmr.msrb.gmra.mxu1 %vm256_vm5, %v1135_v14 }
 0x8bd   :  { %2776 = vmatpush.xpose.msk.msra.mxu0 %vm256_vm5, %v1082_v15 }
 0x8be   :  { %v1277_v16 = vpop.permute.xlu2 %1276 }
 0x8bf   :  { %2790 = vmatpush.xpose.msk.msra.mxu3 %vm256_vm5, %v1277_v16 }
 0x8c0   :  { %2777 = vmatmul.msk.f32.vlgmr.msra.gmra.mxu0 %vm256_vm5, %v3475_v10 }
 0x8c4   :  { %v1193_v17 = vpop.permute.xlu1 %1192 }
 0x8c5   :  { %2784 = vmatpush.xpose.msk.msrb.mxu0 %vm256_vm5, %v1193_v17 }
 0x8c6   :  { %v1275_v23 = vpop.permute.xlu2 %1274 }
 0x8ce   :  { %v1221_v18 = vpop.permute.xlu1 %1220  ;;  %v1247_v26 = vpop.permute.xlu2 %1246 }
 0x8cf   :  { %v1109_v19 = vpop.permute.xlu0 %1108 }
 0x8d0   :  { %2778 = vmatpush.xpose.msk.msrb.mxu2 %vm256_vm5, %v1109_v19 }
 0x8d3   :  { %2779 = vmatmul.msk.f32.vlgmr.msrb.gmra.mxu2 %vm256_vm5, %v3485_v11 }
 0x8d4   :  { %2786 = vmatpush.xpose.msk.msra.mxu2 %vm256_vm5, %v1221_v18 }
 0x8d6   :  { %v1191_v21 = vpop.permute.xlu1 %1190 }
 0x8d7   :  { %v1163_v22 = vpop.permute.xlu0 %1162  ;;  %2785 = vmatmul.msk.f32.vlgmr.msrb.gmra.mxu0 %vm256_vm5, %v1191_v21 }
 0x8d8   :  { %2783 = vmatmul.msk.f32.vlgmr.msrb.gmra.mxu3 %vm256_vm5, %v1163_v22 }
 0x8df   :  { %v1219_v24 = vpop.permute.xlu0 %1218 }
 0x8e0   :  { %2787 = vmatmul.msk.f32.vlgmr.msra.gmra.mxu2 %vm256_vm5, %v1219_v24  ;;  %2791 = vmatmul.msk.f32.vlgmr.msra.gmra.mxu3 %vm256_vm5, %v1275_v23 }
 0x8e7   :  { %v1249_v25 = vpop.permute.xlu0 %1248 }
 0x8e8   :  { %2788 = vmatpush.xpose.msk.msra.mxu1 %vm256_vm5, %v1249_v25 }
 0x8eb   :  { %2789 = vmatmul.msk.f32.vlgmr.msra.gmra.mxu1 %vm256_vm5, %v1247_v26 }
 0x939   :  { %v1159_v27 = vpop.f32.mrf.mxu1 }
 0x93a   :  { %v1303_v28 = vmul.f32 0.35355338, %v1159_v27 }
 0x93c   :  { %v1313_v29 = vsel %vm256_vm5, %v1303_v28, -inf }
 0x93d   :  { %v1104_v30 = vpop.f32.mrf.mxu0  ;;  %1314 = vmax.xlane.f32.xlu1 %v1313_v29 }
 0x93e   :  { %v1302_v31 = vmul.f32 0.35355338, %v1104_v30 }
 0x940   :  { %v1310_v32 = vsel %vm256_vm5, %v1302_v31, -inf }
 0x941   :  { %1311 = vmax.xlane.f32.xlu0 %v1310_v32 }
 0x954   :  { %v1215_v33 = vpop.f32.mrf.mxu0 }
 0x955   :  { %v1304_v34 = vmul.f32 0.35355338, %v1215_v33 }
 0x956   :  { %v1131_v36 = vpop.f32.mrf.mxu2 }
 0x957   :  { %v1316_v35 = vsel %vm256_vm5, %v1304_v34, -inf  ;;  %v1306_v49 = vmul.f32 0.35355338, %v1131_v36 }
 0x958   :  { %1317 = vmax.xlane.f32.xlu1 %v1316_v35 }
 0x959   :  { %v1322_v50 = vsel %vm256_vm5, %v1306_v49, -inf }
 0x95b   :  { %v1187_v37 = vpop.f32.mrf.mxu3 }
 0x95c   :  { %v1307_v38 = vmul.f32 0.35355338, %v1187_v37 }
 0x95e   :  { %v1325_v39 = vsel %vm256_vm5, %v1307_v38, -inf }
 0x95f   :  { %1326 = vmax.xlane.f32.xlu0 %v1325_v39 }
 0x963   :  { %v1243_v40 = vpop.f32.mrf.mxu2  ;;  %v1299_v41 = vpop.f32.mrf.mxu3 }
 0x964   :  { %v1308_v42 = vmul.f32 0.35355338, %v1243_v40  ;;  %v1309_v43 = vmul.f32 0.35355338, %v1299_v41 }
 0x966   :  { %v1331_v44 = vsel %vm256_vm5, %v1309_v43, -inf  ;;  %v1328_v45 = vsel %vm256_vm5, %v1308_v42, -inf }
 0x967   :  { %1332 = vmax.xlane.f32.xlu1 %v1331_v44  ;;  %1329 = vmax.xlane.f32.xlu0 %v1328_v45 }
 0x968   :  { %v1271_v46 = vpop.f32.mrf.mxu1 }
 0x969   :  { %v1305_v47 = vmul.f32 0.35355338, %v1271_v46 }
 0x96b   :  { %v1319_v48 = vsel %vm256_vm5, %v1305_v47, -inf }
 0x96c   :  { %1320 = vmax.xlane.f32.xlu2 %v1319_v48 }
 0x974   :  { %1323 = vmax.xlane.f32.xlu2 %v1322_v50 }
 0x98c   :  { %2880 = vrot.lane.b32.xlu2 %v3535_v51, %s3104_s23  ;;  %s3108_s23 = smov [#allocation2]  }
 0x9b0   :  { %v1315_v52 = vpop.xlane.xlu1 %1314 }
 0x9b1   :  { %v1335_v53 = vsub.f32 %v1303_v28, %v1315_v52 }
 0x9b3   :  { %v1344_v54 = vmul.f32 1.442695, %v1335_v53 }
 0x9b4   :  { %v1312_v55 = vpop.xlane.xlu0 %1311 }
 0x9b5   :  { %2985 = vpow2.f32 %v1344_v54  ;;  %v1334_v56 = vsub.f32 %v1302_v31, %v1312_v55 }
 0x9b7   :  { %v1342_v57 = vmul.f32 1.442695, %v1334_v56 }
 0x9b9   :  { %2987 = vpow2.f32 %v1342_v57 }
 0x9bb   :  { %v3538_v58 = vpop.eup %2985 }
 0x9bc   :  { %v1361_v60 = vsel %vm256_vm5, %v3538_v58, 0.0 }
 0x9bd   :  { %1362 = vadd.xlane.f32.xlu0 %v1361_v60 }
 0x9bf   :  { %v2988_v62 = vpop.eup %2987 }
 0x9c0   :  { %v1358_v0 = vsel %vm256_vm5, %v2988_v62, 0.0 }
 0x9c1   :  { %1359 = vadd.xlane.f32.xlu2 %v1358_v0 }
 0x9cb   :  { %v1318_v1 = vpop.xlane.xlu1 %1317 }
 0x9cc   :  { %v1336_v2 = vsub.f32 %v1304_v34, %v1318_v1 }
 0x9ce   :  { %v1346_v3 = vmul.f32 1.442695, %v1336_v2 }
 0x9d0   :  { %2989 = vpow2.f32 %v1346_v3 }
 0x9d2   :  { %v1327_v4 = vpop.xlane.xlu0 %1326 }
 0x9d3   :  { %v1339_v5 = vsub.f32 %v1307_v38, %v1327_v4 }
 0x9d5   :  { %v1352_v6 = vmul.f32 1.442695, %v1339_v5  ;;  %v1866_v5 = vld [vmem:[%s3923_s3 + $0xf0] sm:$0xff] }
 0x9d6   :  { %v3543_v7 = vpop.eup %2989 }
 0x9d7   :  { %2991 = vpow2.f32 %v1352_v6  ;;  %v1364_v8 = vsel %vm256_vm5, %v3543_v7, 0.0 }
 0x9d8   :  { %1365 = vadd.xlane.f32.xlu0 %v1364_v8  ;;  %v1864_v8 = vld [vmem:[%s3923_s3 + $0xe0] sm:$0xff] }
 0x9da   :  { %v1330_v10 = vpop.xlane.xlu0 %1329  ;;  %v1333_v11 = vpop.xlane.xlu1 %1332 }
 0x9db   :  { %v1340_v12 = vsub.f32 %v1308_v42, %v1330_v10  ;;  %v1341_v15 = vsub.f32 %v1309_v43, %v1333_v11 }
 0x9dd   :  { %v3547_v13 = vpop.eup %2991  ;;  %v1354_v14 = vmul.f32 1.442695, %v1340_v12  ;;  %v1356_v19 = vmul.f32 1.442695, %v1341_v15  ;;  %v1863_v12 = vld [vmem:[%s3923_s3 + $0xd8] sm:$0xff] }
 0x9de   :  { %v1373_v16 = vsel %vm256_vm5, %v3547_v13, 0.0 }
 0x9df   :  { %v1321_v17 = vpop.xlane.xlu2 %1320  ;;  %1374 = vadd.xlane.f32.xlu2 %v1373_v16  ;;  %2993 = vpow2.f32 %v1354_v14 }
 0x9e0   :  { %v1337_v18 = vsub.f32 %v1305_v47, %v1321_v17 }
 0x9e2   :  { %v1348_v21 = vmul.f32 1.442695, %v1337_v18 }
 0x9e4   :  { %2995 = vpow2.f32 %v1348_v21 }
 0x9e5   :  { %v2994_v22 = vpop.eup %2993  ;;  %2997 = vpow2.f32 %v1356_v19 }
 0x9e6   :  { %v1376_v24 = vsel %vm256_vm5, %v2994_v22, 0.0 }
 0x9e7   :  { %v1324_v23 = vpop.xlane.xlu2 %1323  ;;  %1377 = vadd.xlane.f32.xlu0 %v1376_v24  ;;  %v1638_v24 = vld [vmem:[%s3923_s3 + $0xa8] sm:$0xff] }
 0x9e8   :  { %v1338_v25 = vsub.f32 %v1306_v49, %v1324_v23  ;;  %v1639_v23 = vld [vmem:[%s3923_s3 + $0xb0] sm:$0xff] }
 0x9ea   :  { %v3552_v26 = vpop.eup %2995  ;;  %v1350_v27 = vmul.f32 1.442695, %v1338_v25  ;;  %v1637_v25 = vld [vmem:[%s3923_s3 + $0xa0] sm:$0xff] }
 0x9eb   :  { %v1367_v28 = vsel %vm256_vm5, %v3552_v26, 0.0  ;;  %v3556_v29 = vpop.eup %2997 }
 0x9ec   :  { %2999 = vpow2.f32 %v1350_v27  ;;  %1368 = vadd.xlane.f32.xlu1 %v1367_v28  ;;  %v1379_v31 = vsel %vm256_vm5, %v3556_v29, 0.0 }
 0x9ef   :  { %v2881_v30 = vpop.permute.xlu2 %2880  ;;  %1380 = vadd.xlane.f32.xlu0 %v1379_v31 }
 0x9f0   :  { %v2883_v32 = vunpack.i.h.bf16 %v2881_v30  ;;  %v2882_v33 = vunpack.i.l.bf16 %v2881_v30 }
 0x9f2   :  { %v3000_v34 = vpop.eup %2999  ;;  %1419 = vmatpush.msra.mxu0 %v2882_v33  ;;  %1445 = vmatpush.msrb.mxu2 %v2883_v32 }
 0x9f3   :  { %v1370_v35 = vsel %vm256_vm5, %v3000_v34, 0.0 }
 0x9f4   :  { %1371 = vadd.xlane.f32.xlu1 %v1370_v35 }
 0x9f7   :  { %2895 = vrot.lane.b32.xlu2 %v3535_v51, %s3105_s24  ;;  %s2716_s24 = sshll.u32 %s3108_s23, 4  ;;  %s2717_s24 = int_to_ptr.vmem [resolvable:$true] %s2716_s24 }
 0xa03   :  { %2890 = vrot.lane.b32.xlu0 %v3535_v51, %s3106_s25 }
 0xa0d   :  { %2885 = vrot.lane.b32.xlu1 %v3535_v51, %s3107_s2 }
 0xa30   :  { %v1363_v39 = vpop.xlane.xlu0 %1362 }
 0xa34   :  { %v1360_v36 = vpop.xlane.xlu2 %1359 }
 0xa35   :  { %3001 = vrcp.f32 %v1360_v36 }
 0xa3b   :  { %v3002_v37 = vpop.eup %3001 }
 0xa3c   :  { %v1390_v38 = vmul.f32 %v3002_v37, %v2988_v62 }
 0xa3e   :  { %2792 = vmatmul.msk.f32.vlgmr.msra.gmra.mxu0 %vm256_vm5, %v1390_v38 }
 0xa4b   :  { %v1366_v40 = vpop.xlane.xlu0 %1365 }
 0xa52   :  { %v1375_v49 = vpop.xlane.xlu2 %1374 }
 0xa5a   :  { %v1378_v42 = vpop.xlane.xlu0 %1377  ;;  %v2896_v57 = vpop.permute.xlu2 %2895 }
 0xa5b   :  { %v2898_v3 = vunpack.i.h.bf16 %v2896_v57  ;;  %v2897_v4 = vunpack.i.l.bf16 %v2896_v57 }
 0xa5f   :  { %v1369_v41 = vpop.xlane.xlu1 %1368 }
 0xa62   :  { %v1381_v45 = vpop.xlane.xlu0 %1380 }
 0xa67   :  { %v1372_v43 = vpop.xlane.xlu1 %1371 }
 0xa68   :  { %3003 = vrcp.f32 %v1372_v43 }
 0xa69   :  { %3005 = vrcp.f32 %v1366_v40 }
 0xa6a   :  { %3007 = vrcp.f32 %v1378_v42 }
 0xa6b   :  { %3009 = vrcp.f32 %v1363_v39  ;;  %v2929_v39 = vld [vmem:[%s3927_s7 + $0x9] ss:$0 sm:$0xff] }
 0xa6c   :  { %3011 = vrcp.f32 %v1375_v49 }
 0xa6d   :  { %3013 = vrcp.f32 %v1369_v41 }
 0xa6e   :  { %v3004_v44 = vpop.eup %3003  ;;  %3015 = vrcp.f32 %v1381_v45 }
 0xa6f   :  { %v1394_v46 = vmul.f32 %v3004_v44, %v3000_v34  ;;  %v3006_v47 = vpop.eup %3005 }
 0xa70   :  { %v3008_v48 = vpop.eup %3007  ;;  %v1392_v53 = vmul.f32 %v3006_v47, %v3543_v7 }
 0xa71   :  { %2793 = vmatmul.msk.f32.vlgmr.msrb.gmra.mxu2 %vm256_vm5, %v1394_v46  ;;  %v1396_v54 = vmul.f32 %v3008_v48, %v2994_v22  ;;  %v3010_v55 = vpop.eup %3009 }
 0xa72   :  { %v3012_v56 = vpop.eup %3011  ;;  %v1391_v1 = vmul.f32 %v3010_v55, %v3538_v58  ;;  %v1865_v58 = vld [vmem:[%s3923_s3 + $0xe8] sm:$0xff] }
 0xa73   :  { %v1395_v2 = vmul.f32 %v3012_v56, %v3547_v13  ;;  %v3014_v6 = vpop.eup %3013  ;;  %v3065_v13 = vld [vmem:[%s3927_s7 + $0x2] ss:$0 sm:$0xff] }
 0xa74   :  { %v3016_v7 = vpop.eup %3015  ;;  %v1393_v10 = vmul.f32 %v3014_v6, %v3552_v26  ;;  %v3593_v14 = vadd.f32 %v3065_v13, %v3282_v59  ;;  %v3598_v15 = vadd.f32 %v3065_v13, %v3290_v63  ;;  %v1636_v26 = vld [vmem:[%s3923_s3 + $0x98] sm:$0xff]  ;;  %v1731_v56 = vld [vmem:[%s3924_s4 + $0x20] sm:$0xff]  ;;  %v1771_v6 = vld [vmem:[%s3923_s3 + $0xd0] sm:$0xff] }
 0xa75   :  { %v2891_v50 = vpop.permute.xlu0 %2890  ;;  %v1397_v11 = vmul.f32 %v3016_v7, %v3556_v29 }
 0xa76   :  { %v2893_v51 = vunpack.i.h.bf16 %v2891_v50  ;;  %v2892_v52 = vunpack.i.l.bf16 %v2891_v50 }
 0xa78   :  { %1523 = vmatpush.msrb.mxu0 %v2892_v52  ;;  %1549 = vmatpush.msra.mxu2 %v2893_v51  ;;  %v1734_v51 = vld [vmem:[%s3924_s4 + $0x38] sm:$0xff] }
 0xa79   :  { %2796 = vmatmul.msk.f32.vlgmr.msrb.gmra.mxu0 %vm256_vm5, %v1392_v53  ;;  %2797 = vmatmul.msk.f32.vlgmr.msra.gmra.mxu2 %vm256_vm5, %v1396_v54  ;;  %v1732_v53 = vld [vmem:[%s3924_s4 + $0x28] sm:$0xff] }
 0xa7a   :  { %1660 = vmatpush.msra.mxu0 %v1639_v23  ;;  %1755 = vmatpush.msrb.mxu2 %v1734_v51 }
 0xa7c   :  { %1661 = vmatpush.msra.mxu0 %v1638_v24 }
 0xa7e   :  { %1662 = vmatpush.msra.mxu0 %v1637_v25  ;;  %v2931_v25 = vld [vmem:[%s3927_s7 + $0xb] ss:$0 sm:$0xff] }
 0xa7f   :  { %v2886_v60 = vpop.permute.xlu1 %2885 }
 0xa80   :  { %v2888_v62 = vunpack.i.h.bf16 %v2886_v60  ;;  %v2887_v0 = vunpack.i.l.bf16 %v2886_v60  ;;  %1663 = vmatpush.msra.mxu0 %v1636_v26 }
 0xa82   :  { %1471 = vmatpush.msrb.mxu1 %v2887_v0  ;;  %1497 = vmatpush.msrb.mxu3 %v2888_v62 }
 0xa83   :  { %2794 = vmatmul.msk.f32.vlgmr.msrb.gmra.mxu1 %vm256_vm5, %v1391_v1  ;;  %2795 = vmatmul.msk.f32.vlgmr.msrb.gmra.mxu3 %vm256_vm5, %v1395_v2 }
 0xa84   :  { %1575 = vmatpush.msra.mxu1 %v2897_v4  ;;  %1601 = vmatpush.msra.mxu3 %v2898_v3 }
 0xa86   :  { %1885 = vmatpush.msrb.mxu3 %v1866_v5  ;;  %1792 = vmatpush.msrb.mxu1 %v1771_v6 }
 0xa88   :  { %1886 = vmatpush.msrb.mxu3 %v1865_v58 }
 0xa8a   :  { %1887 = vmatpush.msrb.mxu3 %v1864_v8 }
 0xa8b   :  { %2798 = vmatmul.msk.f32.vlgmr.msra.gmra.mxu1 %vm256_vm5, %v1393_v10  ;;  %2799 = vmatmul.msk.f32.vlgmr.msra.gmra.mxu3 %vm256_vm5, %v1397_v11 }
 0xa8c   :  { %1888 = vmatpush.msrb.mxu3 %v1863_v12 }
 0xa93   :  { %2806 = vmatmul.msk.f32.vlgmr.msrb.gmra.mxu3 %vm95_vm4, %v3593_v14 }
 0xa9b   :  { %2807 = vmatmul.msk.f32.gmra.mxu3 %vm95_vm4, %v3598_v15 }
 0xabb   :  { %v1421_v16 = vpop.f32.mrf.mxu0 }
 0xaf4   :  { %v1447_v17 = vpop.f32.mrf.mxu2 }
 0xaf6   :  { %v1525_v18 = vpop.f32.mrf.mxu0 }
 0xaf7   :  { %1616 = vrot.lane.b32.xlu2 %v1525_v18, %s3102_s1 }
 0xafc   :  { %v1551_v19 = vpop.f32.mrf.mxu2 }
 0xaff   :  { %1618 = vrot.lane.b32.xlu2 %v1551_v19, %s3102_s1 }
 0xb00   :  { %v1473_v21 = vpop.f32.mrf.mxu1 }
 0xb01   :  { %1608 = vrot.lane.b32.xlu1 %v1473_v21, %s3100_s18 }
 0xb06   :  { %v1499_v59 = vpop.f32.mrf.mxu3 }
 0xb07   :  { %1610 = vrot.lane.b32.xlu0 %v1499_v59, %s3100_s18 }
 0xb08   :  { %v1577_v22 = vpop.f32.mrf.mxu1 }
 0xb09   :  { %1624 = vrot.lane.b32.xlu1 %v1577_v22, %s3101_s19  ;;  %v2930_v22 = vld [vmem:[%s3927_s7 + $0xa] ss:$0 sm:$0xff] }
 0xb0e   :  { %v1603_v63 = vpop.f32.mrf.mxu3 }
 0xb11   :  { %1626 = vrot.lane.b32.xlu1 %v1603_v63, %s3101_s19 }
 0xb51   :  { %v1617_v28 = vpop.permute.xlu2 %1616 }
 0xb59   :  { %v1619_v35 = vpop.permute.xlu2 %1618 }
 0xb73   :  { %v1609_v27 = vpop.permute.xlu1 %1608 }
 0xb74   :  { %v1630_v29 = vsel %vm256_vm5, %v1421_v16, %v1609_v27 }
 0xb75   :  { %v1632_v31 = vsel %vm807_vm6, %v1630_v29, %v1617_v28 }
 0xb79   :  { %v1611_v33 = vpop.permute.xlu0 %1610 }
 0xb7a   :  { %v1631_v34 = vsel %vm256_vm5, %v1447_v17, %v1611_v33 }
 0xb7b   :  { %v1625_v30 = vpop.permute.xlu1 %1624  ;;  %v1633_v37 = vsel %vm807_vm6, %v1631_v34, %v1619_v35 }
 0xb7c   :  { %v1634_v32 = vsel %vm810_vm7, %v1632_v31, %v1625_v30 }
 0xb7d   :  { %2800 = vmatmul.msk.f32.vlgmr.msra.gmra.mxu0 %vm95_vm4, %v1634_v32 }
 0xb83   :  { %v1627_v36 = vpop.permute.xlu1 %1626 }
 0xb84   :  { %v1635_v38 = vsel %vm810_vm7, %v1633_v37, %v1627_v36  ;;  %v1770_v36 = vld [vmem:[%s3923_s3 + $0xc8] sm:$0xff]  ;;  %v1769_v37 = vld [vmem:[%s3923_s3 + $0xc0] sm:$0xff] }
 0xb85   :  { %2801 = vmatmul.msk.f32.gmra.mxu0 %vm95_vm4, %v1635_v38  ;;  %1793 = vmatpush.msrb.mxu1 %v1770_v36  ;;  %v1768_v38 = vld [vmem:[%s3923_s3 + $0xb8] sm:$0xff] }
 0xb87   :  { %1794 = vmatpush.msrb.mxu1 %v1769_v37 }
 0xb89   :  { %1795 = vmatpush.msrb.mxu1 %v1768_v38 }
 0xbfa   :  { %v1665_v40 = vpop.f32.mrf.mxu0 }
 0xbfb   :  { %v1666_v41 = vadd.f32 %v2929_v39, %v1665_v40 }
 0xbfd   :  { %v1671_v42 = vadd.f32 %v1666_v41, %v3467_v61 }
 0xbff   :  { %v1675_v43 = vsel %vm95_vm4, %v1671_v42, 0.0  ;;  %v1683_v44 = vmul.f32 %v1671_v42, %v1671_v42 }
 0xc00   :  { %1676 = vadd.xlane.f32.xlu0 %v1675_v43 }
 0xc01   :  { %v1685_v45 = vsel %vm95_vm4, %v1683_v44, 0.0 }
 0xc02   :  { %1686 = vadd.xlane.f32.xlu2 %v1685_v45  ;;  %v1668_v46 = vpop.f32.mrf.mxu0 }
 0xc03   :  { %v1669_v47 = vadd.f32 %v2929_v39, %v1668_v46  ;;  %v2932_v39 = vld [vmem:[%s3928_s8 + $0x1] ss:$0 sm:$0xff]  ;;  %v2933_v46 = vld [vmem:[%s3927_s7 + $0xe] ss:$0 sm:$0xff] }
 0xc05   :  { %v3635_v48 = vadd.f32 %v1669_v47, %v3471_v9  ;;  %v1733_v9 = vld [vmem:[%s3924_s4 + $0x30] sm:$0xff] }
 0xc06   :  { %1756 = vmatpush.msrb.mxu2 %v1733_v9 }
 0xc07   :  { %v1678_v49 = vsel %vm95_vm4, %v3635_v48, 0.0  ;;  %v1684_v50 = vmul.f32 %v3635_v48, %v3635_v48 }
 0xc08   :  { %1679 = vadd.xlane.f32.xlu1 %v1678_v49  ;;  %1757 = vmatpush.msrb.mxu2 %v1732_v53 }
 0xc09   :  { %v1688_v61 = vsel %vm95_vm4, %v1684_v50, 0.0 }
 0xc0a   :  { %1689 = vadd.xlane.f32.xlu0 %v1688_v61  ;;  %1758 = vmatpush.msrb.mxu2 %v1731_v56 }
 0xc73   :  { %v1677_v52 = vpop.xlane.xlu0 %1676 }
 0xc74   :  { %v1681_v54 = vmul.f32 %v1677_v52, %v3396_v20 }
 0xc75   :  { %v1687_v55 = vpop.xlane.xlu2 %1686 }
 0xc76   :  { %v1693_v57 = vmul.f32 %v1681_v54, %v1681_v54  ;;  %v1691_v60 = vmul.f32 %v1687_v55, %v3396_v20  ;;  %v1699_v21 = vsub.f32 %v1671_v42, %v1681_v54 }
 0xc78   :  { %v1695_v62 = vsub.f32 %v1691_v60, %v1693_v57  ;;  %v3696_v57 = vpop.f32.mrf.mxu3 }
 0xc7a   :  { %v1697_v0 = vmax.f32 %v1695_v62, 0.0  ;;  %v1899_v62 = vld [vmem:[%s3925_s5 + $0x38] sm:$0xff] }
 0xc7b   :  { %v1680_v1 = vpop.xlane.xlu1 %1679  ;;  %1918 = vmatpush.msrb.mxu0 %v1899_v62 }
 0xc7c   :  { %v1701_v2 = vadd.f32 1e-05, %v1697_v0  ;;  %v1682_v3 = vmul.f32 %v1680_v1, %v3396_v20  ;;  %v1898_v0 = vld [vmem:[%s3925_s5 + $0x30] sm:$0xff] }
 0xc7d   :  { %v1690_v4 = vpop.xlane.xlu0 %1689  ;;  %1919 = vmatpush.msrb.mxu0 %v1898_v0 }
 0xc7e   :  { %3017 = vrsqrt.f32 %v1701_v2  ;;  %v1694_v5 = vmul.f32 %v1682_v3, %v1682_v3  ;;  %v1692_v58 = vmul.f32 %v1690_v4, %v3396_v20  ;;  %vm1709_vm10 = vweird.f32 %v1701_v2 }
 0xc7f   :  { %v1700_v31 = vsub.f32 %v3635_v48, %v1682_v3 }
 0xc80   :  { %v1696_v7 = vsub.f32 %v1692_v58, %v1694_v5  ;;  %v3698_v60 = vpop.f32.mrf.mxu3  ;;  %v1896_v5 = vld [vmem:[%s3925_s5 + $0x20] sm:$0xff] }
 0xc82   :  { %v1698_v8 = vmax.f32 %v1696_v7, 0.0 }
 0xc84   :  { %v3018_v10 = vpop.eup %3017  ;;  %v1702_v12 = vadd.f32 1e-05, %v1698_v8 }
 0xc85   :  { %v1704_v11 = vmul.f32 %v3018_v10, %v1701_v2  ;;  %vm1710_vm9 = vweird.f32 %v3018_v10  ;;  %v1897_v2 = vld [vmem:[%s3925_s5 + $0x28] sm:$0xff] }
 0xc86   :  { %3019 = vrsqrt.f32 %v1702_v12  ;;  %vm1711_vm11 = vmor %vm1709_vm10, %vm1710_vm9  ;;  %vm1719_vm13 = vweird.f32 %v1702_v12  ;;  %1920 = vmatpush.msrb.mxu0 %v1897_v2 }
 0xc87   :  { %v1705_v13 = vmul.f32 %v3018_v10, %v1704_v11 }
 0xc88   :  { %1921 = vmatpush.msrb.mxu0 %v1896_v5 }
 0xc89   :  { %v1706_v16 = vmul.f32 0.5, %v1705_v13 }
 0xc8b   :  { %v1707_v17 = vsub.f32 1.5, %v1706_v16 }
 0xc8c   :  { %v3020_v18 = vpop.eup %3019 }
 0xc8d   :  { %v1708_v19 = vmul.f32 %v3018_v10, %v1707_v17  ;;  %v1714_v59 = vmul.f32 %v3020_v18, %v1702_v12  ;;  %vm1720_vm12 = vweird.f32 %v3020_v18 }
 0xc8e   :  { %vm1721_vm14 = vmor %vm1719_vm13, %vm1720_vm12 }
 0xc8f   :  { %v1712_v63 = vsel %vm1711_vm11, %v3018_v10, %v1708_v19  ;;  %v1715_v24 = vmul.f32 %v3020_v18, %v1714_v59 }
 0xc90   :  { %v1723_v23 = vmul.f32 %v1712_v63, %v1699_v21 }
 0xc91   :  { %v1716_v26 = vmul.f32 0.5, %v1715_v24 }
 0xc92   :  { %v1726_v27 = vmul.f32 %v2930_v22, %v1723_v23 }
 0xc93   :  { %v1717_v28 = vsub.f32 1.5, %v1716_v26 }
 0xc94   :  { %v1729_v29 = vadd.f32 %v2931_v25, %v1726_v27 }
 0xc95   :  { %v1718_v30 = vmul.f32 %v3020_v18, %v1717_v28 }
 0xc96   :  { %2802 = vmatmul.msk.f32.vlgmr.msrb.gmra.mxu2 %vm95_vm4, %v1729_v29 }
 0xc97   :  { %v1722_v32 = vsel %vm1721_vm14, %v3020_v18, %v1718_v30 }
 0xc98   :  { %v1724_v33 = vmul.f32 %v1722_v32, %v1700_v31 }
 0xc9a   :  { %v1727_v34 = vmul.f32 %v2930_v22, %v1724_v33  ;;  %v2935_v33 = vld [vmem:[%s3927_s7 + $0xd] ss:$0 sm:$0xff] }
 0xc9c   :  { %v1730_v35 = vadd.f32 %v2931_v25, %v1727_v34 }
 0xc9e   :  { %2803 = vmatmul.msk.f32.gmra.mxu2 %vm95_vm4, %v1730_v35 }
 0xd19   :  { %v1760_v40 = vpop.f32.mrf.mxu2 }
 0xd1a   :  { %v1761_v41 = vadd.f32 %v2932_v39, %v1760_v40 }
 0xd1c   :  { %v1766_v42 = vmax.f32 %v1761_v41, 0.0 }
 0xd1e   :  { %2804 = vmatmul.msk.f32.vlgmr.msrb.gmra.mxu1 %vm95_vm4, %v1766_v42 }
 0xd21   :  { %v1763_v43 = vpop.f32.mrf.mxu2 }
 0xd22   :  { %v1764_v44 = vadd.f32 %v2932_v39, %v1763_v43 }
 0xd24   :  { %v1767_v45 = vmax.f32 %v1764_v44, 0.0 }
 0xd26   :  { %2805 = vmatmul.msk.f32.gmra.mxu1 %vm95_vm4, %v1767_v45 }
 0xd9b   :  { %v1797_v47 = vpop.f32.mrf.mxu1 }
 0xd9c   :  { %v1798_v48 = vadd.f32 %v2933_v46, %v1797_v47 }
 0xd9e   :  { %v1803_v49 = vadd.f32 %v1798_v48, %v1729_v29  ;;  %v2934_v29 = vld [vmem:[%s3927_s7 + $0xc] ss:$0 sm:$0xff] }
 0xda0   :  { %v1807_v50 = vsel %vm95_vm4, %v1803_v49, 0.0  ;;  %v1815_v61 = vmul.f32 %v1803_v49, %v1803_v49 }
 0xda1   :  { %1808 = vadd.xlane.f32.xlu2 %v1807_v50 }
 0xda2   :  { %v1817_v51 = vsel %vm95_vm4, %v1815_v61, 0.0 }
 0xda3   :  { %1818 = vadd.xlane.f32.xlu1 %v1817_v51  ;;  %v1800_v9 = vpop.f32.mrf.mxu1 }
 0xda4   :  { %v1801_v52 = vadd.f32 %v2933_v46, %v1800_v9 }
 0xda6   :  { %v3689_v53 = vadd.f32 %v1801_v52, %v1730_v35 }
 0xda8   :  { %v1810_v54 = vsel %vm95_vm4, %v3689_v53, 0.0  ;;  %v1816_v55 = vmul.f32 %v3689_v53, %v3689_v53 }
 0xda9   :  { %1811 = vadd.xlane.f32.xlu0 %v1810_v54 }
 0xdaa   :  { %v1820_v56 = vsel %vm95_vm4, %v1816_v55, 0.0 }
 0xdab   :  { %1821 = vadd.xlane.f32.xlu2 %v1820_v56 }
 0xdbd   :  { %2009 = vrot.lane.b32.xlu0 %v3698_v60, %s3093_s30 }
 0xdc3   :  { %1981 = vrot.lane.b32.xlu2 %v3696_v57, %s3093_s30 }
 0xdcb   :  { %2121 = vrot.lane.b32.xlu2 %v3698_v60, %s3095_s13 }
 0xe14   :  { %v1809_v1 = vpop.xlane.xlu2 %1808 }
 0xe15   :  { %v1813_v3 = vmul.f32 %v1809_v1, %v3396_v20 }
 0xe16   :  { %v1819_v4 = vpop.xlane.xlu1 %1818 }
 0xe17   :  { %v1825_v58 = vmul.f32 %v1813_v3, %v1813_v3  ;;  %v1823_v6 = vmul.f32 %v1819_v4, %v3396_v20  ;;  %v1831_v27 = vsub.f32 %v1803_v49, %v1813_v3 }
 0xe19   :  { %v1827_v7 = vsub.f32 %v1823_v6, %v1825_v58 }
 0xe1b   :  { %v1829_v8 = vmax.f32 %v1827_v7, 0.0 }
 0xe1c   :  { %v1812_v11 = vpop.xlane.xlu0 %1811 }
 0xe1d   :  { %v1833_v10 = vadd.f32 1e-05, %v1829_v8  ;;  %v1814_v12 = vmul.f32 %v1812_v11, %v3396_v20 }
 0xe1e   :  { %v1822_v13 = vpop.xlane.xlu2 %1821 }
 0xe1f   :  { %3021 = vrsqrt.f32 %v1833_v10  ;;  %v1826_v16 = vmul.f32 %v1814_v12, %v1814_v12  ;;  %v1824_v17 = vmul.f32 %v1822_v13, %v3396_v20  ;;  %vm1841_vm0 = vweird.f32 %v1833_v10 }
 0xe20   :  { %v1832_v39 = vsub.f32 %v3689_v53, %v1814_v12 }
 0xe21   :  { %v1828_v18 = vsub.f32 %v1824_v17, %v1826_v16 }
 0xe23   :  { %v1830_v19 = vmax.f32 %v1828_v18, 0.0 }
 0xe25   :  { %v3022_v21 = vpop.eup %3021  ;;  %v1834_v22 = vadd.f32 1e-05, %v1830_v19 }
 0xe26   :  { %v1836_v59 = vmul.f32 %v3022_v21, %v1833_v10  ;;  %vm1842_vm15 = vweird.f32 %v3022_v21  ;;  %v1982_v46 = vpop.permute.xlu2 %1981 }
 0xe27   :  { %3023 = vrsqrt.f32 %v1834_v22  ;;  %vm1843_vm1 = vmor %vm1841_vm0, %vm1842_vm15  ;;  %vm1851_vm3 = vweird.f32 %v1834_v22 }
 0xe28   :  { %v1837_v63 = vmul.f32 %v3022_v21, %v1836_v59 }
 0xe2a   :  { %v1838_v23 = vmul.f32 0.5, %v1837_v63 }
 0xe2c   :  { %v1839_v24 = vsub.f32 1.5, %v1838_v23 }
 0xe2d   :  { %v3024_v25 = vpop.eup %3023 }
 0xe2e   :  { %v1840_v26 = vmul.f32 %v3022_v21, %v1839_v24  ;;  %v1846_v28 = vmul.f32 %v3024_v25, %v1834_v22  ;;  %vm1852_vm2 = vweird.f32 %v3024_v25  ;;  %v2122_v49 = vpop.permute.xlu2 %2121 }
 0xe2f   :  { %vm1853_vm8 = vmor %vm1851_vm3, %vm1852_vm2  ;;  %v2010_v48 = vpop.permute.xlu0 %2009 }
 0xe30   :  { %v1844_v30 = vsel %vm1843_vm1, %v3022_v21, %v1840_v26  ;;  %v1847_v32 = vmul.f32 %v3024_v25, %v1846_v28 }
 0xe31   :  { %v1855_v31 = vmul.f32 %v1844_v30, %v1831_v27 }
 0xe32   :  { %v1848_v34 = vmul.f32 0.5, %v1847_v32 }
 0xe33   :  { %v1858_v35 = vmul.f32 %v2934_v29, %v1855_v31 }
 0xe34   :  { %v1849_v36 = vsub.f32 1.5, %v1848_v34 }
 0xe35   :  { %v1861_v37 = vadd.f32 %v2935_v33, %v1858_v35 }
 0xe36   :  { %v1850_v38 = vmul.f32 %v3024_v25, %v1849_v36 }
 0xe37   :  { %2808 = vmatmul.msk.f32.vlgmr.msrb.gmra.mxu0 %vm95_vm4, %v1861_v37 }
 0xe38   :  { %v1854_v40 = vsel %vm1853_vm8, %v3024_v25, %v1850_v38 }
 0xe39   :  { %v1856_v41 = vmul.f32 %v1854_v40, %v1832_v39 }
 0xe3b   :  { %v1859_v42 = vmul.f32 %v2934_v29, %v1856_v41 }
 0xe3d   :  { %v1862_v43 = vadd.f32 %v2935_v33, %v1859_v42 }
 0xe3f   :  { %2809 = vmatmul.msk.f32.gmra.mxu0 %vm95_vm4, %v1862_v43 }
 0xeb4   :  { %v3731_v44 = vpop.f32.mrf.mxu0 }
 0xeb5   :  { %1983 = vrot.lane.b32.xlu1 %v3731_v44, %s3093_s30  ;;  %2810 = vmatpush.xpose.msk.msra.mxu2 %vm256_vm5, %v3731_v44 }
 0xeb8   :  { %2811 = vmatmul.msk.f32.vlgmr.msra.gmra.mxu2 %vm256_vm5, %v3696_v57 }
 0xebc   :  { %v3739_v45 = vpop.f32.mrf.mxu0 }
 0xebd   :  { %2039 = vrot.lane.b32.xlu1 %v3731_v44, %s3094_s12  ;;  %2123 = vrot.lane.b32.xlu2 %v3739_v45, %s3095_s13  ;;  %v2899_v31 = vpack.i.bf16 %v3739_v45, %v3731_v44 }
 0xebe   :  { %2011 = vrot.lane.b32.xlu0 %v3739_v45, %s3093_s30  ;;  %2812 = vmatpush.xpose.msk.msra.mxu1 %vm256_vm5, %v3739_v45 }
 0xec1   :  { %2813 = vmatmul.msk.f32.vlgmr.msra.gmra.mxu1 %vm256_vm5, %v3698_v60 }
 0xec5   :  { %2067 = vrot.lane.b32.xlu1 %v3739_v45, %s3094_s12  ;;  %2093 = vrot.lane.b32.xlu2 %v3696_v57, %s3095_s13 }
 0xec6   :  { %2065 = vrot.lane.b32.xlu0 %v3698_v60, %s3094_s12 }
 0xecd   :  { %2037 = vrot.lane.b32.xlu1 %v3696_v57, %s3094_s12 }
 0xece   :  { %2095 = vrot.lane.b32.xlu0 %v3731_v44, %s3095_s13 }
 0xf17   :  { %v2124_v51 = vpop.permute.xlu2 %2123 }
 0xf1f   :  { %v2094_v1 = vpop.permute.xlu2 %2093 }
 0xf27   :  { %v1984_v47 = vpop.permute.xlu1 %1983 }
 0xf28   :  { %2814 = vmatpush.xpose.msk.msra.mxu3 %vm256_vm5, %v1984_v47 }
 0xf2b   :  { %2815 = vmatmul.msk.f32.vlgmr.msra.gmra.mxu3 %vm256_vm5, %v1982_v46 }
 0xf2f   :  { %v2040_v50 = vpop.permute.xlu1 %2039 }
 0xf30   :  { %v2012_v61 = vpop.permute.xlu0 %2011  ;;  %2818 = vmatpush.xpose.msk.msrb.mxu1 %vm256_vm5, %v2040_v50 }
 0xf31   :  { %2816 = vmatpush.xpose.msk.msrb.mxu2 %vm256_vm5, %v2012_v61 }
 0xf34   :  { %2817 = vmatmul.msk.f32.vlgmr.msrb.gmra.mxu2 %vm256_vm5, %v2010_v48 }
 0xf35   :  { %2824 = vmatpush.xpose.msk.msra.mxu2 %vm256_vm5, %v2124_v51 }
 0xf37   :  { %v2068_v9 = vpop.permute.xlu1 %2067 }
 0xf38   :  { %v2066_v52 = vpop.permute.xlu0 %2065  ;;  %2820 = vmatpush.xpose.msk.msrb.mxu3 %vm256_vm5, %v2068_v9 }
 0xf3b   :  { %v1952_v53 = vpop.f32.mrf.mxu2  ;;  %2821 = vmatmul.msk.f32.vlgmr.msrb.gmra.mxu3 %vm256_vm5, %v2066_v52 }
 0xf3c   :  { %v2149_v54 = vmul.f32 0.35355338, %v1952_v53  ;;  %2825 = vmatmul.msk.f32.vlgmr.msra.gmra.mxu2 %vm256_vm5, %v2122_v49 }
 0xf3e   :  { %v2157_v55 = vsel %vm256_vm5, %v2149_v54, -inf  ;;  %v1978_v56 = vpop.f32.mrf.mxu1 }
 0xf3f   :  { %v2038_v57 = vpop.permute.xlu1 %2037  ;;  %2158 = vmax.xlane.f32.xlu0 %v2157_v55  ;;  %v2153_v60 = vmul.f32 0.35355338, %v1978_v56 }
 0xf40   :  { %v2096_v62 = vpop.permute.xlu0 %2095  ;;  %2819 = vmatmul.msk.f32.vlgmr.msrb.gmra.mxu1 %vm256_vm5, %v2038_v57 }
 0xf41   :  { %2822 = vmatpush.xpose.msk.msra.mxu0 %vm256_vm5, %v2096_v62  ;;  %v2169_v0 = vsel %vm256_vm5, %v2153_v60, -inf }
 0xf42   :  { %2170 = vmax.xlane.f32.xlu2 %v2169_v0 }
 0xf44   :  { %2823 = vmatmul.msk.f32.vlgmr.msra.gmra.mxu0 %vm256_vm5, %v2094_v1 }
 0xfae   :  { %v2006_v2 = vpop.f32.mrf.mxu3 }
 0xfaf   :  { %v2150_v24 = vmul.f32 0.35355338, %v2006_v2 }
 0xfb1   :  { %v2160_v26 = vsel %vm256_vm5, %v2150_v24, -inf }
 0xfb2   :  { %v2159_v12 = vpop.xlane.xlu0 %2158 }
 0xfb3   :  { %v2181_v21 = vsub.f32 %v2149_v54, %v2159_v12 }
 0xfb5   :  { %v2171_v58 = vpop.xlane.xlu2 %2170  ;;  %v2189_v23 = vmul.f32 1.442695, %v2181_v21 }
 0xfb6   :  { %v2185_v10 = vsub.f32 %v2153_v60, %v2171_v58 }
 0xfb7   :  { %v2034_v3 = vpop.f32.mrf.mxu2 }
 0xfb8   :  { %v2154_v4 = vmul.f32 0.35355338, %v2034_v3  ;;  %v2197_v59 = vmul.f32 1.442695, %v2185_v10 }
 0xfba   :  { %v2172_v5 = vsel %vm256_vm5, %v2154_v4, -inf  ;;  %3025 = vpow2.f32 %v2197_v59 }
 0xfbb   :  { %2173 = vmax.xlane.f32.xlu0 %v2172_v5  ;;  %3027 = vpow2.f32 %v2189_v23 }
 0xfbd   :  { %v2062_v6 = vpop.f32.mrf.mxu1 }
 0xfbe   :  { %v2151_v7 = vmul.f32 0.35355338, %v2062_v6  ;;  %v2090_v8 = vpop.f32.mrf.mxu3 }
 0xfbf   :  { %v2155_v11 = vmul.f32 0.35355338, %v2090_v8  ;;  %v2146_v16 = vpop.f32.mrf.mxu2 }
 0xfc0   :  { %v2163_v13 = vsel %vm256_vm5, %v2151_v7, -inf  ;;  %v2156_v22 = vmul.f32 0.35355338, %v2146_v16  ;;  %v3026_v27 = vpop.eup %3025 }
 0xfc1   :  { %v2118_v17 = vpop.f32.mrf.mxu0  ;;  %2164 = vmax.xlane.f32.xlu2 %v2163_v13  ;;  %v2175_v18 = vsel %vm256_vm5, %v2155_v11, -inf  ;;  %v2217_v28 = vsel %vm256_vm5, %v3026_v27, 0.0  ;;  %v3028_v29 = vpop.eup %3027 }
 0xfc2   :  { %v2152_v19 = vmul.f32 0.35355338, %v2118_v17  ;;  %v2178_v25 = vsel %vm256_vm5, %v2156_v22, -inf  ;;  %v2205_v30 = vsel %vm256_vm5, %v3028_v29, 0.0 }
 0xfc3   :  { %2176 = vmax.xlane.f32.xlu0 %v2175_v18 }
 0xfc4   :  { %v2166_v63 = vsel %vm256_vm5, %v2152_v19, -inf }
 0xfc5   :  { %2167 = vmax.xlane.f32.xlu1 %v2166_v63 }
 0xfc9   :  { %2179 = vmax.xlane.f32.xlu2 %v2178_v25 }
 0xfcd   :  { %2161 = vmax.xlane.f32.xlu1 %v2160_v26 }
 0xfd1   :  { %2218 = vadd.xlane.f32.xlu2 %v2217_v28 }
 0xfd5   :  { %2206 = vadd.xlane.f32.xlu1 %v2205_v30 }
 0xfee   :  { %2900 = vrot.lane.b32.xlu1 %v2899_v31, %s3096_s14 }
0x102e   :  { %v2174_v32 = vpop.xlane.xlu0 %2173 }
0x102f   :  { %v2186_v33 = vsub.f32 %v2154_v4, %v2174_v32 }
0x1031   :  { %v2199_v34 = vmul.f32 1.442695, %v2186_v33 }
0x1033   :  { %3029 = vpow2.f32 %v2199_v34 }
0x1034   :  { %v2165_v35 = vpop.xlane.xlu2 %2164 }
0x1035   :  { %v2183_v36 = vsub.f32 %v2151_v7, %v2165_v35 }
0x1036   :  { %v2177_v44 = vpop.xlane.xlu0 %2176 }
0x1037   :  { %v2193_v37 = vmul.f32 1.442695, %v2183_v36  ;;  %v2187_v49 = vsub.f32 %v2155_v11, %v2177_v44 }
0x1038   :  { %v2168_v38 = vpop.xlane.xlu1 %2167 }
0x1039   :  { %v3030_v39 = vpop.eup %3029  ;;  %3031 = vpow2.f32 %v2193_v37  ;;  %v2184_v40 = vsub.f32 %v2152_v19, %v2168_v38  ;;  %v2201_v51 = vmul.f32 1.442695, %v2187_v49 }
0x103a   :  { %v2220_v41 = vsel %vm256_vm5, %v3030_v39, 0.0 }
0x103b   :  { %v2195_v42 = vmul.f32 1.442695, %v2184_v40  ;;  %2221 = vadd.xlane.f32.xlu1 %v2220_v41 }
0x103c   :  { %v2180_v9 = vpop.xlane.xlu2 %2179 }
0x103d   :  { %3033 = vpow2.f32 %v2195_v42  ;;  %v2188_v53 = vsub.f32 %v2156_v22, %v2180_v9 }
0x103f   :  { %v3787_v43 = vpop.eup %3031  ;;  %v2203_v55 = vmul.f32 1.442695, %v2188_v53 }
0x1040   :  { %v2162_v45 = vpop.xlane.xlu1 %2161  ;;  %v2211_v46 = vsel %vm256_vm5, %v3787_v43, 0.0 }
0x1041   :  { %v2182_v47 = vsub.f32 %v2150_v24, %v2162_v45  ;;  %2212 = vadd.xlane.f32.xlu0 %v2211_v46  ;;  %v2486_v45 = vld [vmem:[%s3923_s3 + $0x110] sm:$0xff]  ;;  %v2485_v46 = vld [vmem:[%s3923_s3 + $0x108] sm:$0xff] }
0x1043   :  { %v3791_v48 = vpop.eup %3033  ;;  %v2191_v50 = vmul.f32 1.442695, %v2182_v47  ;;  %v2484_v47 = vld [vmem:[%s3923_s3 + $0x100] sm:$0xff] }
0x1044   :  { %v2214_v61 = vsel %vm256_vm5, %v3791_v48, 0.0  ;;  %v2219_v60 = vpop.xlane.xlu2 %2218 }
0x1045   :  { %3035 = vpow2.f32 %v2191_v50  ;;  %2215 = vadd.xlane.f32.xlu2 %v2214_v61 }
0x1046   :  { %3037 = vpow2.f32 %v2201_v51 }
0x1047   :  { %3039 = vpow2.f32 %v2203_v55 }
0x1048   :  { %v2207_v62 = vpop.xlane.xlu1 %2206  ;;  %3041 = vrcp.f32 %v2219_v60 }
0x1049   :  { %3043 = vrcp.f32 %v2207_v62  ;;  %v2936_v62 = vld [vmem:[%s3927_s7 + $0xf] ss:$0 sm:$0xff] }
0x104b   :  { %v3036_v52 = vpop.eup %3035 }
0x104c   :  { %v2208_v54 = vsel %vm256_vm5, %v3036_v52, 0.0  ;;  %v3796_v56 = vpop.eup %3037 }
0x104d   :  { %2209 = vadd.xlane.f32.xlu0 %v2208_v54  ;;  %v2223_v57 = vsel %vm256_vm5, %v3796_v56, 0.0  ;;  %v3040_v0 = vpop.eup %3039 }
0x104e   :  { %v2226_v1 = vsel %vm256_vm5, %v3040_v0, 0.0  ;;  %v3042_v2 = vpop.eup %3041 }
0x104f   :  { %v3044_v3 = vpop.eup %3043  ;;  %v2241_v6 = vmul.f32 %v3042_v2, %v3026_v27 }
0x1050   :  { %v2237_v7 = vmul.f32 %v3044_v3, %v3028_v29 }
0x1054   :  { %2915 = vrot.lane.b32.xlu1 %v2899_v31, %s3097_s15 }
0x1055   :  { %2224 = vadd.xlane.f32.xlu0 %v2223_v57 }
0x105d   :  { %2905 = vrot.lane.b32.xlu2 %v2899_v31, %s3098_s16  ;;  %2227 = vadd.xlane.f32.xlu0 %v2226_v1 }
0x1060   :  { %v2901_v4 = vpop.permute.xlu1 %2900 }
0x1061   :  { %v2903_v5 = vunpack.i.h.bf16 %v2901_v4  ;;  %v2902_v58 = vunpack.i.l.bf16 %v2901_v4 }
0x1063   :  { %2266 = vmatpush.msra.mxu1 %v2902_v58  ;;  %2292 = vmatpush.msra.mxu3 %v2903_v5 }
0x1064   :  { %2826 = vmatmul.msk.f32.vlgmr.msra.gmra.mxu1 %vm256_vm5, %v2237_v7  ;;  %2827 = vmatmul.msk.f32.vlgmr.msra.gmra.mxu3 %vm256_vm5, %v2241_v6 }
0x1071   :  { %2910 = vrot.lane.b32.xlu0 %v2899_v31, %s3099_s17 }
0x10ae   :  { %v2222_v8 = vpop.xlane.xlu1 %2221 }
0x10af   :  { %3045 = vrcp.f32 %v2222_v8 }
0x10b4   :  { %v2213_v10 = vpop.xlane.xlu0 %2212 }
0x10b5   :  { %v3046_v12 = vpop.eup %3045 }
0x10b6   :  { %v2242_v19 = vmul.f32 %v3046_v12, %v3030_v39 }
0x10b8   :  { %v2216_v11 = vpop.xlane.xlu2 %2215 }
0x10c0   :  { %v2210_v13 = vpop.xlane.xlu0 %2209  ;;  %v2906_v16 = vpop.permute.xlu2 %2905 }
0x10c1   :  { %3047 = vrcp.f32 %v2210_v13  ;;  %v2908_v17 = vunpack.i.h.bf16 %v2906_v16  ;;  %v2907_v18 = vunpack.i.l.bf16 %v2906_v16  ;;  %v2579_v13 = vld [vmem:[%s3924_s4 + $0x48] sm:$0xff] }
0x10c2   :  { %3049 = vrcp.f32 %v2216_v11  ;;  %v2581_v11 = vld [vmem:[%s3924_s4 + $0x58] sm:$0xff] }
0x10c3   :  { %2318 = vmatpush.msrb.mxu0 %v2907_v18  ;;  %2344 = vmatpush.msrb.mxu2 %v2908_v17  ;;  %v2578_v18 = vld [vmem:[%s3924_s4 + $0x40] sm:$0xff] }
0x10c4   :  { %2829 = vmatmul.msk.f32.vlgmr.msrb.gmra.mxu2 %vm256_vm5, %v2242_v19 }
0x10c6   :  { %v2916_v21 = vpop.permute.xlu1 %2915 }
0x10c7   :  { %v3048_v59 = vpop.eup %3047  ;;  %v2918_v22 = vunpack.i.h.bf16 %v2916_v21  ;;  %v2917_v63 = vunpack.i.l.bf16 %v2916_v21 }
0x10c8   :  { %v2238_v23 = vmul.f32 %v3048_v59, %v3036_v52  ;;  %v2225_v24 = vpop.xlane.xlu0 %2224  ;;  %v3050_v25 = vpop.eup %3049 }
0x10c9   :  { %2422 = vmatpush.msra.mxu0 %v2917_v63  ;;  %2448 = vmatpush.msra.mxu2 %v2918_v22  ;;  %v2240_v26 = vmul.f32 %v3050_v25, %v3791_v48  ;;  %v2483_v48 = vld [vmem:[%s3923_s3 + $0xf8] sm:$0xff] }
0x10ca   :  { %2828 = vmatmul.msk.f32.vlgmr.msrb.gmra.mxu0 %vm256_vm5, %v2238_v23 }
0x10d0   :  { %v2228_v27 = vpop.xlane.xlu0 %2227 }
0x10d1   :  { %3051 = vrcp.f32 %v2228_v27 }
0x10d2   :  { %2832 = vmatmul.msk.f32.vlgmr.msra.gmra.mxu0 %vm256_vm5, %v2240_v26  ;;  %3053 = vrcp.f32 %v2213_v10 }
0x10d3   :  { %3055 = vrcp.f32 %v2225_v24 }
0x10d7   :  { %v3052_v28 = vpop.eup %3051 }
0x10d8   :  { %v2244_v29 = vmul.f32 %v3052_v28, %v3040_v0  ;;  %v3054_v30 = vpop.eup %3053  ;;  %v2618_v28 = vld [vmem:[%s3923_s3 + $0x130] sm:$0xff] }
0x10d9   :  { %v3056_v31 = vpop.eup %3055  ;;  %v2239_v35 = vmul.f32 %v3054_v30, %v3787_v43  ;;  %2639 = vmatpush.msrb.mxu0 %v2618_v28 }
0x10da   :  { %2833 = vmatmul.msk.f32.vlgmr.msra.gmra.mxu2 %vm256_vm5, %v2244_v29  ;;  %v2243_v36 = vmul.f32 %v3056_v31, %v3796_v56 }
0x10e1   :  { %v2268_v40 = vpop.f32.mrf.mxu1 }
0x10e3   :  { %v2911_v32 = vpop.permute.xlu0 %2910 }
0x10e4   :  { %v2913_v33 = vunpack.i.h.bf16 %v2911_v32  ;;  %v2912_v34 = vunpack.i.l.bf16 %v2911_v32 }
0x10e6   :  { %2370 = vmatpush.msrb.mxu1 %v2912_v34  ;;  %2396 = vmatpush.msrb.mxu3 %v2913_v33 }
0x10e7   :  { %2830 = vmatmul.msk.f32.vlgmr.msrb.gmra.mxu1 %vm256_vm5, %v2239_v35  ;;  %2831 = vmatmul.msk.f32.vlgmr.msrb.gmra.mxu3 %vm256_vm5, %v2243_v36  ;;  %v2294_v42 = vpop.f32.mrf.mxu3 }
0x10e8   :  { %2507 = vmatpush.msra.mxu1 %v2486_v45  ;;  %2602 = vmatpush.msra.mxu3 %v2581_v11  ;;  %v2938_v45 = vld [vmem:[%s3927_s7 + $0x11] ss:$0 sm:$0xff] }
0x10ea   :  { %2508 = vmatpush.msra.mxu1 %v2485_v46 }
0x10ec   :  { %2509 = vmatpush.msra.mxu1 %v2484_v47 }
0x10ee   :  { %2510 = vmatpush.msra.mxu1 %v2483_v48 }
0x1147   :  { %v2320_v37 = vpop.f32.mrf.mxu0  ;;  %v2346_v38 = vpop.f32.mrf.mxu2 }
0x1148   :  { %2457 = vrot.lane.b32.xlu0 %v2346_v38, %s3100_s18  ;;  %2455 = vrot.lane.b32.xlu2 %v2320_v37, %s3100_s18 }
0x114f   :  { %v2424_v39 = vpop.f32.mrf.mxu0 }
0x1150   :  { %2471 = vrot.lane.b32.xlu2 %v2424_v39, %s3101_s19 }
0x115d   :  { %v2450_v41 = vpop.f32.mrf.mxu2 }
0x115e   :  { %2473 = vrot.lane.b32.xlu2 %v2450_v41, %s3101_s19  ;;  %v2937_v41 = vld [vmem:[%s3927_s7 + $0x10] ss:$0 sm:$0xff] }
0x1164   :  { %v2372_v43 = vpop.f32.mrf.mxu1 }
0x1165   :  { %2463 = vrot.lane.b32.xlu1 %v2372_v43, %s3102_s1 }
0x116a   :  { %v2398_v44 = vpop.f32.mrf.mxu3 }
0x116d   :  { %2465 = vrot.lane.b32.xlu1 %v2398_v44, %s3102_s1 }
0x11a2   :  { %v2456_v49 = vpop.permute.xlu2 %2455 }
0x11a3   :  { %v2477_v50 = vsel %vm256_vm5, %v2268_v40, %v2456_v49 }
0x11aa   :  { %v2472_v51 = vpop.permute.xlu2 %2471 }
0x11b8   :  { %v2474_v56 = vpop.permute.xlu2 %2473 }
0x11ba   :  { %v2458_v53 = vpop.permute.xlu0 %2457 }
0x11bb   :  { %v2478_v54 = vsel %vm256_vm5, %v2294_v42, %v2458_v53 }
0x11d7   :  { %v2464_v61 = vpop.permute.xlu1 %2463 }
0x11d8   :  { %v2479_v9 = vsel %vm807_vm6, %v2477_v50, %v2464_v61 }
0x11d9   :  { %v2481_v52 = vsel %vm810_vm7, %v2479_v9, %v2472_v51 }
0x11da   :  { %2834 = vmatmul.msk.f32.vlgmr.msra.gmra.mxu1 %vm95_vm4, %v2481_v52 }
0x11df   :  { %v2466_v55 = vpop.permute.xlu1 %2465 }
0x11e0   :  { %v2480_v57 = vsel %vm807_vm6, %v2478_v54, %v2466_v55  ;;  %v2617_v54 = vld [vmem:[%s3923_s3 + $0x128] sm:$0xff]  ;;  %v2616_v55 = vld [vmem:[%s3923_s3 + $0x120] sm:$0xff] }
0x11e1   :  { %v2482_v60 = vsel %vm810_vm7, %v2480_v57, %v2474_v56  ;;  %2640 = vmatpush.msrb.mxu0 %v2617_v54  ;;  %v2615_v56 = vld [vmem:[%s3923_s3 + $0x118] sm:$0xff]  ;;  %v2939_v57 = vld [vmem:[%s3928_s8 + $0x2] ss:$0 sm:$0xff] }
0x11e2   :  { %2835 = vmatmul.msk.f32.gmra.mxu1 %vm95_vm4, %v2482_v60 }
0x11e3   :  { %2641 = vmatpush.msrb.mxu0 %v2616_v55 }
0x11e5   :  { %2642 = vmatpush.msrb.mxu0 %v2615_v56 }
0x1257   :  { %v2512_v0 = vpop.f32.mrf.mxu1 }
0x1258   :  { %v2513_v1 = vadd.f32 %v2936_v62, %v2512_v0 }
0x125a   :  { %v2518_v2 = vadd.f32 %v2513_v1, %v3593_v14 }
0x125c   :  { %v2522_v3 = vsel %vm95_vm4, %v2518_v2, 0.0  ;;  %v2530_v4 = vmul.f32 %v2518_v2, %v2518_v2 }
0x125d   :  { %2523 = vadd.xlane.f32.xlu0 %v2522_v3 }
0x125e   :  { %v2532_v5 = vsel %vm95_vm4, %v2530_v4, 0.0  ;;  %v2940_v4 = vld [vmem:[%s3927_s7 + $0x14] ss:$0 sm:$0xff] }
0x125f   :  { %2533 = vadd.xlane.f32.xlu1 %v2532_v5  ;;  %v2515_v58 = vpop.f32.mrf.mxu1 }
0x1260   :  { %v2516_v6 = vadd.f32 %v2936_v62, %v2515_v58 }
0x1262   :  { %v3848_v7 = vadd.f32 %v2516_v6, %v3598_v15  ;;  %v2580_v15 = vld [vmem:[%s3924_s4 + $0x50] sm:$0xff] }
0x1263   :  { %2603 = vmatpush.msra.mxu3 %v2580_v15 }
0x1264   :  { %v2525_v8 = vsel %vm95_vm4, %v3848_v7, 0.0  ;;  %v2531_v10 = vmul.f32 %v3848_v7, %v3848_v7 }
0x1265   :  { %2526 = vadd.xlane.f32.xlu2 %v2525_v8  ;;  %2604 = vmatpush.msra.mxu3 %v2579_v13 }
0x1266   :  { %v2535_v14 = vsel %vm95_vm4, %v2531_v10, 0.0 }
0x1267   :  { %2536 = vadd.xlane.f32.xlu0 %v2535_v14  ;;  %2605 = vmatpush.msra.mxu3 %v2578_v18 }
0x12d0   :  { %v2524_v12 = vpop.xlane.xlu0 %2523 }
0x12d1   :  { %v2528_v16 = vmul.f32 %v2524_v12, %v3396_v20 }
0x12d2   :  { %v2534_v17 = vpop.xlane.xlu1 %2533 }
0x12d3   :  { %v2540_v19 = vmul.f32 %v2528_v16, %v2528_v16  ;;  %v2538_v21 = vmul.f32 %v2534_v17, %v3396_v20  ;;  %v2546_v39 = vsub.f32 %v2518_v2, %v2528_v16 }
0x12d5   :  { %v2542_v59 = vsub.f32 %v2538_v21, %v2540_v19 }
0x12d7   :  { %v2544_v22 = vmax.f32 %v2542_v59, 0.0 }
0x12d8   :  { %v2527_v63 = vpop.xlane.xlu2 %2526 }
0x12d9   :  { %v2548_v23 = vadd.f32 1e-05, %v2544_v22  ;;  %v2529_v24 = vmul.f32 %v2527_v63, %v3396_v20 }
0x12da   :  { %v2537_v25 = vpop.xlane.xlu0 %2536 }
0x12db   :  { %3057 = vrsqrt.f32 %v2548_v23  ;;  %v2541_v26 = vmul.f32 %v2529_v24, %v2529_v24  ;;  %v2539_v27 = vmul.f32 %v2537_v25, %v3396_v20  ;;  %vm2556_vm6 = vweird.f32 %v2548_v23 }
0x12dc   :  { %v2547_v61 = vsub.f32 %v3848_v7, %v2529_v24 }
0x12dd   :  { %v2543_v29 = vsub.f32 %v2539_v27, %v2541_v26 }
0x12df   :  { %v2545_v30 = vmax.f32 %v2543_v29, 0.0 }
0x12e1   :  { %v3058_v31 = vpop.eup %3057  ;;  %v2549_v33 = vadd.f32 1e-05, %v2545_v30 }
0x12e2   :  { %v2551_v32 = vmul.f32 %v3058_v31, %v2548_v23  ;;  %vm2557_vm5 = vweird.f32 %v3058_v31 }
0x12e3   :  { %3059 = vrsqrt.f32 %v2549_v33  ;;  %vm2558_vm7 = vmor %vm2556_vm6, %vm2557_vm5  ;;  %vm2566_vm10 = vweird.f32 %v2549_v33 }
0x12e4   :  { %v2552_v34 = vmul.f32 %v3058_v31, %v2551_v32 }
0x12e6   :  { %v2553_v35 = vmul.f32 0.5, %v2552_v34 }
0x12e8   :  { %v2554_v36 = vsub.f32 1.5, %v2553_v35 }
0x12e9   :  { %v3060_v37 = vpop.eup %3059 }
0x12ea   :  { %v2555_v38 = vmul.f32 %v3058_v31, %v2554_v36  ;;  %v2561_v40 = vmul.f32 %v3060_v37, %v2549_v33  ;;  %vm2567_vm9 = vweird.f32 %v3060_v37 }
0x12eb   :  { %vm2568_vm11 = vmor %vm2566_vm10, %vm2567_vm9 }
0x12ec   :  { %v2559_v42 = vsel %vm2558_vm7, %v3058_v31, %v2555_v38  ;;  %v2562_v44 = vmul.f32 %v3060_v37, %v2561_v40  ;;  %v2941_v40 = vld [vmem:[%s3927_s7 + $0x12] ss:$0 sm:$0xff] }
0x12ed   :  { %v2570_v43 = vmul.f32 %v2559_v42, %v2546_v39 }
0x12ee   :  { %v2563_v46 = vmul.f32 0.5, %v2562_v44  ;;  %v2942_v44 = vld [vmem:[%s3927_s7 + $0x13] ss:$0 sm:$0xff]  ;;  %s3109_s7 = smov 128  }
0x12ef   :  { %v2573_v47 = vmul.f32 %v2937_v41, %v2570_v43 }
0x12f0   :  { %v2564_v48 = vsub.f32 1.5, %v2563_v46 }
0x12f1   :  { %v2576_v49 = vadd.f32 %v2938_v45, %v2573_v47 }
0x12f2   :  { %v2565_v50 = vmul.f32 %v3060_v37, %v2564_v48 }
0x12f3   :  { %2836 = vmatmul.msk.f32.vlgmr.msra.gmra.mxu3 %vm95_vm4, %v2576_v49 }
0x12f4   :  { %v2569_v51 = vsel %vm2568_vm11, %v3060_v37, %v2565_v50 }
0x12f5   :  { %v2571_v9 = vmul.f32 %v2569_v51, %v2547_v61 }
0x12f7   :  { %v2574_v52 = vmul.f32 %v2937_v41, %v2571_v9 }
0x12f9   :  { %v2577_v53 = vadd.f32 %v2938_v45, %v2574_v52 }
0x12fb   :  { %2837 = vmatmul.msk.f32.gmra.mxu3 %vm95_vm4, %v2577_v53 }
0x1376   :  { %v2607_v60 = vpop.f32.mrf.mxu3 }
0x1377   :  { %v2608_v62 = vadd.f32 %v2939_v57, %v2607_v60 }
0x1379   :  { %v2613_v0 = vmax.f32 %v2608_v62, 0.0 }
0x137b   :  { %2838 = vmatmul.msk.f32.vlgmr.msrb.gmra.mxu0 %vm95_vm4, %v2613_v0 }
0x137e   :  { %v2610_v1 = vpop.f32.mrf.mxu3 }
0x137f   :  { %v2611_v2 = vadd.f32 %v2939_v57, %v2610_v1 }
0x1381   :  { %v2614_v3 = vmax.f32 %v2611_v2, 0.0 }
0x1383   :  { %2839 = vmatmul.msk.f32.gmra.mxu0 %vm95_vm4, %v2614_v3 }
0x13f8   :  { %v2644_v5 = vpop.f32.mrf.mxu0 }
0x13f9   :  { %v2645_v58 = vadd.f32 %v2940_v4, %v2644_v5 }
0x13fb   :  { %v2650_v6 = vadd.f32 %v2645_v58, %v2576_v49 }
0x13fd   :  { %v2654_v7 = vsel %vm95_vm4, %v2650_v6, 0.0  ;;  %v2662_v8 = vmul.f32 %v2650_v6, %v2650_v6 }
0x13fe   :  { %2655 = vadd.xlane.f32.xlu1 %v2654_v7 }
0x13ff   :  { %v2664_v10 = vsel %vm95_vm4, %v2662_v8, 0.0 }
0x1400   :  { %2665 = vadd.xlane.f32.xlu0 %v2664_v10  ;;  %v2647_v14 = vpop.f32.mrf.mxu0 }
0x1401   :  { %v2648_v11 = vadd.f32 %v2940_v4, %v2647_v14 }
0x1403   :  { %v2651_v15 = vadd.f32 %v2648_v11, %v2577_v53 }
0x1405   :  { %v2657_v12 = vsel %vm95_vm4, %v2651_v15, 0.0  ;;  %v2663_v13 = vmul.f32 %v2651_v15, %v2651_v15 }
0x1406   :  { %2658 = vadd.xlane.f32.xlu2 %v2657_v12 }
0x1407   :  { %v2667_v16 = vsel %vm95_vm4, %v2663_v13, 0.0 }
0x1408   :  { %2668 = vadd.xlane.f32.xlu1 %v2667_v16 }
0x1471   :  { %v2656_v17 = vpop.xlane.xlu1 %2655 }
0x1472   :  { %v2660_v18 = vmul.f32 %v2656_v17, %v3396_v20 }
0x1473   :  { %v2666_v19 = vpop.xlane.xlu0 %2665 }
0x1474   :  { %v2672_v21 = vmul.f32 %v2660_v18, %v2660_v18  ;;  %v2670_v59 = vmul.f32 %v2666_v19, %v3396_v20  ;;  %v2678_v39 = vsub.f32 %v2650_v6, %v2660_v18 }
0x1476   :  { %v2674_v22 = vsub.f32 %v2670_v59, %v2672_v21 }
0x1478   :  { %v2676_v63 = vmax.f32 %v2674_v22, 0.0 }
0x1479   :  { %v2659_v24 = vpop.xlane.xlu2 %2658 }
0x147a   :  { %v2680_v23 = vadd.f32 1e-05, %v2676_v63  ;;  %v2661_v25 = vmul.f32 %v2659_v24, %v3396_v20 }
0x147b   :  { %v2669_v26 = vpop.xlane.xlu1 %2668 }
0x147c   :  { %3061 = vrsqrt.f32 %v2680_v23  ;;  %v2673_v27 = vmul.f32 %v2661_v25, %v2661_v25  ;;  %v2671_v28 = vmul.f32 %v2669_v26, %v3396_v20  ;;  %vm2688_vm13 = vweird.f32 %v2680_v23 }
0x147d   :  { %v2679_v50 = vsub.f32 %v2651_v15, %v2661_v25 }
0x147e   :  { %v2675_v29 = vsub.f32 %v2671_v28, %v2673_v27 }
0x1480   :  { %v2677_v30 = vmax.f32 %v2675_v29, 0.0 }
0x1482   :  { %v3062_v31 = vpop.eup %3061  ;;  %v2681_v33 = vadd.f32 1e-05, %v2677_v30 }
0x1483   :  { %v2683_v32 = vmul.f32 %v3062_v31, %v2680_v23  ;;  %vm2689_vm12 = vweird.f32 %v3062_v31 }
0x1484   :  { %3063 = vrsqrt.f32 %v2681_v33  ;;  %vm2690_vm14 = vmor %vm2688_vm13, %vm2689_vm12  ;;  %vm2698_vm0 = vweird.f32 %v2681_v33 }
0x1485   :  { %v2684_v34 = vmul.f32 %v3062_v31, %v2683_v32 }
0x1487   :  { %v2685_v35 = vmul.f32 0.5, %v2684_v34 }
0x1489   :  { %v2686_v36 = vsub.f32 1.5, %v2685_v35 }
0x148a   :  { %v3064_v37 = vpop.eup %3063 }
0x148b   :  { %v2687_v38 = vmul.f32 %v3062_v31, %v2686_v36  ;;  %v2693_v20 = vmul.f32 %v3064_v37, %v2681_v33  ;;  %vm2699_vm15 = vweird.f32 %v3064_v37 }
0x148c   :  { %vm2700_vm1 = vmor %vm2698_vm0, %vm2699_vm15 }
0x148d   :  { %v2691_v41 = vsel %vm2690_vm14, %v3062_v31, %v2687_v38  ;;  %v2694_v43 = vmul.f32 %v3064_v37, %v2693_v20 }
0x148e   :  { %v2702_v42 = vmul.f32 %v2691_v41, %v2678_v39 }
0x148f   :  { %v2695_v46 = vmul.f32 0.5, %v2694_v43 }
0x1490   :  { %v2705_v45 = vmul.f32 %v2941_v40, %v2702_v42 }
0x1491   :  { %v2696_v47 = vsub.f32 1.5, %v2695_v46 }
0x1492   :  { %v2708_v48 = vadd.f32 %v2942_v44, %v2705_v45 }
0x1493   :  { %v2697_v49 = vmul.f32 %v3064_v37, %v2696_v47 }
0x1494   :  { %2710 = vst.msk [vmem:[#allocation2] sm:$0xff] %vm95_vm4, %v2708_v48 }
0x1495   :  { %v2701_v61 = vsel %vm2700_vm1, %v3064_v37, %v2697_v49 }
0x1496   :  { %v2703_v51 = vmul.f32 %v2701_v61, %v2679_v50 }
0x1498   :  { %v2706_v9 = vmul.f32 %v2941_v40, %v2703_v51 }
0x149a   :  { %v2709_v52 = vadd.f32 %v2942_v44, %v2706_v9 }
0x149c   :  { %2711 = vst.msk [vmem:[#allocation2 + $0x8] sm:$0xff] %vm95_vm4, %v2709_v52 }
0x149d   :  { %2724 = dma.vmem_to_hbm [thread:$0]  %s2717_s24, 256, %s2719_s26, [#allocation3], %s3109_s7, %s3109_s7, %s3100_s18  }
0x149e   :  { %3090 = dma.done.wait [#allocation3], 256  }
0x149f   :  { %3091 = vsyncadd [#allocation3], 4294967040 }
0x14a0   :  { %2729 = vsyncpa [#allocation3], 1 }

</bundles_post_ra>
